<compile_context>
chip_gen: v7x
topology: tpu7x:2x2x1
jax: 0.10.0
libtpu: 0.0.40
codegen_flags: <defaults>
</compile_context>

<pallas_src>
import numpy as np
import jax
import jax.numpy as jnp
from jax import lax
from jax.experimental import pallas as pl
from jax.experimental.pallas import tpu as pltpu  # noqa: F401  (kept for TPU-specific tuning hooks)

# ---- model hyper-parameters (small, consistent with the module) ----
D_MODEL = 32
N_HEAD = 4
D_HEAD = D_MODEL // N_HEAD
D_FF = 64
NUM_LAYERS = 2
EPS = 1e-5
NVEC = 17           # rows of the packed per-layer vector slab
NEG_INF = -1e9

# packed attention-matrix slab row-block indices ((6*D, D) per layer)
M_SA_WV, M_SA_WO, M_CA_WQ, M_CA_WK, M_CA_WV, M_CA_WO = 0, 1, 2, 3, 4, 5

# packed vector-slab row indices ((NVEC, D) per layer)
V_SA_BQ, V_SA_BK, V_SA_BV, V_SA_BO = 0, 1, 2, 3
V_CA_BQ, V_CA_BK, V_CA_BV, V_CA_BO = 4, 5, 6, 7
V_B2 = 8
V_G1, V_BE1, V_G2, V_BE2, V_G3, V_BE3 = 9, 10, 11, 12, 13, 14
V_FG, V_FB = 15, 16


# ----------------------------- kernel helpers -----------------------------

def _layer_norm(v, g, b):
    mu = jnp.mean(v, axis=-1, keepdims=True)
    var = jnp.mean((v - mu) ** 2, axis=-1, keepdims=True)
    return (v - mu) * lax.rsqrt(var + EPS) * g + b


def _mha_core(q, k, v, wo, bo, bias):
    """Multi-head attention core on projected activations.

    q:(Nq,D), k,v:(Nk,D) f32 (softmax scale already folded into Wq/bq);
    wo:(D,D) bf16; bo:(1,D) f32; bias:(Nq,Nk) additive batch-independence mask.

    Scores for all heads are stacked once so max/exp/sum/reciprocal run a single
    pass; q@k^T contracts on last dims (no transposes); head outputs are
    lane-concatenated so the Wo projection is one (Nq,D)@(D,D) matmul."""
    qb, kb, vb = (t.astype(jnp.bfloat16) for t in (q, k, v))
    dn = (((1,), (1,)), ((), ()))            # contract last dims: q_h @ k_h^T
    s = jnp.stack([
        lax.dot_general(qb[:, h * D_HEAD:(h + 1) * D_HEAD],
                        kb[:, h * D_HEAD:(h + 1) * D_HEAD],
                        dn, preferred_element_type=jnp.float32)
        for h in range(N_HEAD)], axis=0)     # (H, Nq, Nk)
    s = s + bias[None, :, :]
    s = s - jnp.max(s, axis=-1, keepdims=True)           # single pass over all heads
    e = jnp.exp(s)
    a = (e * pl.reciprocal(jnp.sum(e, axis=-1, keepdims=True),
                           approx=True)).astype(jnp.bfloat16)
    ctx = jnp.concatenate([
        jnp.dot(a[h], vb[:, h * D_HEAD:(h + 1) * D_HEAD],
                preferred_element_type=jnp.float32)
        for h in range(N_HEAD)], axis=-1)    # (Nq, D), head-major along lanes
    return jnp.dot(ctx.astype(jnp.bfloat16), wo,
                   preferred_element_type=jnp.float32) + bo


# ----------------------------- fused decoder kernel -----------------------------

def decoder_kernel(tgt_ref, mem_ref, qp_ref, ps_ref, bidq_ref, bidt_ref, bidm_ref,
                   wqk_ref, attw_ref, w1_ref, w2_ref, b1_ref, vec_ref, out_ref):
    f32, bf16, D = jnp.float32, jnp.bfloat16, D_MODEL

    x = tgt_ref[...]                         # (NT, D) resident activation
    mem = mem_ref[...]                       # (NS, D)
    qp = qp_ref[...]                         # (NT, D)
    memk = mem + ps_ref[...]                 # cross-attn key input (memory + pos)

    # Additive batch-independence masks built in-kernel from tiny batch-id vectors
    # (the O(NT^2)/O(NT*NS) masks never touch HBM; compare+select only).
    bsa = jnp.where(bidq_ref[...] == bidt_ref[...], 0.0, NEG_INF)   # (NT, NT)
    bca = jnp.where(bidq_ref[...] == bidm_ref[...], 0.0, NEG_INF)   # (NT, NS)

    # layer-invariant bf16 casts hoisted out of the layer loop
    mem_b, memk_b = mem.astype(bf16), memk.astype(bf16)

    for l in range(NUM_LAYERS):              # statically unrolled layer loop
        wqk = wqk_ref[l]                     # (D, 2D)  [Wq*scale | Wk] self-attn, bf16
        w = attw_ref[l]                      # (6D, D)  remaining attn matrices, bf16
        vec = vec_ref[l]                     # (NVEC, D) biases / norm params, f32
        wm = lambda m: w[m * D:(m + 1) * D, :]
        vr = lambda r: vec[r:r + 1, :]

        # ---- self attention: q = k = x + query_pos, v = x ----
        xq = x + qp
        qk = jnp.dot(xq.astype(bf16), wqk, preferred_element_type=f32)   # fused Q|K proj
        q = qk[:, :D] + vr(V_SA_BQ)          # scale pre-folded into Wq / bq
        k = qk[:, D:] + vr(V_SA_BK)
        v = jnp.dot(x.astype(bf16), wm(M_SA_WV), preferred_element_type=f32) + vr(V_SA_BV)
        sa = _mha_core(q, k, v, wm(M_SA_WO), vr(V_SA_BO), bsa)
        x = _layer_norm(x + sa, vr(V_G1), vr(V_BE1))

        # ---- cross attention: q = x + query_pos, k = memory + pos, v = memory ----
        q = jnp.dot((x + qp).astype(bf16), wm(M_CA_WQ), preferred_element_type=f32) + vr(V_CA_BQ)
        k = jnp.dot(memk_b, wm(M_CA_WK), preferred_element_type=f32) + vr(V_CA_BK)
        v = jnp.dot(mem_b, wm(M_CA_WV), preferred_element_type=f32) + vr(V_CA_BV)
        ca = _mha_core(q, k, v, wm(M_CA_WO), vr(V_CA_BO), bca)
        x = _layer_norm(x + ca, vr(V_G2), vr(V_BE2))

        # ---- FFN: linear2(relu(linear1(x))) ----
        h1 = jnp.maximum(
            jnp.dot(x.astype(bf16), w1_ref[l], preferred_element_type=f32) + b1_ref[l], 0.0)
        ff = jnp.dot(h1.astype(bf16), w2_ref[l], preferred_element_type=f32) + vr(V_B2)
        x = _layer_norm(x + ff, vr(V_G3), vr(V_BE3))

    # final decoder LayerNorm, written directly to the output (no redundant store)
    fvec = vec_ref[NUM_LAYERS - 1]
    out_ref[...] = _layer_norm(x, fvec[V_FG:V_FG + 1, :], fvec[V_FB:V_FB + 1, :])


# ----------------------------- host-side packing & wrapper -----------------------------

def pack_params(layer_params, norm_g, norm_b):
    """Pre-transpose / merge / pre-scale parameters into a few (L, ...) slabs.

    Matmul weights are stored as bf16 (MXU operands, f32 accumulation); biases and
    norm parameters stay f32.  The 1/sqrt(D_HEAD) softmax scale is folded into the
    Q projections and their biases here (free, one-time host work)."""
    D, scale = D_MODEL, 1.0 / (D_HEAD ** 0.5)
    wqk_sa, attw, w1s, w2s, b1s, vecs = [], [], [], [], [], []
    for lp in layer_params:
        saw, caw = lp["sa_w"], lp["ca_w"]                 # (3D, D) PyTorch in_proj layout
        wqk_sa.append(jnp.concatenate(
            [saw[0:D].T * scale, saw[D:2 * D].T], axis=1))            # (D, 2D)
        attw.append(jnp.concatenate([
            saw[2 * D:3 * D].T,        # M_SA_WV
            lp["sa_ow"].T,             # M_SA_WO
            caw[0:D].T * scale,        # M_CA_WQ (scaled)
            caw[D:2 * D].T,            # M_CA_WK
            caw[2 * D:3 * D].T,        # M_CA_WV
            lp["ca_ow"].T,             # M_CA_WO
        ], axis=0))                                                    # (6D, D)
        w1s.append(lp["w1"].T)                                         # (D, D_FF)
        w2s.append(lp["w2"].T)                                         # (D_FF, D)
        b1s.append(lp["b1"].reshape(1, D_FF))
        sab, cab = lp["sa_b"].reshape(-1), lp["ca_b"].reshape(-1)
        vecs.append(jnp.stack([
            sab[0:D] * scale, sab[D:2 * D], sab[2 * D:3 * D], lp["sa_ob"].reshape(-1),
            cab[0:D] * scale, cab[D:2 * D], cab[2 * D:3 * D], lp["ca_ob"].reshape(-1),
            lp["b2"].reshape(-1),
            lp["g1"].reshape(-1), lp["be1"].reshape(-1),
            lp["g2"].reshape(-1), lp["be2"].reshape(-1),
            lp["g3"].reshape(-1), lp["be3"].reshape(-1),
            norm_g.reshape(-1), norm_b.reshape(-1),
        ], axis=0))                                                    # (NVEC, D)
    bf16 = jnp.bfloat16
    return (jnp.stack(wqk_sa).astype(bf16), jnp.stack(attw).astype(bf16),
            jnp.stack(w1s).astype(bf16), jnp.stack(w2s).astype(bf16),
            jnp.stack(b1s), jnp.stack(vecs))


def transformer_decoder_forward(tgt, memory, pos, query_pos, layer_params, norm_g, norm_b):
    """Mirrors TransformerDecoder.forward (return_intermediate=False, norm=LayerNorm)."""
    T, B, D = tgt.shape
    S = memory.shape[0]
    NT, NS = T * B, S * B

    wqk_sa, attw, w1, w2, b1, vec = pack_params(layer_params, norm_g, norm_b)

    # tiny batch-id vectors (row index in the folded layout = seq*B + batch)
    bid_q = jnp.asarray((np.arange(NT) % B).reshape(NT, 1), jnp.float32)
    bid_t = jnp.asarray((np.arange(NT) % B).reshape(1, NT), jnp.float32)
    bid_m = jnp.asarray((np.arange(NS) % B).reshape(1, NS), jnp.float32)

    out = pl.pallas_call(
        decoder_kernel,
        out_shape=jax.ShapeDtypeStruct((NT, D), jnp.float32),
    )(tgt.reshape(NT, D), memory.reshape(NS, D), query_pos.reshape(NT, D),
      pos.reshape(NS, D), bid_q, bid_t, bid_m, wqk_sa, attw, w1, w2, b1, vec)

    return out.reshape(T, B, D)[None]                                 # unsqueeze(0)


# ----------------------------- pure-JAX reference -----------------------------

def _ref_mha(q_in, k_in, v_in, w, b, ow, ob):
    D = D_MODEL
    q = q_in @ w[0:D].T + b[:, 0:D]
    k = k_in @ w[D:2 * D].T + b[:, D:2 * D]
    v = v_in @ w[2 * D:3 * D].T + b[:, 2 * D:3 * D]
    scale = 1.0 / (D_HEAD ** 0.5)
    outs = []
    for h in range(N_HEAD):
        sl = slice(h * D_HEAD, (h + 1) * D_HEAD)
        s = (q[:, sl] * scale) @ k[:, sl].T
        a = jax.nn.softmax(s, axis=-1)
        outs.append(a @ v[:, sl])
    return jnp.concatenate(outs, axis=-1) @ ow.T + ob


def _ref_layer(x, mem, qp, ps, lp):
    sa = _ref_mha(x + qp, x + qp, x, lp["sa_w"], lp["sa_b"], lp["sa_ow"], lp["sa_ob"])
    x1 = _layer_norm(x + sa, lp["g1"], lp["be1"])
    ca = _ref_mha(x1 + qp, mem + ps, mem, lp["ca_w"], lp["ca_b"], lp["ca_ow"], lp["ca_ob"])
    x2 = _layer_norm(x1 + ca, lp["g2"], lp["be2"])
    ff = jnp.maximum(x2 @ lp["w1"].T + lp["b1"], 0.0) @ lp["w2"].T + lp["b2"]
    return _layer_norm(x2 + ff, lp["g3"], lp["be3"])


def reference_forward(tgt, memory, pos, query_pos, layer_params, norm_g, norm_b):
    x = jnp.transpose(tgt, (1, 0, 2))
    mem = jnp.transpose(memory, (1, 0, 2))
    qp = jnp.transpose(query_pos, (1, 0, 2))
    ps = jnp.transpose(pos, (1, 0, 2))
    out = []
    for b in range(x.shape[0]):
        xb = x[b]
        for lp in layer_params:
            xb = _ref_layer(xb, mem[b], qp[b], ps[b], lp)
        out.append(_layer_norm(xb, norm_g, norm_b))
    out = jnp.stack(out, axis=0)
    return jnp.transpose(out, (1, 0, 2))[None]


# ----------------------------- param init -----------------------------

def init_params(key):
    layer_params = []
    for l in range(NUM_LAYERS):
        kl = jax.random.fold_in(key, l)
        ks = jax.random.split(kl, 8)
        lp = {
            "sa_w": 0.02 * jax.random.normal(ks[0], (3 * D_MODEL, D_MODEL), jnp.float32),
            "sa_b": 0.02 * jax.random.normal(ks[1], (1, 3 * D_MODEL), jnp.float32),
            "sa_ow": 0.02 * jax.random.normal(ks[2], (D_MODEL, D_MODEL), jnp.float32),
            "sa_ob": jnp.zeros((1, D_MODEL), jnp.float32),
            "ca_w": 0.02 * jax.random.normal(ks[3], (3 * D_MODEL, D_MODEL), jnp.float32),
            "ca_b": 0.02 * jax.random.normal(ks[4], (1, 3 * D_MODEL), jnp.float32),
            "ca_ow": 0.02 * jax.random.normal(ks[5], (D_MODEL, D_MODEL), jnp.float32),
            "ca_ob": jnp.zeros((1, D_MODEL), jnp.float32),
            "w1": 0.02 * jax.random.normal(ks[6], (D_FF, D_MODEL), jnp.float32),
            "b1": jnp.zeros((1, D_FF), jnp.float32),
            "w2": 0.02 * jax.random.normal(ks[7], (D_MODEL, D_FF), jnp.float32),
            "b2": jnp.zeros((1, D_MODEL), jnp.float32),
            "g1": jnp.ones((1, D_MODEL), jnp.float32),
            "be1": jnp.zeros((1, D_MODEL), jnp.float32),
            "g2": jnp.ones((1, D_MODEL), jnp.float32),
            "be2": jnp.zeros((1, D_MODEL), jnp.float32),
            "g3": jnp.ones((1, D_MODEL), jnp.float32),
            "be3": jnp.zeros((1, D_MODEL), jnp.float32),
        }
        layer_params.append(lp)
    norm_g = jnp.ones((1, D_MODEL), jnp.float32)
    norm_b = jnp.zeros((1, D_MODEL), jnp.float32)
    return layer_params, norm_g, norm_b


# ----------------------------- main -----------------------------

if __name__ == "__main__":
    B, T, S = 2, 8, 16  # batch, num queries (tgt len), memory len

    key = jax.random.PRNGKey(0)
    k_tgt, k_mem, k_pos, k_qpos, k_par = jax.random.split(key, 5)

    tgt = jax.random.normal(k_tgt, (T, B, D_MODEL), jnp.float32)
    memory = jax.random.normal(k_mem, (S, B, D_MODEL), jnp.float32)
    pos = jax.random.normal(k_pos, (S, B, D_MODEL), jnp.float32)
    query_pos = jax.random.normal(k_qpos, (T, B, D_MODEL), jnp.float32)

    layer_params, norm_g, norm_b = init_params(k_par)

    out = transformer_decoder_forward(tgt, memory, pos, query_pos,
                                      layer_params, norm_g, norm_b)
    out = jax.block_until_ready(out)
    assert out.shape == (1, T, B, D_MODEL), out.shape
    assert bool(jnp.all(jnp.isfinite(out)))

    ref = reference_forward(tgt, memory, pos, query_pos, layer_params, norm_g, norm_b)
    max_err = float(jnp.max(jnp.abs(out - ref)))
    assert max_err < 2e-2, f"max abs error {max_err}"

    print("KERNEL_OK")
</pallas_src>

<mosaic_0001>
module attributes {stable_mosaic.version = 11 : i64} {
  func.func @decoder_kernel(%arg0: memref<16x32xf32, #tpu.memory_space<vmem>>, %arg1: memref<32x32xf32, #tpu.memory_space<vmem>>, %arg2: memref<16x32xf32, #tpu.memory_space<vmem>>, %arg3: memref<32x32xf32, #tpu.memory_space<vmem>>, %arg4: memref<16x1xf32, #tpu.memory_space<vmem>>, %arg5: memref<1x16xf32, #tpu.memory_space<vmem>>, %arg6: memref<1x32xf32, #tpu.memory_space<vmem>>, %arg7: memref<2x32x64xbf16, #tpu.memory_space<vmem>>, %arg8: memref<2x192x32xbf16, #tpu.memory_space<vmem>>, %arg9: memref<2x32x64xbf16, #tpu.memory_space<vmem>>, %arg10: memref<2x64x32xbf16, #tpu.memory_space<vmem>>, %arg11: memref<2x1x64xf32, #tpu.memory_space<vmem>>, %arg12: memref<2x17x32xf32, #tpu.memory_space<vmem>>, %arg13: memref<16x32xf32, #tpu.memory_space<vmem>>) attributes {dimension_semantics = [], scalar_prefetch = 0 : i64, scratch_operands = 0 : i64, tpu.core_type = #tpu.core_type<tc>} {
    %c0 = arith.constant 0 : index
    %c0_0 = arith.constant 0 : index
    %0 = vector.load %arg0[%c0, %c0_0] : memref<16x32xf32, #tpu.memory_space<vmem>>, vector<16x32xf32>
    %c0_1 = arith.constant 0 : index
    %c0_2 = arith.constant 0 : index
    %1 = vector.load %arg1[%c0_1, %c0_2] : memref<32x32xf32, #tpu.memory_space<vmem>>, vector<32x32xf32>
    %c0_3 = arith.constant 0 : index
    %c0_4 = arith.constant 0 : index
    %2 = vector.load %arg2[%c0_3, %c0_4] : memref<16x32xf32, #tpu.memory_space<vmem>>, vector<16x32xf32>
    %c0_5 = arith.constant 0 : index
    %c0_6 = arith.constant 0 : index
    %3 = vector.load %arg3[%c0_5, %c0_6] : memref<32x32xf32, #tpu.memory_space<vmem>>, vector<32x32xf32>
    %4 = arith.addf %1, %3 : vector<32x32xf32>
    %c0_7 = arith.constant 0 : index
    %c0_8 = arith.constant 0 : index
    %5 = vector.load %arg4[%c0_7, %c0_8] : memref<16x1xf32, #tpu.memory_space<vmem>>, vector<16x1xf32>
    %c0_9 = arith.constant 0 : index
    %c0_10 = arith.constant 0 : index
    %6 = vector.load %arg5[%c0_9, %c0_10] : memref<1x16xf32, #tpu.memory_space<vmem>>, vector<1x16xf32>
    %7 = vector.broadcast %5 : vector<16x1xf32> to vector<16x16xf32>
    %8 = vector.broadcast %6 : vector<1x16xf32> to vector<16x16xf32>
    %9 = arith.cmpf oeq, %7, %8 : vector<16x16xf32>
    %cst = arith.constant 0.000000e+00 : f32
    %cst_11 = arith.constant -1.000000e+09 : f32
    %10 = vector.broadcast %cst : f32 to vector<16x16xf32>
    %11 = vector.broadcast %cst_11 : f32 to vector<16x16xf32>
    %12 = arith.select %9, %10, %11 : vector<16x16xi1>, vector<16x16xf32>
    %c0_12 = arith.constant 0 : index
    %c0_13 = arith.constant 0 : index
    %13 = vector.load %arg4[%c0_12, %c0_13] : memref<16x1xf32, #tpu.memory_space<vmem>>, vector<16x1xf32>
    %c0_14 = arith.constant 0 : index
    %c0_15 = arith.constant 0 : index
    %14 = vector.load %arg6[%c0_14, %c0_15] : memref<1x32xf32, #tpu.memory_space<vmem>>, vector<1x32xf32>
    %15 = vector.broadcast %13 : vector<16x1xf32> to vector<16x32xf32>
    %16 = vector.broadcast %14 : vector<1x32xf32> to vector<16x32xf32>
    %17 = arith.cmpf oeq, %15, %16 : vector<16x32xf32>
    %cst_16 = arith.constant 0.000000e+00 : f32
    %cst_17 = arith.constant -1.000000e+09 : f32
    %18 = vector.broadcast %cst_16 : f32 to vector<16x32xf32>
    %19 = vector.broadcast %cst_17 : f32 to vector<16x32xf32>
    %20 = arith.select %17, %18, %19 : vector<16x32xi1>, vector<16x32xf32>
    %21 = arith.truncf %1 : vector<32x32xf32> to vector<32x32xbf16>
    %22 = arith.truncf %4 : vector<32x32xf32> to vector<32x32xbf16>
    %c0_18 = arith.constant 0 : index
    %c0_19 = arith.constant 0 : index
    %c0_20 = arith.constant 0 : index
    %23 = vector.load %arg7[%c0_18, %c0_19, %c0_20] : memref<2x32x64xbf16, #tpu.memory_space<vmem>>, vector<1x32x64xbf16>
    %24 = vector.shape_cast %23 : vector<1x32x64xbf16> to vector<32x64xbf16>
    %c0_21 = arith.constant 0 : index
    %c0_22 = arith.constant 0 : index
    %c0_23 = arith.constant 0 : index
    %25 = vector.load %arg8[%c0_21, %c0_22, %c0_23] : memref<2x192x32xbf16, #tpu.memory_space<vmem>>, vector<1x192x32xbf16>
    %26 = vector.shape_cast %25 : vector<1x192x32xbf16> to vector<192x32xbf16>
    %c0_24 = arith.constant 0 : index
    %c0_25 = arith.constant 0 : index
    %c0_26 = arith.constant 0 : index
    %27 = vector.load %arg12[%c0_24, %c0_25, %c0_26] : memref<2x17x32xf32, #tpu.memory_space<vmem>>, vector<1x17x32xf32>
    %28 = vector.shape_cast %27 : vector<1x17x32xf32> to vector<17x32xf32>
    %29 = arith.addf %0, %2 : vector<16x32xf32>
    %30 = arith.truncf %29 : vector<16x32xf32> to vector<16x32xbf16>
    %cst_27 = arith.constant dense<0.000000e+00> : vector<16x64xf32>
    %31 = tpu.matmul %30, %24, %cst_27 {dimension_numbers = #tpu.dot_dimension_numbers<[1], [0], [0], [1], [0, 0, 1, 1], [], []>} : vector<16x32xbf16>, vector<32x64xbf16>, vector<16x64xf32> -> vector<16x64xf32>
    %32 = vector.extract_strided_slice %31 {offsets = [0, 0], sizes = [16, 32], strides = [1, 1]} : vector<16x64xf32> to vector<16x32xf32>
    %33 = vector.extract_strided_slice %28 {offsets = [0, 0], sizes = [1, 32], strides = [1, 1]} : vector<17x32xf32> to vector<1x32xf32>
    %34 = vector.broadcast %33 : vector<1x32xf32> to vector<16x32xf32>
    %35 = arith.addf %32, %34 : vector<16x32xf32>
    %36 = vector.extract_strided_slice %31 {offsets = [0, 32], sizes = [16, 32], strides = [1, 1]} : vector<16x64xf32> to vector<16x32xf32>
    %37 = vector.extract_strided_slice %28 {offsets = [1, 0], sizes = [1, 32], strides = [1, 1]} : vector<17x32xf32> to vector<1x32xf32>
    %38 = vector.broadcast %37 : vector<1x32xf32> to vector<16x32xf32>
    %39 = arith.addf %36, %38 : vector<16x32xf32>
    %40 = arith.truncf %0 : vector<16x32xf32> to vector<16x32xbf16>
    %41 = vector.extract_strided_slice %26 {offsets = [0, 0], sizes = [32, 32], strides = [1, 1]} : vector<192x32xbf16> to vector<32x32xbf16>
    %cst_28 = arith.constant dense<0.000000e+00> : vector<16x32xf32>
    %42 = tpu.matmul %40, %41, %cst_28 {dimension_numbers = #tpu.dot_dimension_numbers<[1], [0], [0], [1], [0, 0, 1, 1], [], []>} : vector<16x32xbf16>, vector<32x32xbf16>, vector<16x32xf32> -> vector<16x32xf32>
    %43 = vector.extract_strided_slice %28 {offsets = [2, 0], sizes = [1, 32], strides = [1, 1]} : vector<17x32xf32> to vector<1x32xf32>
    %44 = vector.broadcast %43 : vector<1x32xf32> to vector<16x32xf32>
    %45 = arith.addf %42, %44 : vector<16x32xf32>
    %46 = vector.extract_strided_slice %26 {offsets = [32, 0], sizes = [32, 32], strides = [1, 1]} : vector<192x32xbf16> to vector<32x32xbf16>
    %47 = vector.extract_strided_slice %28 {offsets = [3, 0], sizes = [1, 32], strides = [1, 1]} : vector<17x32xf32> to vector<1x32xf32>
    %48 = arith.truncf %35 : vector<16x32xf32> to vector<16x32xbf16>
    %49 = arith.truncf %39 : vector<16x32xf32> to vector<16x32xbf16>
    %50 = arith.truncf %45 : vector<16x32xf32> to vector<16x32xbf16>
    %51 = vector.extract_strided_slice %48 {offsets = [0, 0], sizes = [16, 8], strides = [1, 1]} : vector<16x32xbf16> to vector<16x8xbf16>
    %52 = vector.extract_strided_slice %49 {offsets = [0, 0], sizes = [16, 8], strides = [1, 1]} : vector<16x32xbf16> to vector<16x8xbf16>
    %cst_29 = arith.constant dense<0.000000e+00> : vector<16x16xf32>
    %53 = tpu.matmul %51, %52, %cst_29 {dimension_numbers = #tpu.dot_dimension_numbers<[1], [1], [0], [0], [0, 0, 1, 0], [], []>} : vector<16x8xbf16>, vector<16x8xbf16>, vector<16x16xf32> -> vector<16x16xf32>
    %54 = vector.extract_strided_slice %48 {offsets = [0, 8], sizes = [16, 8], strides = [1, 1]} : vector<16x32xbf16> to vector<16x8xbf16>
    %55 = vector.extract_strided_slice %49 {offsets = [0, 8], sizes = [16, 8], strides = [1, 1]} : vector<16x32xbf16> to vector<16x8xbf16>
    %cst_30 = arith.constant dense<0.000000e+00> : vector<16x16xf32>
    %56 = tpu.matmul %54, %55, %cst_30 {dimension_numbers = #tpu.dot_dimension_numbers<[1], [1], [0], [0], [0, 0, 1, 0], [], []>} : vector<16x8xbf16>, vector<16x8xbf16>, vector<16x16xf32> -> vector<16x16xf32>
    %57 = vector.extract_strided_slice %48 {offsets = [0, 16], sizes = [16, 8], strides = [1, 1]} : vector<16x32xbf16> to vector<16x8xbf16>
    %58 = vector.extract_strided_slice %49 {offsets = [0, 16], sizes = [16, 8], strides = [1, 1]} : vector<16x32xbf16> to vector<16x8xbf16>
    %cst_31 = arith.constant dense<0.000000e+00> : vector<16x16xf32>
    %59 = tpu.matmul %57, %58, %cst_31 {dimension_numbers = #tpu.dot_dimension_numbers<[1], [1], [0], [0], [0, 0, 1, 0], [], []>} : vector<16x8xbf16>, vector<16x8xbf16>, vector<16x16xf32> -> vector<16x16xf32>
    %60 = vector.extract_strided_slice %48 {offsets = [0, 24], sizes = [16, 8], strides = [1, 1]} : vector<16x32xbf16> to vector<16x8xbf16>
    %61 = vector.extract_strided_slice %49 {offsets = [0, 24], sizes = [16, 8], strides = [1, 1]} : vector<16x32xbf16> to vector<16x8xbf16>
    %cst_32 = arith.constant dense<0.000000e+00> : vector<16x16xf32>
    %62 = tpu.matmul %60, %61, %cst_32 {dimension_numbers = #tpu.dot_dimension_numbers<[1], [1], [0], [0], [0, 0, 1, 0], [], []>} : vector<16x8xbf16>, vector<16x8xbf16>, vector<16x16xf32> -> vector<16x16xf32>
    %63 = vector.shape_cast %53 : vector<16x16xf32> to vector<1x16x16xf32>
    %64 = vector.shape_cast %56 : vector<16x16xf32> to vector<1x16x16xf32>
    %65 = vector.shape_cast %59 : vector<16x16xf32> to vector<1x16x16xf32>
    %66 = vector.shape_cast %62 : vector<16x16xf32> to vector<1x16x16xf32>
    %67 = tpu.concatenate %63, %64, %65, %66 in 0 : vector<1x16x16xf32>, vector<1x16x16xf32>, vector<1x16x16xf32>, vector<1x16x16xf32> -> vector<4x16x16xf32>
    %68 = vector.shape_cast %12 : vector<16x16xf32> to vector<1x16x16xf32>
    %69 = vector.broadcast %68 : vector<1x16x16xf32> to vector<4x16x16xf32>
    %70 = arith.addf %67, %69 : vector<4x16x16xf32>
    %cst_33 = arith.constant dense<0xFF800000> : vector<4x16xf32>
    %71 = vector.multi_reduction <maximumf>, %70, %cst_33 [2] : vector<4x16x16xf32> to vector<4x16xf32>
    %72 = vector.shape_cast %71 : vector<4x16xf32> to vector<4x16x1xf32>
    %73 = vector.broadcast %72 : vector<4x16x1xf32> to vector<4x16x16xf32>
    %74 = arith.subf %70, %73 : vector<4x16x16xf32>
    %75 = math.exp %74 : vector<4x16x16xf32>
    %cst_34 = arith.constant dense<0.000000e+00> : vector<4x16xf32>
    %76 = vector.multi_reduction <add>, %75, %cst_34 [2] : vector<4x16x16xf32> to vector<4x16xf32>
    %77 = vector.shape_cast %76 : vector<4x16xf32> to vector<4x16x1xf32>
    %78 = tpu.reciprocal %77 {approx = true} : vector<4x16x1xf32> -> vector<4x16x1xf32>
    %79 = vector.broadcast %78 : vector<4x16x1xf32> to vector<4x16x16xf32>
    %80 = arith.mulf %75, %79 : vector<4x16x16xf32>
    %81 = arith.truncf %80 : vector<4x16x16xf32> to vector<4x16x16xbf16>
    %82 = vector.extract_strided_slice %81 {offsets = [0, 0, 0], sizes = [1, 16, 16], strides = [1, 1, 1]} : vector<4x16x16xbf16> to vector<1x16x16xbf16>
    %83 = vector.shape_cast %82 : vector<1x16x16xbf16> to vector<16x16xbf16>
    %84 = vector.extract_strided_slice %50 {offsets = [0, 0], sizes = [16, 8], strides = [1, 1]} : vector<16x32xbf16> to vector<16x8xbf16>
    %cst_35 = arith.constant dense<0.000000e+00> : vector<16x8xf32>
    %85 = tpu.matmul %83, %84, %cst_35 {dimension_numbers = #tpu.dot_dimension_numbers<[1], [0], [0], [1], [0, 0, 1, 1], [], []>} : vector<16x16xbf16>, vector<16x8xbf16>, vector<16x8xf32> -> vector<16x8xf32>
    %86 = vector.extract_strided_slice %81 {offsets = [1, 0, 0], sizes = [1, 16, 16], strides = [1, 1, 1]} : vector<4x16x16xbf16> to vector<1x16x16xbf16>
    %87 = vector.shape_cast %86 : vector<1x16x16xbf16> to vector<16x16xbf16>
    %88 = vector.extract_strided_slice %50 {offsets = [0, 8], sizes = [16, 8], strides = [1, 1]} : vector<16x32xbf16> to vector<16x8xbf16>
    %cst_36 = arith.constant dense<0.000000e+00> : vector<16x8xf32>
    %89 = tpu.matmul %87, %88, %cst_36 {dimension_numbers = #tpu.dot_dimension_numbers<[1], [0], [0], [1], [0, 0, 1, 1], [], []>} : vector<16x16xbf16>, vector<16x8xbf16>, vector<16x8xf32> -> vector<16x8xf32>
    %90 = vector.extract_strided_slice %81 {offsets = [2, 0, 0], sizes = [1, 16, 16], strides = [1, 1, 1]} : vector<4x16x16xbf16> to vector<1x16x16xbf16>
    %91 = vector.shape_cast %90 : vector<1x16x16xbf16> to vector<16x16xbf16>
    %92 = vector.extract_strided_slice %50 {offsets = [0, 16], sizes = [16, 8], strides = [1, 1]} : vector<16x32xbf16> to vector<16x8xbf16>
    %cst_37 = arith.constant dense<0.000000e+00> : vector<16x8xf32>
    %93 = tpu.matmul %91, %92, %cst_37 {dimension_numbers = #tpu.dot_dimension_numbers<[1], [0], [0], [1], [0, 0, 1, 1], [], []>} : vector<16x16xbf16>, vector<16x8xbf16>, vector<16x8xf32> -> vector<16x8xf32>
    %94 = vector.extract_strided_slice %81 {offsets = [3, 0, 0], sizes = [1, 16, 16], strides = [1, 1, 1]} : vector<4x16x16xbf16> to vector<1x16x16xbf16>
    %95 = vector.shape_cast %94 : vector<1x16x16xbf16> to vector<16x16xbf16>
    %96 = vector.extract_strided_slice %50 {offsets = [0, 24], sizes = [16, 8], strides = [1, 1]} : vector<16x32xbf16> to vector<16x8xbf16>
    %cst_38 = arith.constant dense<0.000000e+00> : vector<16x8xf32>
    %97 = tpu.matmul %95, %96, %cst_38 {dimension_numbers = #tpu.dot_dimension_numbers<[1], [0], [0], [1], [0, 0, 1, 1], [], []>} : vector<16x16xbf16>, vector<16x8xbf16>, vector<16x8xf32> -> vector<16x8xf32>
    %98 = tpu.concatenate %85, %89, %93, %97 in 1 : vector<16x8xf32>, vector<16x8xf32>, vector<16x8xf32>, vector<16x8xf32> -> vector<16x32xf32>
    %99 = arith.truncf %98 : vector<16x32xf32> to vector<16x32xbf16>
    %cst_39 = arith.constant dense<0.000000e+00> : vector<16x32xf32>
    %100 = tpu.matmul %99, %46, %cst_39 {dimension_numbers = #tpu.dot_dimension_numbers<[1], [0], [0], [1], [0, 0, 1, 1], [], []>} : vector<16x32xbf16>, vector<32x32xbf16>, vector<16x32xf32> -> vector<16x32xf32>
    %101 = vector.broadcast %47 : vector<1x32xf32> to vector<16x32xf32>
    %102 = arith.addf %100, %101 : vector<16x32xf32>
    %103 = arith.addf %0, %102 : vector<16x32xf32>
    %104 = vector.extract_strided_slice %28 {offsets = [9, 0], sizes = [1, 32], strides = [1, 1]} : vector<17x32xf32> to vector<1x32xf32>
    %105 = vector.extract_strided_slice %28 {offsets = [10, 0], sizes = [1, 32], strides = [1, 1]} : vector<17x32xf32> to vector<1x32xf32>
    %cst_40 = arith.constant dense<0.000000e+00> : vector<16xf32>
    %106 = vector.multi_reduction <add>, %103, %cst_40 [1] : vector<16x32xf32> to vector<16xf32>
    %107 = vector.shape_cast %106 : vector<16xf32> to vector<16x1xf32>
    %cst_41 = arith.constant 3.200000e+01 : f32
    %108 = vector.broadcast %cst_41 : f32 to vector<16x1xf32>
    %109 = arith.divf %107, %108 : vector<16x1xf32>
    %110 = vector.broadcast %109 : vector<16x1xf32> to vector<16x32xf32>
    %111 = arith.subf %103, %110 : vector<16x32xf32>
    %112 = arith.mulf %111, %111 : vector<16x32xf32>
    %cst_42 = arith.constant dense<0.000000e+00> : vector<16xf32>
    %113 = vector.multi_reduction <add>, %112, %cst_42 [1] : vector<16x32xf32> to vector<16xf32>
    %114 = vector.shape_cast %113 : vector<16xf32> to vector<16x1xf32>
    %cst_43 = arith.constant 3.200000e+01 : f32
    %115 = vector.broadcast %cst_43 : f32 to vector<16x1xf32>
    %116 = arith.divf %114, %115 : vector<16x1xf32>
    %117 = vector.broadcast %109 : vector<16x1xf32> to vector<16x32xf32>
    %118 = arith.subf %103, %117 : vector<16x32xf32>
    %cst_44 = arith.constant 9.99999974E-6 : f32
    %119 = vector.broadcast %cst_44 : f32 to vector<16x1xf32>
    %120 = arith.addf %116, %119 : vector<16x1xf32>
    %121 = math.rsqrt %120 : vector<16x1xf32>
    %122 = vector.broadcast %121 : vector<16x1xf32> to vector<16x32xf32>
    %123 = arith.mulf %118, %122 : vector<16x32xf32>
    %124 = vector.broadcast %104 : vector<1x32xf32> to vector<16x32xf32>
    %125 = arith.mulf %123, %124 : vector<16x32xf32>
    %126 = vector.broadcast %105 : vector<1x32xf32> to vector<16x32xf32>
    %127 = arith.addf %125, %126 : vector<16x32xf32>
    %128 = arith.addf %127, %2 : vector<16x32xf32>
    %129 = arith.truncf %128 : vector<16x32xf32> to vector<16x32xbf16>
    %130 = vector.extract_strided_slice %26 {offsets = [64, 0], sizes = [32, 32], strides = [1, 1]} : vector<192x32xbf16> to vector<32x32xbf16>
    %cst_45 = arith.constant dense<0.000000e+00> : vector<16x32xf32>
    %131 = tpu.matmul %129, %130, %cst_45 {dimension_numbers = #tpu.dot_dimension_numbers<[1], [0], [0], [1], [0, 0, 1, 1], [], []>} : vector<16x32xbf16>, vector<32x32xbf16>, vector<16x32xf32> -> vector<16x32xf32>
    %132 = vector.extract_strided_slice %28 {offsets = [4, 0], sizes = [1, 32], strides = [1, 1]} : vector<17x32xf32> to vector<1x32xf32>
    %133 = vector.broadcast %132 : vector<1x32xf32> to vector<16x32xf32>
    %134 = arith.addf %131, %133 : vector<16x32xf32>
    %135 = vector.extract_strided_slice %26 {offsets = [96, 0], sizes = [32, 32], strides = [1, 1]} : vector<192x32xbf16> to vector<32x32xbf16>
    %cst_46 = arith.constant dense<0.000000e+00> : vector<32x32xf32>
    %136 = tpu.matmul %22, %135, %cst_46 {dimension_numbers = #tpu.dot_dimension_numbers<[1], [0], [0], [1], [0, 0, 1, 1], [], []>} : vector<32x32xbf16>, vector<32x32xbf16>, vector<32x32xf32> -> vector<32x32xf32>
    %137 = vector.extract_strided_slice %28 {offsets = [5, 0], sizes = [1, 32], strides = [1, 1]} : vector<17x32xf32> to vector<1x32xf32>
    %138 = vector.broadcast %137 : vector<1x32xf32> to vector<32x32xf32>
    %139 = arith.addf %136, %138 : vector<32x32xf32>
    %140 = vector.extract_strided_slice %26 {offsets = [128, 0], sizes = [32, 32], strides = [1, 1]} : vector<192x32xbf16> to vector<32x32xbf16>
    %cst_47 = arith.constant dense<0.000000e+00> : vector<32x32xf32>
    %141 = tpu.matmul %21, %140, %cst_47 {dimension_numbers = #tpu.dot_dimension_numbers<[1], [0], [0], [1], [0, 0, 1, 1], [], []>} : vector<32x32xbf16>, vector<32x32xbf16>, vector<32x32xf32> -> vector<32x32xf32>
    %142 = vector.extract_strided_slice %28 {offsets = [6, 0], sizes = [1, 32], strides = [1, 1]} : vector<17x32xf32> to vector<1x32xf32>
    %143 = vector.broadcast %142 : vector<1x32xf32> to vector<32x32xf32>
    %144 = arith.addf %141, %143 : vector<32x32xf32>
    %145 = vector.extract_strided_slice %26 {offsets = [160, 0], sizes = [32, 32], strides = [1, 1]} : vector<192x32xbf16> to vector<32x32xbf16>
    %146 = vector.extract_strided_slice %28 {offsets = [7, 0], sizes = [1, 32], strides = [1, 1]} : vector<17x32xf32> to vector<1x32xf32>
    %147 = arith.truncf %134 : vector<16x32xf32> to vector<16x32xbf16>
    %148 = arith.truncf %139 : vector<32x32xf32> to vector<32x32xbf16>
    %149 = arith.truncf %144 : vector<32x32xf32> to vector<32x32xbf16>
    %150 = vector.extract_strided_slice %147 {offsets = [0, 0], sizes = [16, 8], strides = [1, 1]} : vector<16x32xbf16> to vector<16x8xbf16>
    %151 = vector.extract_strided_slice %148 {offsets = [0, 0], sizes = [32, 8], strides = [1, 1]} : vector<32x32xbf16> to vector<32x8xbf16>
    %cst_48 = arith.constant dense<0.000000e+00> : vector<16x32xf32>
    %152 = tpu.matmul %150, %151, %cst_48 {dimension_numbers = #tpu.dot_dimension_numbers<[1], [1], [0], [0], [0, 0, 1, 0], [], []>} : vector<16x8xbf16>, vector<32x8xbf16>, vector<16x32xf32> -> vector<16x32xf32>
    %153 = vector.extract_strided_slice %147 {offsets = [0, 8], sizes = [16, 8], strides = [1, 1]} : vector<16x32xbf16> to vector<16x8xbf16>
    %154 = vector.extract_strided_slice %148 {offsets = [0, 8], sizes = [32, 8], strides = [1, 1]} : vector<32x32xbf16> to vector<32x8xbf16>
    %cst_49 = arith.constant dense<0.000000e+00> : vector<16x32xf32>
    %155 = tpu.matmul %153, %154, %cst_49 {dimension_numbers = #tpu.dot_dimension_numbers<[1], [1], [0], [0], [0, 0, 1, 0], [], []>} : vector<16x8xbf16>, vector<32x8xbf16>, vector<16x32xf32> -> vector<16x32xf32>
    %156 = vector.extract_strided_slice %147 {offsets = [0, 16], sizes = [16, 8], strides = [1, 1]} : vector<16x32xbf16> to vector<16x8xbf16>
    %157 = vector.extract_strided_slice %148 {offsets = [0, 16], sizes = [32, 8], strides = [1, 1]} : vector<32x32xbf16> to vector<32x8xbf16>
    %cst_50 = arith.constant dense<0.000000e+00> : vector<16x32xf32>
    %158 = tpu.matmul %156, %157, %cst_50 {dimension_numbers = #tpu.dot_dimension_numbers<[1], [1], [0], [0], [0, 0, 1, 0], [], []>} : vector<16x8xbf16>, vector<32x8xbf16>, vector<16x32xf32> -> vector<16x32xf32>
    %159 = vector.extract_strided_slice %147 {offsets = [0, 24], sizes = [16, 8], strides = [1, 1]} : vector<16x32xbf16> to vector<16x8xbf16>
    %160 = vector.extract_strided_slice %148 {offsets = [0, 24], sizes = [32, 8], strides = [1, 1]} : vector<32x32xbf16> to vector<32x8xbf16>
    %cst_51 = arith.constant dense<0.000000e+00> : vector<16x32xf32>
    %161 = tpu.matmul %159, %160, %cst_51 {dimension_numbers = #tpu.dot_dimension_numbers<[1], [1], [0], [0], [0, 0, 1, 0], [], []>} : vector<16x8xbf16>, vector<32x8xbf16>, vector<16x32xf32> -> vector<16x32xf32>
    %162 = vector.shape_cast %152 : vector<16x32xf32> to vector<1x16x32xf32>
    %163 = vector.shape_cast %155 : vector<16x32xf32> to vector<1x16x32xf32>
    %164 = vector.shape_cast %158 : vector<16x32xf32> to vector<1x16x32xf32>
    %165 = vector.shape_cast %161 : vector<16x32xf32> to vector<1x16x32xf32>
    %166 = tpu.concatenate %162, %163, %164, %165 in 0 : vector<1x16x32xf32>, vector<1x16x32xf32>, vector<1x16x32xf32>, vector<1x16x32xf32> -> vector<4x16x32xf32>
    %167 = vector.shape_cast %20 : vector<16x32xf32> to vector<1x16x32xf32>
    %168 = vector.broadcast %167 : vector<1x16x32xf32> to vector<4x16x32xf32>
    %169 = arith.addf %166, %168 : vector<4x16x32xf32>
    %cst_52 = arith.constant dense<0xFF800000> : vector<4x16xf32>
    %170 = vector.multi_reduction <maximumf>, %169, %cst_52 [2] : vector<4x16x32xf32> to vector<4x16xf32>
    %171 = vector.shape_cast %170 : vector<4x16xf32> to vector<4x16x1xf32>
    %172 = vector.broadcast %171 : vector<4x16x1xf32> to vector<4x16x32xf32>
    %173 = arith.subf %169, %172 : vector<4x16x32xf32>
    %174 = math.exp %173 : vector<4x16x32xf32>
    %cst_53 = arith.constant dense<0.000000e+00> : vector<4x16xf32>
    %175 = vector.multi_reduction <add>, %174, %cst_53 [2] : vector<4x16x32xf32> to vector<4x16xf32>
    %176 = vector.shape_cast %175 : vector<4x16xf32> to vector<4x16x1xf32>
    %177 = tpu.reciprocal %176 {approx = true} : vector<4x16x1xf32> -> vector<4x16x1xf32>
    %178 = vector.broadcast %177 : vector<4x16x1xf32> to vector<4x16x32xf32>
    %179 = arith.mulf %174, %178 : vector<4x16x32xf32>
    %180 = arith.truncf %179 : vector<4x16x32xf32> to vector<4x16x32xbf16>
    %181 = vector.extract_strided_slice %180 {offsets = [0, 0, 0], sizes = [1, 16, 32], strides = [1, 1, 1]} : vector<4x16x32xbf16> to vector<1x16x32xbf16>
    %182 = vector.shape_cast %181 : vector<1x16x32xbf16> to vector<16x32xbf16>
    %183 = vector.extract_strided_slice %149 {offsets = [0, 0], sizes = [32, 8], strides = [1, 1]} : vector<32x32xbf16> to vector<32x8xbf16>
    %cst_54 = arith.constant dense<0.000000e+00> : vector<16x8xf32>
    %184 = tpu.matmul %182, %183, %cst_54 {dimension_numbers = #tpu.dot_dimension_numbers<[1], [0], [0], [1], [0, 0, 1, 1], [], []>} : vector<16x32xbf16>, vector<32x8xbf16>, vector<16x8xf32> -> vector<16x8xf32>
    %185 = vector.extract_strided_slice %180 {offsets = [1, 0, 0], sizes = [1, 16, 32], strides = [1, 1, 1]} : vector<4x16x32xbf16> to vector<1x16x32xbf16>
    %186 = vector.shape_cast %185 : vector<1x16x32xbf16> to vector<16x32xbf16>
    %187 = vector.extract_strided_slice %149 {offsets = [0, 8], sizes = [32, 8], strides = [1, 1]} : vector<32x32xbf16> to vector<32x8xbf16>
    %cst_55 = arith.constant dense<0.000000e+00> : vector<16x8xf32>
    %188 = tpu.matmul %186, %187, %cst_55 {dimension_numbers = #tpu.dot_dimension_numbers<[1], [0], [0], [1], [0, 0, 1, 1], [], []>} : vector<16x32xbf16>, vector<32x8xbf16>, vector<16x8xf32> -> vector<16x8xf32>
    %189 = vector.extract_strided_slice %180 {offsets = [2, 0, 0], sizes = [1, 16, 32], strides = [1, 1, 1]} : vector<4x16x32xbf16> to vector<1x16x32xbf16>
    %190 = vector.shape_cast %189 : vector<1x16x32xbf16> to vector<16x32xbf16>
    %191 = vector.extract_strided_slice %149 {offsets = [0, 16], sizes = [32, 8], strides = [1, 1]} : vector<32x32xbf16> to vector<32x8xbf16>
    %cst_56 = arith.constant dense<0.000000e+00> : vector<16x8xf32>
    %192 = tpu.matmul %190, %191, %cst_56 {dimension_numbers = #tpu.dot_dimension_numbers<[1], [0], [0], [1], [0, 0, 1, 1], [], []>} : vector<16x32xbf16>, vector<32x8xbf16>, vector<16x8xf32> -> vector<16x8xf32>
    %193 = vector.extract_strided_slice %180 {offsets = [3, 0, 0], sizes = [1, 16, 32], strides = [1, 1, 1]} : vector<4x16x32xbf16> to vector<1x16x32xbf16>
    %194 = vector.shape_cast %193 : vector<1x16x32xbf16> to vector<16x32xbf16>
    %195 = vector.extract_strided_slice %149 {offsets = [0, 24], sizes = [32, 8], strides = [1, 1]} : vector<32x32xbf16> to vector<32x8xbf16>
    %cst_57 = arith.constant dense<0.000000e+00> : vector<16x8xf32>
    %196 = tpu.matmul %194, %195, %cst_57 {dimension_numbers = #tpu.dot_dimension_numbers<[1], [0], [0], [1], [0, 0, 1, 1], [], []>} : vector<16x32xbf16>, vector<32x8xbf16>, vector<16x8xf32> -> vector<16x8xf32>
    %197 = tpu.concatenate %184, %188, %192, %196 in 1 : vector<16x8xf32>, vector<16x8xf32>, vector<16x8xf32>, vector<16x8xf32> -> vector<16x32xf32>
    %198 = arith.truncf %197 : vector<16x32xf32> to vector<16x32xbf16>
    %cst_58 = arith.constant dense<0.000000e+00> : vector<16x32xf32>
    %199 = tpu.matmul %198, %145, %cst_58 {dimension_numbers = #tpu.dot_dimension_numbers<[1], [0], [0], [1], [0, 0, 1, 1], [], []>} : vector<16x32xbf16>, vector<32x32xbf16>, vector<16x32xf32> -> vector<16x32xf32>
    %200 = vector.broadcast %146 : vector<1x32xf32> to vector<16x32xf32>
    %201 = arith.addf %199, %200 : vector<16x32xf32>
    %202 = arith.addf %127, %201 : vector<16x32xf32>
    %203 = vector.extract_strided_slice %28 {offsets = [11, 0], sizes = [1, 32], strides = [1, 1]} : vector<17x32xf32> to vector<1x32xf32>
    %204 = vector.extract_strided_slice %28 {offsets = [12, 0], sizes = [1, 32], strides = [1, 1]} : vector<17x32xf32> to vector<1x32xf32>
    %cst_59 = arith.constant dense<0.000000e+00> : vector<16xf32>
    %205 = vector.multi_reduction <add>, %202, %cst_59 [1] : vector<16x32xf32> to vector<16xf32>
    %206 = vector.shape_cast %205 : vector<16xf32> to vector<16x1xf32>
    %cst_60 = arith.constant 3.200000e+01 : f32
    %207 = vector.broadcast %cst_60 : f32 to vector<16x1xf32>
    %208 = arith.divf %206, %207 : vector<16x1xf32>
    %209 = vector.broadcast %208 : vector<16x1xf32> to vector<16x32xf32>
    %210 = arith.subf %202, %209 : vector<16x32xf32>
    %211 = arith.mulf %210, %210 : vector<16x32xf32>
    %cst_61 = arith.constant dense<0.000000e+00> : vector<16xf32>
    %212 = vector.multi_reduction <add>, %211, %cst_61 [1] : vector<16x32xf32> to vector<16xf32>
    %213 = vector.shape_cast %212 : vector<16xf32> to vector<16x1xf32>
    %cst_62 = arith.constant 3.200000e+01 : f32
    %214 = vector.broadcast %cst_62 : f32 to vector<16x1xf32>
    %215 = arith.divf %213, %214 : vector<16x1xf32>
    %216 = vector.broadcast %208 : vector<16x1xf32> to vector<16x32xf32>
    %217 = arith.subf %202, %216 : vector<16x32xf32>
    %cst_63 = arith.constant 9.99999974E-6 : f32
    %218 = vector.broadcast %cst_63 : f32 to vector<16x1xf32>
    %219 = arith.addf %215, %218 : vector<16x1xf32>
    %220 = math.rsqrt %219 : vector<16x1xf32>
    %221 = vector.broadcast %220 : vector<16x1xf32> to vector<16x32xf32>
    %222 = arith.mulf %217, %221 : vector<16x32xf32>
    %223 = vector.broadcast %203 : vector<1x32xf32> to vector<16x32xf32>
    %224 = arith.mulf %222, %223 : vector<16x32xf32>
    %225 = vector.broadcast %204 : vector<1x32xf32> to vector<16x32xf32>
    %226 = arith.addf %224, %225 : vector<16x32xf32>
    %227 = arith.truncf %226 : vector<16x32xf32> to vector<16x32xbf16>
    %c0_64 = arith.constant 0 : index
    %c0_65 = arith.constant 0 : index
    %c0_66 = arith.constant 0 : index
    %228 = vector.load %arg9[%c0_64, %c0_65, %c0_66] : memref<2x32x64xbf16, #tpu.memory_space<vmem>>, vector<1x32x64xbf16>
    %229 = vector.shape_cast %228 : vector<1x32x64xbf16> to vector<32x64xbf16>
    %cst_67 = arith.constant dense<0.000000e+00> : vector<16x64xf32>
    %230 = tpu.matmul %227, %229, %cst_67 {dimension_numbers = #tpu.dot_dimension_numbers<[1], [0], [0], [1], [0, 0, 1, 1], [], []>} : vector<16x32xbf16>, vector<32x64xbf16>, vector<16x64xf32> -> vector<16x64xf32>
    %c0_68 = arith.constant 0 : index
    %c0_69 = arith.constant 0 : index
    %c0_70 = arith.constant 0 : index
    %231 = vector.load %arg11[%c0_68, %c0_69, %c0_70] : memref<2x1x64xf32, #tpu.memory_space<vmem>>, vector<1x1x64xf32>
    %232 = vector.shape_cast %231 : vector<1x1x64xf32> to vector<1x64xf32>
    %233 = vector.broadcast %232 : vector<1x64xf32> to vector<16x64xf32>
    %234 = arith.addf %230, %233 : vector<16x64xf32>
    %cst_71 = arith.constant 0.000000e+00 : f32
    %235 = vector.broadcast %cst_71 : f32 to vector<16x64xf32>
    %236 = arith.maximumf %234, %235 : vector<16x64xf32>
    %237 = arith.truncf %236 : vector<16x64xf32> to vector<16x64xbf16>
    %c0_72 = arith.constant 0 : index
    %c0_73 = arith.constant 0 : index
    %c0_74 = arith.constant 0 : index
    %238 = vector.load %arg10[%c0_72, %c0_73, %c0_74] : memref<2x64x32xbf16, #tpu.memory_space<vmem>>, vector<1x64x32xbf16>
    %239 = vector.shape_cast %238 : vector<1x64x32xbf16> to vector<64x32xbf16>
    %cst_75 = arith.constant dense<0.000000e+00> : vector<16x32xf32>
    %240 = tpu.matmul %237, %239, %cst_75 {dimension_numbers = #tpu.dot_dimension_numbers<[1], [0], [0], [1], [0, 0, 1, 1], [], []>} : vector<16x64xbf16>, vector<64x32xbf16>, vector<16x32xf32> -> vector<16x32xf32>
    %241 = vector.extract_strided_slice %28 {offsets = [8, 0], sizes = [1, 32], strides = [1, 1]} : vector<17x32xf32> to vector<1x32xf32>
    %242 = vector.broadcast %241 : vector<1x32xf32> to vector<16x32xf32>
    %243 = arith.addf %240, %242 : vector<16x32xf32>
    %244 = arith.addf %226, %243 : vector<16x32xf32>
    %245 = vector.extract_strided_slice %28 {offsets = [13, 0], sizes = [1, 32], strides = [1, 1]} : vector<17x32xf32> to vector<1x32xf32>
    %246 = vector.extract_strided_slice %28 {offsets = [14, 0], sizes = [1, 32], strides = [1, 1]} : vector<17x32xf32> to vector<1x32xf32>
    %cst_76 = arith.constant dense<0.000000e+00> : vector<16xf32>
    %247 = vector.multi_reduction <add>, %244, %cst_76 [1] : vector<16x32xf32> to vector<16xf32>
    %248 = vector.shape_cast %247 : vector<16xf32> to vector<16x1xf32>
    %cst_77 = arith.constant 3.200000e+01 : f32
    %249 = vector.broadcast %cst_77 : f32 to vector<16x1xf32>
    %250 = arith.divf %248, %249 : vector<16x1xf32>
    %251 = vector.broadcast %250 : vector<16x1xf32> to vector<16x32xf32>
    %252 = arith.subf %244, %251 : vector<16x32xf32>
    %253 = arith.mulf %252, %252 : vector<16x32xf32>
    %cst_78 = arith.constant dense<0.000000e+00> : vector<16xf32>
    %254 = vector.multi_reduction <add>, %253, %cst_78 [1] : vector<16x32xf32> to vector<16xf32>
    %255 = vector.shape_cast %254 : vector<16xf32> to vector<16x1xf32>
    %cst_79 = arith.constant 3.200000e+01 : f32
    %256 = vector.broadcast %cst_79 : f32 to vector<16x1xf32>
    %257 = arith.divf %255, %256 : vector<16x1xf32>
    %258 = vector.broadcast %250 : vector<16x1xf32> to vector<16x32xf32>
    %259 = arith.subf %244, %258 : vector<16x32xf32>
    %cst_80 = arith.constant 9.99999974E-6 : f32
    %260 = vector.broadcast %cst_80 : f32 to vector<16x1xf32>
    %261 = arith.addf %257, %260 : vector<16x1xf32>
    %262 = math.rsqrt %261 : vector<16x1xf32>
    %263 = vector.broadcast %262 : vector<16x1xf32> to vector<16x32xf32>
    %264 = arith.mulf %259, %263 : vector<16x32xf32>
    %265 = vector.broadcast %245 : vector<1x32xf32> to vector<16x32xf32>
    %266 = arith.mulf %264, %265 : vector<16x32xf32>
    %267 = vector.broadcast %246 : vector<1x32xf32> to vector<16x32xf32>
    %268 = arith.addf %266, %267 : vector<16x32xf32>
    %c1 = arith.constant 1 : index
    %c0_81 = arith.constant 0 : index
    %c0_82 = arith.constant 0 : index
    %269 = vector.load %arg7[%c1, %c0_81, %c0_82] : memref<2x32x64xbf16, #tpu.memory_space<vmem>>, vector<1x32x64xbf16>
    %270 = vector.shape_cast %269 : vector<1x32x64xbf16> to vector<32x64xbf16>
    %c1_83 = arith.constant 1 : index
    %c0_84 = arith.constant 0 : index
    %c0_85 = arith.constant 0 : index
    %271 = vector.load %arg8[%c1_83, %c0_84, %c0_85] : memref<2x192x32xbf16, #tpu.memory_space<vmem>>, vector<1x192x32xbf16>
    %272 = vector.shape_cast %271 : vector<1x192x32xbf16> to vector<192x32xbf16>
    %c1_86 = arith.constant 1 : index
    %c0_87 = arith.constant 0 : index
    %c0_88 = arith.constant 0 : index
    %273 = vector.load %arg12[%c1_86, %c0_87, %c0_88] : memref<2x17x32xf32, #tpu.memory_space<vmem>>, vector<1x17x32xf32>
    %274 = vector.shape_cast %273 : vector<1x17x32xf32> to vector<17x32xf32>
    %275 = arith.addf %268, %2 : vector<16x32xf32>
    %276 = arith.truncf %275 : vector<16x32xf32> to vector<16x32xbf16>
    %cst_89 = arith.constant dense<0.000000e+00> : vector<16x64xf32>
    %277 = tpu.matmul %276, %270, %cst_89 {dimension_numbers = #tpu.dot_dimension_numbers<[1], [0], [0], [1], [0, 0, 1, 1], [], []>} : vector<16x32xbf16>, vector<32x64xbf16>, vector<16x64xf32> -> vector<16x64xf32>
    %278 = vector.extract_strided_slice %277 {offsets = [0, 0], sizes = [16, 32], strides = [1, 1]} : vector<16x64xf32> to vector<16x32xf32>
    %279 = vector.extract_strided_slice %274 {offsets = [0, 0], sizes = [1, 32], strides = [1, 1]} : vector<17x32xf32> to vector<1x32xf32>
    %280 = vector.broadcast %279 : vector<1x32xf32> to vector<16x32xf32>
    %281 = arith.addf %278, %280 : vector<16x32xf32>
    %282 = vector.extract_strided_slice %277 {offsets = [0, 32], sizes = [16, 32], strides = [1, 1]} : vector<16x64xf32> to vector<16x32xf32>
    %283 = vector.extract_strided_slice %274 {offsets = [1, 0], sizes = [1, 32], strides = [1, 1]} : vector<17x32xf32> to vector<1x32xf32>
    %284 = vector.broadcast %283 : vector<1x32xf32> to vector<16x32xf32>
    %285 = arith.addf %282, %284 : vector<16x32xf32>
    %286 = arith.truncf %268 : vector<16x32xf32> to vector<16x32xbf16>
    %287 = vector.extract_strided_slice %272 {offsets = [0, 0], sizes = [32, 32], strides = [1, 1]} : vector<192x32xbf16> to vector<32x32xbf16>
    %cst_90 = arith.constant dense<0.000000e+00> : vector<16x32xf32>
    %288 = tpu.matmul %286, %287, %cst_90 {dimension_numbers = #tpu.dot_dimension_numbers<[1], [0], [0], [1], [0, 0, 1, 1], [], []>} : vector<16x32xbf16>, vector<32x32xbf16>, vector<16x32xf32> -> vector<16x32xf32>
    %289 = vector.extract_strided_slice %274 {offsets = [2, 0], sizes = [1, 32], strides = [1, 1]} : vector<17x32xf32> to vector<1x32xf32>
    %290 = vector.broadcast %289 : vector<1x32xf32> to vector<16x32xf32>
    %291 = arith.addf %288, %290 : vector<16x32xf32>
    %292 = vector.extract_strided_slice %272 {offsets = [32, 0], sizes = [32, 32], strides = [1, 1]} : vector<192x32xbf16> to vector<32x32xbf16>
    %293 = vector.extract_strided_slice %274 {offsets = [3, 0], sizes = [1, 32], strides = [1, 1]} : vector<17x32xf32> to vector<1x32xf32>
    %294 = arith.truncf %281 : vector<16x32xf32> to vector<16x32xbf16>
    %295 = arith.truncf %285 : vector<16x32xf32> to vector<16x32xbf16>
    %296 = arith.truncf %291 : vector<16x32xf32> to vector<16x32xbf16>
    %297 = vector.extract_strided_slice %294 {offsets = [0, 0], sizes = [16, 8], strides = [1, 1]} : vector<16x32xbf16> to vector<16x8xbf16>
    %298 = vector.extract_strided_slice %295 {offsets = [0, 0], sizes = [16, 8], strides = [1, 1]} : vector<16x32xbf16> to vector<16x8xbf16>
    %cst_91 = arith.constant dense<0.000000e+00> : vector<16x16xf32>
    %299 = tpu.matmul %297, %298, %cst_91 {dimension_numbers = #tpu.dot_dimension_numbers<[1], [1], [0], [0], [0, 0, 1, 0], [], []>} : vector<16x8xbf16>, vector<16x8xbf16>, vector<16x16xf32> -> vector<16x16xf32>
    %300 = vector.extract_strided_slice %294 {offsets = [0, 8], sizes = [16, 8], strides = [1, 1]} : vector<16x32xbf16> to vector<16x8xbf16>
    %301 = vector.extract_strided_slice %295 {offsets = [0, 8], sizes = [16, 8], strides = [1, 1]} : vector<16x32xbf16> to vector<16x8xbf16>
    %cst_92 = arith.constant dense<0.000000e+00> : vector<16x16xf32>
    %302 = tpu.matmul %300, %301, %cst_92 {dimension_numbers = #tpu.dot_dimension_numbers<[1], [1], [0], [0], [0, 0, 1, 0], [], []>} : vector<16x8xbf16>, vector<16x8xbf16>, vector<16x16xf32> -> vector<16x16xf32>
    %303 = vector.extract_strided_slice %294 {offsets = [0, 16], sizes = [16, 8], strides = [1, 1]} : vector<16x32xbf16> to vector<16x8xbf16>
    %304 = vector.extract_strided_slice %295 {offsets = [0, 16], sizes = [16, 8], strides = [1, 1]} : vector<16x32xbf16> to vector<16x8xbf16>
    %cst_93 = arith.constant dense<0.000000e+00> : vector<16x16xf32>
    %305 = tpu.matmul %303, %304, %cst_93 {dimension_numbers = #tpu.dot_dimension_numbers<[1], [1], [0], [0], [0, 0, 1, 0], [], []>} : vector<16x8xbf16>, vector<16x8xbf16>, vector<16x16xf32> -> vector<16x16xf32>
    %306 = vector.extract_strided_slice %294 {offsets = [0, 24], sizes = [16, 8], strides = [1, 1]} : vector<16x32xbf16> to vector<16x8xbf16>
    %307 = vector.extract_strided_slice %295 {offsets = [0, 24], sizes = [16, 8], strides = [1, 1]} : vector<16x32xbf16> to vector<16x8xbf16>
    %cst_94 = arith.constant dense<0.000000e+00> : vector<16x16xf32>
    %308 = tpu.matmul %306, %307, %cst_94 {dimension_numbers = #tpu.dot_dimension_numbers<[1], [1], [0], [0], [0, 0, 1, 0], [], []>} : vector<16x8xbf16>, vector<16x8xbf16>, vector<16x16xf32> -> vector<16x16xf32>
    %309 = vector.shape_cast %299 : vector<16x16xf32> to vector<1x16x16xf32>
    %310 = vector.shape_cast %302 : vector<16x16xf32> to vector<1x16x16xf32>
    %311 = vector.shape_cast %305 : vector<16x16xf32> to vector<1x16x16xf32>
    %312 = vector.shape_cast %308 : vector<16x16xf32> to vector<1x16x16xf32>
    %313 = tpu.concatenate %309, %310, %311, %312 in 0 : vector<1x16x16xf32>, vector<1x16x16xf32>, vector<1x16x16xf32>, vector<1x16x16xf32> -> vector<4x16x16xf32>
    %314 = vector.shape_cast %12 : vector<16x16xf32> to vector<1x16x16xf32>
    %315 = vector.broadcast %314 : vector<1x16x16xf32> to vector<4x16x16xf32>
    %316 = arith.addf %313, %315 : vector<4x16x16xf32>
    %cst_95 = arith.constant dense<0xFF800000> : vector<4x16xf32>
    %317 = vector.multi_reduction <maximumf>, %316, %cst_95 [2] : vector<4x16x16xf32> to vector<4x16xf32>
    %318 = vector.shape_cast %317 : vector<4x16xf32> to vector<4x16x1xf32>
    %319 = vector.broadcast %318 : vector<4x16x1xf32> to vector<4x16x16xf32>
    %320 = arith.subf %316, %319 : vector<4x16x16xf32>
    %321 = math.exp %320 : vector<4x16x16xf32>
    %cst_96 = arith.constant dense<0.000000e+00> : vector<4x16xf32>
    %322 = vector.multi_reduction <add>, %321, %cst_96 [2] : vector<4x16x16xf32> to vector<4x16xf32>
    %323 = vector.shape_cast %322 : vector<4x16xf32> to vector<4x16x1xf32>
    %324 = tpu.reciprocal %323 {approx = true} : vector<4x16x1xf32> -> vector<4x16x1xf32>
    %325 = vector.broadcast %324 : vector<4x16x1xf32> to vector<4x16x16xf32>
    %326 = arith.mulf %321, %325 : vector<4x16x16xf32>
    %327 = arith.truncf %326 : vector<4x16x16xf32> to vector<4x16x16xbf16>
    %328 = vector.extract_strided_slice %327 {offsets = [0, 0, 0], sizes = [1, 16, 16], strides = [1, 1, 1]} : vector<4x16x16xbf16> to vector<1x16x16xbf16>
    %329 = vector.shape_cast %328 : vector<1x16x16xbf16> to vector<16x16xbf16>
    %330 = vector.extract_strided_slice %296 {offsets = [0, 0], sizes = [16, 8], strides = [1, 1]} : vector<16x32xbf16> to vector<16x8xbf16>
    %cst_97 = arith.constant dense<0.000000e+00> : vector<16x8xf32>
    %331 = tpu.matmul %329, %330, %cst_97 {dimension_numbers = #tpu.dot_dimension_numbers<[1], [0], [0], [1], [0, 0, 1, 1], [], []>} : vector<16x16xbf16>, vector<16x8xbf16>, vector<16x8xf32> -> vector<16x8xf32>
    %332 = vector.extract_strided_slice %327 {offsets = [1, 0, 0], sizes = [1, 16, 16], strides = [1, 1, 1]} : vector<4x16x16xbf16> to vector<1x16x16xbf16>
    %333 = vector.shape_cast %332 : vector<1x16x16xbf16> to vector<16x16xbf16>
    %334 = vector.extract_strided_slice %296 {offsets = [0, 8], sizes = [16, 8], strides = [1, 1]} : vector<16x32xbf16> to vector<16x8xbf16>
    %cst_98 = arith.constant dense<0.000000e+00> : vector<16x8xf32>
    %335 = tpu.matmul %333, %334, %cst_98 {dimension_numbers = #tpu.dot_dimension_numbers<[1], [0], [0], [1], [0, 0, 1, 1], [], []>} : vector<16x16xbf16>, vector<16x8xbf16>, vector<16x8xf32> -> vector<16x8xf32>
    %336 = vector.extract_strided_slice %327 {offsets = [2, 0, 0], sizes = [1, 16, 16], strides = [1, 1, 1]} : vector<4x16x16xbf16> to vector<1x16x16xbf16>
    %337 = vector.shape_cast %336 : vector<1x16x16xbf16> to vector<16x16xbf16>
    %338 = vector.extract_strided_slice %296 {offsets = [0, 16], sizes = [16, 8], strides = [1, 1]} : vector<16x32xbf16> to vector<16x8xbf16>
    %cst_99 = arith.constant dense<0.000000e+00> : vector<16x8xf32>
    %339 = tpu.matmul %337, %338, %cst_99 {dimension_numbers = #tpu.dot_dimension_numbers<[1], [0], [0], [1], [0, 0, 1, 1], [], []>} : vector<16x16xbf16>, vector<16x8xbf16>, vector<16x8xf32> -> vector<16x8xf32>
    %340 = vector.extract_strided_slice %327 {offsets = [3, 0, 0], sizes = [1, 16, 16], strides = [1, 1, 1]} : vector<4x16x16xbf16> to vector<1x16x16xbf16>
    %341 = vector.shape_cast %340 : vector<1x16x16xbf16> to vector<16x16xbf16>
    %342 = vector.extract_strided_slice %296 {offsets = [0, 24], sizes = [16, 8], strides = [1, 1]} : vector<16x32xbf16> to vector<16x8xbf16>
    %cst_100 = arith.constant dense<0.000000e+00> : vector<16x8xf32>
    %343 = tpu.matmul %341, %342, %cst_100 {dimension_numbers = #tpu.dot_dimension_numbers<[1], [0], [0], [1], [0, 0, 1, 1], [], []>} : vector<16x16xbf16>, vector<16x8xbf16>, vector<16x8xf32> -> vector<16x8xf32>
    %344 = tpu.concatenate %331, %335, %339, %343 in 1 : vector<16x8xf32>, vector<16x8xf32>, vector<16x8xf32>, vector<16x8xf32> -> vector<16x32xf32>
    %345 = arith.truncf %344 : vector<16x32xf32> to vector<16x32xbf16>
    %cst_101 = arith.constant dense<0.000000e+00> : vector<16x32xf32>
    %346 = tpu.matmul %345, %292, %cst_101 {dimension_numbers = #tpu.dot_dimension_numbers<[1], [0], [0], [1], [0, 0, 1, 1], [], []>} : vector<16x32xbf16>, vector<32x32xbf16>, vector<16x32xf32> -> vector<16x32xf32>
    %347 = vector.broadcast %293 : vector<1x32xf32> to vector<16x32xf32>
    %348 = arith.addf %346, %347 : vector<16x32xf32>
    %349 = arith.addf %268, %348 : vector<16x32xf32>
    %350 = vector.extract_strided_slice %274 {offsets = [9, 0], sizes = [1, 32], strides = [1, 1]} : vector<17x32xf32> to vector<1x32xf32>
    %351 = vector.extract_strided_slice %274 {offsets = [10, 0], sizes = [1, 32], strides = [1, 1]} : vector<17x32xf32> to vector<1x32xf32>
    %cst_102 = arith.constant dense<0.000000e+00> : vector<16xf32>
    %352 = vector.multi_reduction <add>, %349, %cst_102 [1] : vector<16x32xf32> to vector<16xf32>
    %353 = vector.shape_cast %352 : vector<16xf32> to vector<16x1xf32>
    %cst_103 = arith.constant 3.200000e+01 : f32
    %354 = vector.broadcast %cst_103 : f32 to vector<16x1xf32>
    %355 = arith.divf %353, %354 : vector<16x1xf32>
    %356 = vector.broadcast %355 : vector<16x1xf32> to vector<16x32xf32>
    %357 = arith.subf %349, %356 : vector<16x32xf32>
    %358 = arith.mulf %357, %357 : vector<16x32xf32>
    %cst_104 = arith.constant dense<0.000000e+00> : vector<16xf32>
    %359 = vector.multi_reduction <add>, %358, %cst_104 [1] : vector<16x32xf32> to vector<16xf32>
    %360 = vector.shape_cast %359 : vector<16xf32> to vector<16x1xf32>
    %cst_105 = arith.constant 3.200000e+01 : f32
    %361 = vector.broadcast %cst_105 : f32 to vector<16x1xf32>
    %362 = arith.divf %360, %361 : vector<16x1xf32>
    %363 = vector.broadcast %355 : vector<16x1xf32> to vector<16x32xf32>
    %364 = arith.subf %349, %363 : vector<16x32xf32>
    %cst_106 = arith.constant 9.99999974E-6 : f32
    %365 = vector.broadcast %cst_106 : f32 to vector<16x1xf32>
    %366 = arith.addf %362, %365 : vector<16x1xf32>
    %367 = math.rsqrt %366 : vector<16x1xf32>
    %368 = vector.broadcast %367 : vector<16x1xf32> to vector<16x32xf32>
    %369 = arith.mulf %364, %368 : vector<16x32xf32>
    %370 = vector.broadcast %350 : vector<1x32xf32> to vector<16x32xf32>
    %371 = arith.mulf %369, %370 : vector<16x32xf32>
    %372 = vector.broadcast %351 : vector<1x32xf32> to vector<16x32xf32>
    %373 = arith.addf %371, %372 : vector<16x32xf32>
    %374 = arith.addf %373, %2 : vector<16x32xf32>
    %375 = arith.truncf %374 : vector<16x32xf32> to vector<16x32xbf16>
    %376 = vector.extract_strided_slice %272 {offsets = [64, 0], sizes = [32, 32], strides = [1, 1]} : vector<192x32xbf16> to vector<32x32xbf16>
    %cst_107 = arith.constant dense<0.000000e+00> : vector<16x32xf32>
    %377 = tpu.matmul %375, %376, %cst_107 {dimension_numbers = #tpu.dot_dimension_numbers<[1], [0], [0], [1], [0, 0, 1, 1], [], []>} : vector<16x32xbf16>, vector<32x32xbf16>, vector<16x32xf32> -> vector<16x32xf32>
    %378 = vector.extract_strided_slice %274 {offsets = [4, 0], sizes = [1, 32], strides = [1, 1]} : vector<17x32xf32> to vector<1x32xf32>
    %379 = vector.broadcast %378 : vector<1x32xf32> to vector<16x32xf32>
    %380 = arith.addf %377, %379 : vector<16x32xf32>
    %381 = vector.extract_strided_slice %272 {offsets = [96, 0], sizes = [32, 32], strides = [1, 1]} : vector<192x32xbf16> to vector<32x32xbf16>
    %cst_108 = arith.constant dense<0.000000e+00> : vector<32x32xf32>
    %382 = tpu.matmul %22, %381, %cst_108 {dimension_numbers = #tpu.dot_dimension_numbers<[1], [0], [0], [1], [0, 0, 1, 1], [], []>} : vector<32x32xbf16>, vector<32x32xbf16>, vector<32x32xf32> -> vector<32x32xf32>
    %383 = vector.extract_strided_slice %274 {offsets = [5, 0], sizes = [1, 32], strides = [1, 1]} : vector<17x32xf32> to vector<1x32xf32>
    %384 = vector.broadcast %383 : vector<1x32xf32> to vector<32x32xf32>
    %385 = arith.addf %382, %384 : vector<32x32xf32>
    %386 = vector.extract_strided_slice %272 {offsets = [128, 0], sizes = [32, 32], strides = [1, 1]} : vector<192x32xbf16> to vector<32x32xbf16>
    %cst_109 = arith.constant dense<0.000000e+00> : vector<32x32xf32>
    %387 = tpu.matmul %21, %386, %cst_109 {dimension_numbers = #tpu.dot_dimension_numbers<[1], [0], [0], [1], [0, 0, 1, 1], [], []>} : vector<32x32xbf16>, vector<32x32xbf16>, vector<32x32xf32> -> vector<32x32xf32>
    %388 = vector.extract_strided_slice %274 {offsets = [6, 0], sizes = [1, 32], strides = [1, 1]} : vector<17x32xf32> to vector<1x32xf32>
    %389 = vector.broadcast %388 : vector<1x32xf32> to vector<32x32xf32>
    %390 = arith.addf %387, %389 : vector<32x32xf32>
    %391 = vector.extract_strided_slice %272 {offsets = [160, 0], sizes = [32, 32], strides = [1, 1]} : vector<192x32xbf16> to vector<32x32xbf16>
    %392 = vector.extract_strided_slice %274 {offsets = [7, 0], sizes = [1, 32], strides = [1, 1]} : vector<17x32xf32> to vector<1x32xf32>
    %393 = arith.truncf %380 : vector<16x32xf32> to vector<16x32xbf16>
    %394 = arith.truncf %385 : vector<32x32xf32> to vector<32x32xbf16>
    %395 = arith.truncf %390 : vector<32x32xf32> to vector<32x32xbf16>
    %396 = vector.extract_strided_slice %393 {offsets = [0, 0], sizes = [16, 8], strides = [1, 1]} : vector<16x32xbf16> to vector<16x8xbf16>
    %397 = vector.extract_strided_slice %394 {offsets = [0, 0], sizes = [32, 8], strides = [1, 1]} : vector<32x32xbf16> to vector<32x8xbf16>
    %cst_110 = arith.constant dense<0.000000e+00> : vector<16x32xf32>
    %398 = tpu.matmul %396, %397, %cst_110 {dimension_numbers = #tpu.dot_dimension_numbers<[1], [1], [0], [0], [0, 0, 1, 0], [], []>} : vector<16x8xbf16>, vector<32x8xbf16>, vector<16x32xf32> -> vector<16x32xf32>
    %399 = vector.extract_strided_slice %393 {offsets = [0, 8], sizes = [16, 8], strides = [1, 1]} : vector<16x32xbf16> to vector<16x8xbf16>
    %400 = vector.extract_strided_slice %394 {offsets = [0, 8], sizes = [32, 8], strides = [1, 1]} : vector<32x32xbf16> to vector<32x8xbf16>
    %cst_111 = arith.constant dense<0.000000e+00> : vector<16x32xf32>
    %401 = tpu.matmul %399, %400, %cst_111 {dimension_numbers = #tpu.dot_dimension_numbers<[1], [1], [0], [0], [0, 0, 1, 0], [], []>} : vector<16x8xbf16>, vector<32x8xbf16>, vector<16x32xf32> -> vector<16x32xf32>
    %402 = vector.extract_strided_slice %393 {offsets = [0, 16], sizes = [16, 8], strides = [1, 1]} : vector<16x32xbf16> to vector<16x8xbf16>
    %403 = vector.extract_strided_slice %394 {offsets = [0, 16], sizes = [32, 8], strides = [1, 1]} : vector<32x32xbf16> to vector<32x8xbf16>
    %cst_112 = arith.constant dense<0.000000e+00> : vector<16x32xf32>
    %404 = tpu.matmul %402, %403, %cst_112 {dimension_numbers = #tpu.dot_dimension_numbers<[1], [1], [0], [0], [0, 0, 1, 0], [], []>} : vector<16x8xbf16>, vector<32x8xbf16>, vector<16x32xf32> -> vector<16x32xf32>
    %405 = vector.extract_strided_slice %393 {offsets = [0, 24], sizes = [16, 8], strides = [1, 1]} : vector<16x32xbf16> to vector<16x8xbf16>
    %406 = vector.extract_strided_slice %394 {offsets = [0, 24], sizes = [32, 8], strides = [1, 1]} : vector<32x32xbf16> to vector<32x8xbf16>
    %cst_113 = arith.constant dense<0.000000e+00> : vector<16x32xf32>
    %407 = tpu.matmul %405, %406, %cst_113 {dimension_numbers = #tpu.dot_dimension_numbers<[1], [1], [0], [0], [0, 0, 1, 0], [], []>} : vector<16x8xbf16>, vector<32x8xbf16>, vector<16x32xf32> -> vector<16x32xf32>
    %408 = vector.shape_cast %398 : vector<16x32xf32> to vector<1x16x32xf32>
    %409 = vector.shape_cast %401 : vector<16x32xf32> to vector<1x16x32xf32>
    %410 = vector.shape_cast %404 : vector<16x32xf32> to vector<1x16x32xf32>
    %411 = vector.shape_cast %407 : vector<16x32xf32> to vector<1x16x32xf32>
    %412 = tpu.concatenate %408, %409, %410, %411 in 0 : vector<1x16x32xf32>, vector<1x16x32xf32>, vector<1x16x32xf32>, vector<1x16x32xf32> -> vector<4x16x32xf32>
    %413 = vector.shape_cast %20 : vector<16x32xf32> to vector<1x16x32xf32>
    %414 = vector.broadcast %413 : vector<1x16x32xf32> to vector<4x16x32xf32>
    %415 = arith.addf %412, %414 : vector<4x16x32xf32>
    %cst_114 = arith.constant dense<0xFF800000> : vector<4x16xf32>
    %416 = vector.multi_reduction <maximumf>, %415, %cst_114 [2] : vector<4x16x32xf32> to vector<4x16xf32>
    %417 = vector.shape_cast %416 : vector<4x16xf32> to vector<4x16x1xf32>
    %418 = vector.broadcast %417 : vector<4x16x1xf32> to vector<4x16x32xf32>
    %419 = arith.subf %415, %418 : vector<4x16x32xf32>
    %420 = math.exp %419 : vector<4x16x32xf32>
    %cst_115 = arith.constant dense<0.000000e+00> : vector<4x16xf32>
    %421 = vector.multi_reduction <add>, %420, %cst_115 [2] : vector<4x16x32xf32> to vector<4x16xf32>
    %422 = vector.shape_cast %421 : vector<4x16xf32> to vector<4x16x1xf32>
    %423 = tpu.reciprocal %422 {approx = true} : vector<4x16x1xf32> -> vector<4x16x1xf32>
    %424 = vector.broadcast %423 : vector<4x16x1xf32> to vector<4x16x32xf32>
    %425 = arith.mulf %420, %424 : vector<4x16x32xf32>
    %426 = arith.truncf %425 : vector<4x16x32xf32> to vector<4x16x32xbf16>
    %427 = vector.extract_strided_slice %426 {offsets = [0, 0, 0], sizes = [1, 16, 32], strides = [1, 1, 1]} : vector<4x16x32xbf16> to vector<1x16x32xbf16>
    %428 = vector.shape_cast %427 : vector<1x16x32xbf16> to vector<16x32xbf16>
    %429 = vector.extract_strided_slice %395 {offsets = [0, 0], sizes = [32, 8], strides = [1, 1]} : vector<32x32xbf16> to vector<32x8xbf16>
    %cst_116 = arith.constant dense<0.000000e+00> : vector<16x8xf32>
    %430 = tpu.matmul %428, %429, %cst_116 {dimension_numbers = #tpu.dot_dimension_numbers<[1], [0], [0], [1], [0, 0, 1, 1], [], []>} : vector<16x32xbf16>, vector<32x8xbf16>, vector<16x8xf32> -> vector<16x8xf32>
    %431 = vector.extract_strided_slice %426 {offsets = [1, 0, 0], sizes = [1, 16, 32], strides = [1, 1, 1]} : vector<4x16x32xbf16> to vector<1x16x32xbf16>
    %432 = vector.shape_cast %431 : vector<1x16x32xbf16> to vector<16x32xbf16>
    %433 = vector.extract_strided_slice %395 {offsets = [0, 8], sizes = [32, 8], strides = [1, 1]} : vector<32x32xbf16> to vector<32x8xbf16>
    %cst_117 = arith.constant dense<0.000000e+00> : vector<16x8xf32>
    %434 = tpu.matmul %432, %433, %cst_117 {dimension_numbers = #tpu.dot_dimension_numbers<[1], [0], [0], [1], [0, 0, 1, 1], [], []>} : vector<16x32xbf16>, vector<32x8xbf16>, vector<16x8xf32> -> vector<16x8xf32>
    %435 = vector.extract_strided_slice %426 {offsets = [2, 0, 0], sizes = [1, 16, 32], strides = [1, 1, 1]} : vector<4x16x32xbf16> to vector<1x16x32xbf16>
    %436 = vector.shape_cast %435 : vector<1x16x32xbf16> to vector<16x32xbf16>
    %437 = vector.extract_strided_slice %395 {offsets = [0, 16], sizes = [32, 8], strides = [1, 1]} : vector<32x32xbf16> to vector<32x8xbf16>
    %cst_118 = arith.constant dense<0.000000e+00> : vector<16x8xf32>
    %438 = tpu.matmul %436, %437, %cst_118 {dimension_numbers = #tpu.dot_dimension_numbers<[1], [0], [0], [1], [0, 0, 1, 1], [], []>} : vector<16x32xbf16>, vector<32x8xbf16>, vector<16x8xf32> -> vector<16x8xf32>
    %439 = vector.extract_strided_slice %426 {offsets = [3, 0, 0], sizes = [1, 16, 32], strides = [1, 1, 1]} : vector<4x16x32xbf16> to vector<1x16x32xbf16>
    %440 = vector.shape_cast %439 : vector<1x16x32xbf16> to vector<16x32xbf16>
    %441 = vector.extract_strided_slice %395 {offsets = [0, 24], sizes = [32, 8], strides = [1, 1]} : vector<32x32xbf16> to vector<32x8xbf16>
    %cst_119 = arith.constant dense<0.000000e+00> : vector<16x8xf32>
    %442 = tpu.matmul %440, %441, %cst_119 {dimension_numbers = #tpu.dot_dimension_numbers<[1], [0], [0], [1], [0, 0, 1, 1], [], []>} : vector<16x32xbf16>, vector<32x8xbf16>, vector<16x8xf32> -> vector<16x8xf32>
    %443 = tpu.concatenate %430, %434, %438, %442 in 1 : vector<16x8xf32>, vector<16x8xf32>, vector<16x8xf32>, vector<16x8xf32> -> vector<16x32xf32>
    %444 = arith.truncf %443 : vector<16x32xf32> to vector<16x32xbf16>
    %cst_120 = arith.constant dense<0.000000e+00> : vector<16x32xf32>
    %445 = tpu.matmul %444, %391, %cst_120 {dimension_numbers = #tpu.dot_dimension_numbers<[1], [0], [0], [1], [0, 0, 1, 1], [], []>} : vector<16x32xbf16>, vector<32x32xbf16>, vector<16x32xf32> -> vector<16x32xf32>
    %446 = vector.broadcast %392 : vector<1x32xf32> to vector<16x32xf32>
    %447 = arith.addf %445, %446 : vector<16x32xf32>
    %448 = arith.addf %373, %447 : vector<16x32xf32>
    %449 = vector.extract_strided_slice %274 {offsets = [11, 0], sizes = [1, 32], strides = [1, 1]} : vector<17x32xf32> to vector<1x32xf32>
    %450 = vector.extract_strided_slice %274 {offsets = [12, 0], sizes = [1, 32], strides = [1, 1]} : vector<17x32xf32> to vector<1x32xf32>
    %cst_121 = arith.constant dense<0.000000e+00> : vector<16xf32>
    %451 = vector.multi_reduction <add>, %448, %cst_121 [1] : vector<16x32xf32> to vector<16xf32>
    %452 = vector.shape_cast %451 : vector<16xf32> to vector<16x1xf32>
    %cst_122 = arith.constant 3.200000e+01 : f32
    %453 = vector.broadcast %cst_122 : f32 to vector<16x1xf32>
    %454 = arith.divf %452, %453 : vector<16x1xf32>
    %455 = vector.broadcast %454 : vector<16x1xf32> to vector<16x32xf32>
    %456 = arith.subf %448, %455 : vector<16x32xf32>
    %457 = arith.mulf %456, %456 : vector<16x32xf32>
    %cst_123 = arith.constant dense<0.000000e+00> : vector<16xf32>
    %458 = vector.multi_reduction <add>, %457, %cst_123 [1] : vector<16x32xf32> to vector<16xf32>
    %459 = vector.shape_cast %458 : vector<16xf32> to vector<16x1xf32>
    %cst_124 = arith.constant 3.200000e+01 : f32
    %460 = vector.broadcast %cst_124 : f32 to vector<16x1xf32>
    %461 = arith.divf %459, %460 : vector<16x1xf32>
    %462 = vector.broadcast %454 : vector<16x1xf32> to vector<16x32xf32>
    %463 = arith.subf %448, %462 : vector<16x32xf32>
    %cst_125 = arith.constant 9.99999974E-6 : f32
    %464 = vector.broadcast %cst_125 : f32 to vector<16x1xf32>
    %465 = arith.addf %461, %464 : vector<16x1xf32>
    %466 = math.rsqrt %465 : vector<16x1xf32>
    %467 = vector.broadcast %466 : vector<16x1xf32> to vector<16x32xf32>
    %468 = arith.mulf %463, %467 : vector<16x32xf32>
    %469 = vector.broadcast %449 : vector<1x32xf32> to vector<16x32xf32>
    %470 = arith.mulf %468, %469 : vector<16x32xf32>
    %471 = vector.broadcast %450 : vector<1x32xf32> to vector<16x32xf32>
    %472 = arith.addf %470, %471 : vector<16x32xf32>
    %473 = arith.truncf %472 : vector<16x32xf32> to vector<16x32xbf16>
    %c1_126 = arith.constant 1 : index
    %c0_127 = arith.constant 0 : index
    %c0_128 = arith.constant 0 : index
    %474 = vector.load %arg9[%c1_126, %c0_127, %c0_128] : memref<2x32x64xbf16, #tpu.memory_space<vmem>>, vector<1x32x64xbf16>
    %475 = vector.shape_cast %474 : vector<1x32x64xbf16> to vector<32x64xbf16>
    %cst_129 = arith.constant dense<0.000000e+00> : vector<16x64xf32>
    %476 = tpu.matmul %473, %475, %cst_129 {dimension_numbers = #tpu.dot_dimension_numbers<[1], [0], [0], [1], [0, 0, 1, 1], [], []>} : vector<16x32xbf16>, vector<32x64xbf16>, vector<16x64xf32> -> vector<16x64xf32>
    %c1_130 = arith.constant 1 : index
    %c0_131 = arith.constant 0 : index
    %c0_132 = arith.constant 0 : index
    %477 = vector.load %arg11[%c1_130, %c0_131, %c0_132] : memref<2x1x64xf32, #tpu.memory_space<vmem>>, vector<1x1x64xf32>
    %478 = vector.shape_cast %477 : vector<1x1x64xf32> to vector<1x64xf32>
    %479 = vector.broadcast %478 : vector<1x64xf32> to vector<16x64xf32>
    %480 = arith.addf %476, %479 : vector<16x64xf32>
    %cst_133 = arith.constant 0.000000e+00 : f32
    %481 = vector.broadcast %cst_133 : f32 to vector<16x64xf32>
    %482 = arith.maximumf %480, %481 : vector<16x64xf32>
    %483 = arith.truncf %482 : vector<16x64xf32> to vector<16x64xbf16>
    %c1_134 = arith.constant 1 : index
    %c0_135 = arith.constant 0 : index
    %c0_136 = arith.constant 0 : index
    %484 = vector.load %arg10[%c1_134, %c0_135, %c0_136] : memref<2x64x32xbf16, #tpu.memory_space<vmem>>, vector<1x64x32xbf16>
    %485 = vector.shape_cast %484 : vector<1x64x32xbf16> to vector<64x32xbf16>
    %cst_137 = arith.constant dense<0.000000e+00> : vector<16x32xf32>
    %486 = tpu.matmul %483, %485, %cst_137 {dimension_numbers = #tpu.dot_dimension_numbers<[1], [0], [0], [1], [0, 0, 1, 1], [], []>} : vector<16x64xbf16>, vector<64x32xbf16>, vector<16x32xf32> -> vector<16x32xf32>
    %487 = vector.extract_strided_slice %274 {offsets = [8, 0], sizes = [1, 32], strides = [1, 1]} : vector<17x32xf32> to vector<1x32xf32>
    %488 = vector.broadcast %487 : vector<1x32xf32> to vector<16x32xf32>
    %489 = arith.addf %486, %488 : vector<16x32xf32>
    %490 = arith.addf %472, %489 : vector<16x32xf32>
    %491 = vector.extract_strided_slice %274 {offsets = [13, 0], sizes = [1, 32], strides = [1, 1]} : vector<17x32xf32> to vector<1x32xf32>
    %492 = vector.extract_strided_slice %274 {offsets = [14, 0], sizes = [1, 32], strides = [1, 1]} : vector<17x32xf32> to vector<1x32xf32>
    %cst_138 = arith.constant dense<0.000000e+00> : vector<16xf32>
    %493 = vector.multi_reduction <add>, %490, %cst_138 [1] : vector<16x32xf32> to vector<16xf32>
    %494 = vector.shape_cast %493 : vector<16xf32> to vector<16x1xf32>
    %cst_139 = arith.constant 3.200000e+01 : f32
    %495 = vector.broadcast %cst_139 : f32 to vector<16x1xf32>
    %496 = arith.divf %494, %495 : vector<16x1xf32>
    %497 = vector.broadcast %496 : vector<16x1xf32> to vector<16x32xf32>
    %498 = arith.subf %490, %497 : vector<16x32xf32>
    %499 = arith.mulf %498, %498 : vector<16x32xf32>
    %cst_140 = arith.constant dense<0.000000e+00> : vector<16xf32>
    %500 = vector.multi_reduction <add>, %499, %cst_140 [1] : vector<16x32xf32> to vector<16xf32>
    %501 = vector.shape_cast %500 : vector<16xf32> to vector<16x1xf32>
    %cst_141 = arith.constant 3.200000e+01 : f32
    %502 = vector.broadcast %cst_141 : f32 to vector<16x1xf32>
    %503 = arith.divf %501, %502 : vector<16x1xf32>
    %504 = vector.broadcast %496 : vector<16x1xf32> to vector<16x32xf32>
    %505 = arith.subf %490, %504 : vector<16x32xf32>
    %cst_142 = arith.constant 9.99999974E-6 : f32
    %506 = vector.broadcast %cst_142 : f32 to vector<16x1xf32>
    %507 = arith.addf %503, %506 : vector<16x1xf32>
    %508 = math.rsqrt %507 : vector<16x1xf32>
    %509 = vector.broadcast %508 : vector<16x1xf32> to vector<16x32xf32>
    %510 = arith.mulf %505, %509 : vector<16x32xf32>
    %511 = vector.broadcast %491 : vector<1x32xf32> to vector<16x32xf32>
    %512 = arith.mulf %510, %511 : vector<16x32xf32>
    %513 = vector.broadcast %492 : vector<1x32xf32> to vector<16x32xf32>
    %514 = arith.addf %512, %513 : vector<16x32xf32>
    %c1_143 = arith.constant 1 : index
    %c0_144 = arith.constant 0 : index
    %c0_145 = arith.constant 0 : index
    %515 = vector.load %arg12[%c1_143, %c0_144, %c0_145] : memref<2x17x32xf32, #tpu.memory_space<vmem>>, vector<1x17x32xf32>
    %516 = vector.shape_cast %515 : vector<1x17x32xf32> to vector<17x32xf32>
    %517 = vector.extract_strided_slice %516 {offsets = [15, 0], sizes = [1, 32], strides = [1, 1]} : vector<17x32xf32> to vector<1x32xf32>
    %518 = vector.extract_strided_slice %516 {offsets = [16, 0], sizes = [1, 32], strides = [1, 1]} : vector<17x32xf32> to vector<1x32xf32>
    %cst_146 = arith.constant dense<0.000000e+00> : vector<16xf32>
    %519 = vector.multi_reduction <add>, %514, %cst_146 [1] : vector<16x32xf32> to vector<16xf32>
    %520 = vector.shape_cast %519 : vector<16xf32> to vector<16x1xf32>
    %cst_147 = arith.constant 3.200000e+01 : f32
    %521 = vector.broadcast %cst_147 : f32 to vector<16x1xf32>
    %522 = arith.divf %520, %521 : vector<16x1xf32>
    %523 = vector.broadcast %522 : vector<16x1xf32> to vector<16x32xf32>
    %524 = arith.subf %514, %523 : vector<16x32xf32>
    %525 = arith.mulf %524, %524 : vector<16x32xf32>
    %cst_148 = arith.constant dense<0.000000e+00> : vector<16xf32>
    %526 = vector.multi_reduction <add>, %525, %cst_148 [1] : vector<16x32xf32> to vector<16xf32>
    %527 = vector.shape_cast %526 : vector<16xf32> to vector<16x1xf32>
    %cst_149 = arith.constant 3.200000e+01 : f32
    %528 = vector.broadcast %cst_149 : f32 to vector<16x1xf32>
    %529 = arith.divf %527, %528 : vector<16x1xf32>
    %530 = vector.broadcast %522 : vector<16x1xf32> to vector<16x32xf32>
    %531 = arith.subf %514, %530 : vector<16x32xf32>
    %cst_150 = arith.constant 9.99999974E-6 : f32
    %532 = vector.broadcast %cst_150 : f32 to vector<16x1xf32>
    %533 = arith.addf %529, %532 : vector<16x1xf32>
    %534 = math.rsqrt %533 : vector<16x1xf32>
    %535 = vector.broadcast %534 : vector<16x1xf32> to vector<16x32xf32>
    %536 = arith.mulf %531, %535 : vector<16x32xf32>
    %537 = vector.broadcast %517 : vector<1x32xf32> to vector<16x32xf32>
    %538 = arith.mulf %536, %537 : vector<16x32xf32>
    %539 = vector.broadcast %518 : vector<1x32xf32> to vector<16x32xf32>
    %540 = arith.addf %538, %539 : vector<16x32xf32>
    %c0_151 = arith.constant 0 : index
    %c0_152 = arith.constant 0 : index
    %541 = vector.load %arg13[%c0_151, %c0_152] : memref<16x32xf32, #tpu.memory_space<vmem>>, vector<16x32xf32>
    tpu.vector_store %arg13[%c0_151, %c0_152], %540 {strides = array<i32>} : memref<16x32xf32, #tpu.memory_space<vmem>>, vector<16x32xf32>,
    return
  }
}

</mosaic_0001>

<bundles_post_ra>
// kernel: tpu_custom_call.1
= control target key start
LH: loop header
LB: loop body
LE: loop exit
PB: predicated region body
PF: predicated region fallthrough
CT: control target
= control target key end

     0   :  { %v190_v1 = vlaneseq  ;;  %v4799_v2 = vmov 0.0   ;;  %vm4800_vm0 = vmmov 0   ;;  %vm145_vm1 = vcmask 261120   ;;  %s4801_s21 = smov 32   ;;  %s5849_s0 = inlined_call_operand.vmem [shape: f32[16,32], index: 0, kind: input, shape index: {}]   ;;  %s5850_s1 = inlined_call_operand.vmem [shape: f32[32,32], index: 1, kind: input, shape index: {}]   ;;  %s5851_s2 = inlined_call_operand.vmem [shape: f32[16,32], index: 2, kind: input, shape index: {}]   ;;  %s5852_s3 = inlined_call_operand.vmem [shape: f32[32,32], index: 3, kind: input, shape index: {}]   ;;  %s5853_s4 = inlined_call_operand.vmem [shape: f32[16,1], index: 4, kind: input, shape index: {}]   ;;  %s5854_s5 = inlined_call_operand.vmem [shape: f32[1,16], index: 5, kind: input, shape index: {}]   ;;  %s5855_s6 = inlined_call_operand.vmem [shape: f32[1,32], index: 6, kind: input, shape index: {}]   ;;  %s5856_s7 = inlined_call_operand.vmem [shape: bf16[2,32,64], index: 7, kind: input, shape index: {}]   ;;  %s5857_s8 = inlined_call_operand.vmem [shape: bf16[2,192,32], index: 8, kind: input, shape index: {}]   ;;  %s5858_s9 = inlined_call_operand.vmem [shape: bf16[2,32,64], index: 9, kind: input, shape index: {}]   ;;  %s5859_s10 = inlined_call_operand.vmem [shape: bf16[2,64,32], index: 10, kind: input, shape index: {}]   ;;  %s5860_s11 = inlined_call_operand.vmem [shape: f32[2,1,64], index: 11, kind: input, shape index: {}]   ;;  %s5861_s12 = inlined_call_operand.vmem [shape: f32[2,17,32], index: 12, kind: input, shape index: {}]   ;;  %s5862_s13 = inlined_call_operand.hbm [shape: f32[16,32], index: 13, kind: output, shape index: {}]  }
   0x1   :  { %v4575_v0 = vld [vmem:[%s5856_s7] sm:$0xff]   ;;  %4120 = vmatprep.subr.bf16.mxu1 %v4799_v2  ;;  %v4576_v3 = vld [vmem:[%s5856_s7 + $0x8] sm:$0xff]   ;;  %4136 = vmatprep.subr.bf16.mxu0 %v4799_v2 }
   0x2   :  { %4121 = vmatpush3.bf16.msra.mxu1 %v4575_v0  ;;  %4124 = vmatprep.mubr.msk.bf16.mxu1 %vm4800_vm0, %v4799_v2  ;;  %v4899_v4 = vld [vmem:[%s5849_s0] sm:$0xff]  ;;  %v4904_v5 = vld [vmem:[%s5849_s0 + $0x8] sm:$0xff]  ;;  %v4911_v7 = vshrl.u32 %v190_v1, 7 }
   0x3   :  { %v4909_v6 = vld [vmem:[%s5851_s2] sm:$0xff]  ;;  %4122 = vmatprep.subr.bf16.mxu1 %v4799_v2  ;;  %v4917_v8 = vld [vmem:[%s5851_s2 + $0x8] sm:$0xff]  ;;  %4138 = vmatprep.mubr.msk.bf16.mxu0 %vm4800_vm0, %v4799_v2 }
   0x4   :  { %v130_v9 = vadd.f32 %v4909_v6, %v4899_v4  ;;  %v4924_v10 = vld [vmem:[%s5861_s12] sm:$0xff]  ;;  %v131_v11 = vadd.f32 %v4917_v8, %v4904_v5  ;;  %v4931_v12 = vsub.s32 1, %v4911_v7 }
   0x6   :  { %4123 = vmatpush3.bf16.msra.mxu1 %v4576_v3  ;;  %v132_v13 = vpack.c.bf16 %v131_v11, %v130_v9  ;;  %v199_v14 = vrot.slane %v4924_v10, %v4931_v12 }
   0x7   :  { %4128 = vmatprep.subr.bf16.mxu1 %v4799_v2 }
   0x8   :  { %201 = vrot.lane.b32.xlu0 %v199_v14, %s4801_s21 }
   0x9   :  { %4125 = vmatmul.mubr.msk.bf16.vlgmr.msra.gmra.mrb[0].mxu1 %vm145_vm1, %v132_v13 }
   0xa   :  { %4132 = vmatprep.mubr.msk.bf16.mxu1 %vm4800_vm0, %v4799_v2 }
   0xb   :  { %18 = vsyncpa [#allocation3], 0  ;;  %v4577_v15 = vld [vmem:[%s5857_s8] sm:$0xff]   ;;  %v4578_v16 = vld [vmem:[%s5857_s8 + $0x8] sm:$0xff]   ;;  %v206_v17 = vpack.c.bf16 %v4904_v5, %v4899_v4  ;;  %v4952_v18 = vsub.s32 0, %v4911_v7  ;;  %s5863_s26 = smov 88  }
   0xc   :  { %4129 = vmatpush3.bf16.msra.mxu1 %v4577_v15  ;;  %s4803_s27 = smov 96   ;;  %s4804_s28 = smov 80   ;;  %v4806_v31 = vmov 0   ;;  %v62_v32 = vld [vmem:[%s5853_s4] sm:$0xff]  ;;  %v63_v33 = vld [vmem:[%s5853_s4 + $0x8] sm:$0xff]  ;;  %vm273_vm2 = vcmask 64512  }
   0xd   :  { %4130 = vmatprep.subr.bf16.mxu1 %v4799_v2  ;;  %v193_v19 = vrot.slane %v4924_v10, %v4952_v18  ;;  %s4805_s29 = smov 120   ;;  %4513 = vset.pattern.permute.xlu0 %v4806_v31  ;;  %s4807_s30 = smov 72   ;;  %v4992_v45 = vsub.s32 2, %v4911_v7  ;;  %v3835_v54 = vld [vmem:[%s5854_s5] ss:$0 sm:$0xff]  ;;  %vm483_vm5 = vcmask 130048  }
   0xe   :  { %4514 = vset.pattern.permute.xlu1 %v4806_v31  ;;  %s4808_s14 = smov 112   ;;  %s4809_s17 = smov 104   ;;  %v4810_v57 = vmov -1e+09   ;;  %vm790_vm6 = vcmask 195584   ;;  %vm1860_vm9 = vcmask 523264  }
   0xf   :  { %v210_v46 = vrot.slane %v4924_v10, %v4992_v45  ;;  %s4811_s5 = smov 8   ;;  %s4812_s25 = smov 16  }
  0x10   :  { %4131 = vmatpush3.bf16.msra.mxu1 %v4578_v16  ;;  %s4813_s15 = smov 24  }
  0x11   :  { %4142 = vmatprep.subr.bf16.mxu1 %v4799_v2 }
  0x13   :  { %4133 = vmatmul.mubr.msk.bf16.vlgmr.msra.gmra.mrb[4].mxu1 %vm145_vm1, %v206_v17 }
  0x14   :  { %4144 = vmatprep.mubr.msk.bf16.mxu1 %vm4800_vm0, %v4799_v2 }
  0x7a   :  { %v202_v20 = vpop.permute.xlu0 %201 }
  0xdc   :  { %v183_v21 = vpop.f32.mrb[0].mxu1 }
  0xdd   :  { %v4126_v22 = vpop.f32.mrb[1].mxu1  ;;  %v194_v24 = vadd.f32 %v193_v19, %v183_v21  ;;  %v204_v25 = vadd.f32 %v202_v20, %v183_v21 }
  0xde   :  { %v186_v23 = vpop.f32.mrb[2].mxu1 }
  0xdf   :  { %v195_v26 = vadd.f32 %v193_v19, %v186_v23  ;;  %v205_v27 = vadd.f32 %v202_v20, %v186_v23  ;;  %v4127_v28 = vpop.f32.mrb[3].mxu1 }
  0xe1   :  { %v267_v29 = vpack.c.bf16 %v195_v26, %v194_v24  ;;  %v268_v30 = vpack.c.bf16 %v205_v27, %v204_v25 }
  0xe3   :  { %324 = vrot.lane.b32.xlu1 %v268_v30, %s5863_s26  ;;  %271 = vrot.lane.b32.xlu0 %v268_v30, %s4803_s27 }
  0xe6   :  { %v260_v47 = vpop.f32.mrb[4].mxu1 }
  0xe7   :  { %375 = vrot.lane.b32.xlu1 %v268_v30, %s4804_s28  ;;  %322 = vrot.lane.b32.xlu0 %v267_v29, %s4805_s29  ;;  %v261_v48 = vadd.f32 %v260_v47, %v210_v46  ;;  %v4134_v49 = vpop.f32.mrb[5].mxu1 }
  0xe8   :  { %v263_v50 = vpop.f32.mrb[6].mxu1 }
  0xe9   :  { %v264_v51 = vadd.f32 %v263_v50, %v210_v46  ;;  %v4135_v52 = vpop.f32.mrb[7].mxu1 }
  0xeb   :  { %426 = vrot.lane.b32.xlu1 %v268_v30, %s4807_s30  ;;  %373 = vrot.lane.b32.xlu0 %v267_v29, %s4808_s14  ;;  %v4996_v53 = vpack.c.bf16 %v264_v51, %v261_v48 }
  0xef   :  { %424 = vrot.lane.b32.xlu1 %v267_v29, %s4809_s17  ;;  %67 = vperm.xlu0 %4513, %v62_v32  }
  0xf3   :  { %72 = vperm.xlu1 %4514, %v63_v33  }
 0x155   :  { %v325_v34 = vpop.permute.xlu1 %324  ;;  %v272_v35 = vpop.permute.xlu0 %271 }
 0x156   :  { %v330_v36 = vsel %vm273_vm2, %v325_v34, 0  ;;  %v278_v37 = vsel %vm273_vm2, %v272_v35, 0 }
 0x157   :  { %4137 = vmatpush3.bf16.xpose.msra.mxu0 %v278_v37  ;;  %4143 = vmatpush3.bf16.xpose.msra.mxu1 %v330_v36 }
 0x158   :  { %4148 = vmatprep.subr.bf16.mxu0 %v4799_v2  ;;  %4154 = vmatprep.subr.bf16.mxu1 %v4799_v2 }
 0x159   :  { %v376_v38 = vpop.permute.xlu1 %375  ;;  %v323_v39 = vpop.permute.xlu0 %322 }
 0x15a   :  { %v381_v41 = vsel %vm273_vm2, %v376_v38, 0 }
 0x15d   :  { %v427_v40 = vpop.permute.xlu1 %426  ;;  %v374_v43 = vpop.permute.xlu0 %373 }
 0x15e   :  { %v432_v42 = vsel %vm273_vm2, %v427_v40, 0  ;;  %4139 = vmatmul.mubr.msk.bf16.vlgmr.msra.gmra.mrb[0].mxu0 %vm273_vm2, %v267_v29  ;;  %4145 = vmatmul.mubr.msk.bf16.vlgmr.msra.gmra.mrb[8].mxu1 %vm273_vm2, %v323_v39 }
 0x15f   :  { %4149 = vmatpush3.bf16.xpose.msra.mxu0 %v381_v41  ;;  %4155 = vmatpush3.bf16.xpose.msra.mxu1 %v432_v42 }
 0x160   :  { %4150 = vmatprep.mubr.msk.bf16.mxu0 %vm4800_vm0, %v4799_v2  ;;  %4156 = vmatprep.mubr.msk.bf16.mxu1 %vm4800_vm0, %v4799_v2 }
 0x161   :  { %4160 = vmatprep.subr.bf16.mxu0 %v4799_v2  ;;  %4166 = vmatprep.subr.bf16.mxu1 %v4799_v2  ;;  %v425_v44 = vpop.permute.xlu1 %424 }
 0x166   :  { %4151 = vmatmul.mubr.msk.bf16.vlgmr.msra.gmra.mrb[4].mxu0 %vm273_vm2, %v374_v43  ;;  %4157 = vmatmul.mubr.msk.bf16.vlgmr.msra.gmra.mrb[12].mxu1 %vm273_vm2, %v425_v44 }
 0x167   :  { %4162 = vmatprep.mubr.msk.bf16.mxu0 %vm4800_vm0, %v4799_v2  ;;  %4168 = vmatprep.mubr.msk.bf16.mxu1 %vm4800_vm0, %v4799_v2 }
 0x168   :  { %4161 = vmatpush3.bf16.msra.mxu0 %v4996_v53 }
 0x169   :  { %4172 = vmatprep.subr.bf16.mxu0 %v4799_v2 }
 0x16e   :  { %v5003_v55 = vpop.permute.xlu0 %67 }
 0x16f   :  { %vm81_vm3 = vcmp.eq.f32.partialorder %v5003_v55, %v3835_v54 }
 0x170   :  { %v5010_v58 = vsel %vm81_vm3, 0.0, %v4810_v57 }
 0x172   :  { %v5005_v56 = vpop.permute.xlu1 %72 }
 0x173   :  { %vm82_vm4 = vcmp.eq.f32.partialorder %v5005_v56, %v3835_v54 }
 0x174   :  { %v5013_v59 = vsel %vm82_vm4, 0.0, %v4810_v57 }
 0x231   :  { %v314_v60 = vpop.f32.mrb[0].mxu0  ;;  %v366_v61 = vpop.f32.mrb[8].mxu1 }
 0x232   :  { %v475_v62 = vadd.f32 %v314_v60, %v5010_v58  ;;  %v4140_v63 = vpop.f32.mrb[1].mxu0  ;;  %v4146_v0 = vpop.f32.mrb[9].mxu1  ;;  %v477_v16 = vadd.f32 %v366_v61, %v5010_v58 }
 0x233   :  { %v317_v1 = vpop.f32.mrb[2].mxu0  ;;  %v369_v3 = vpop.f32.mrb[10].mxu1 }
 0x234   :  { %v476_v9 = vadd.f32 %v317_v1, %v5013_v59  ;;  %v478_v11 = vadd.f32 %v369_v3, %v5013_v59  ;;  %v4141_v13 = vpop.f32.mrb[3].mxu0  ;;  %v4147_v14 = vpop.f32.mrb[11].mxu1  ;;  %v484_v15 = vsel %vm483_vm5, %v475_v62, -inf  ;;  %v490_v25 = vsel %vm483_vm5, %v477_v16, -inf }
 0x235   :  { %485 = vmax.xlane.f32.xlu1 %v484_v15 }
 0x236   :  { %v487_v17 = vsel %vm483_vm5, %v476_v9, -inf  ;;  %v493_v19 = vsel %vm483_vm5, %v478_v11, -inf }
 0x237   :  { %488 = vmax.xlane.f32.xlu0 %v487_v17 }
 0x239   :  { %v417_v20 = vpop.f32.mrb[4].mxu0  ;;  %494 = vmax.xlane.f32.xlu1 %v493_v19  ;;  %v468_v21 = vpop.f32.mrb[12].mxu1 }
 0x23a   :  { %v479_v22 = vadd.f32 %v417_v20, %v5010_v58  ;;  %v4152_v23 = vpop.f32.mrb[5].mxu0  ;;  %v4158_v24 = vpop.f32.mrb[13].mxu1  ;;  %v481_v31 = vadd.f32 %v468_v21, %v5010_v58 }
 0x23b   :  { %v420_v26 = vpop.f32.mrb[6].mxu0  ;;  %491 = vmax.xlane.f32.xlu0 %v490_v25  ;;  %v471_v27 = vpop.f32.mrb[14].mxu1 }
 0x23c   :  { %v480_v28 = vadd.f32 %v420_v26, %v5013_v59  ;;  %v4153_v29 = vpop.f32.mrb[7].mxu0  ;;  %v4159_v30 = vpop.f32.mrb[15].mxu1  ;;  %v482_v32 = vadd.f32 %v471_v27, %v5013_v59  ;;  %v496_v33 = vsel %vm483_vm5, %v479_v22, -inf  ;;  %v502_v35 = vsel %vm483_vm5, %v481_v31, -inf }
 0x23e   :  { %v499_v34 = vsel %vm483_vm5, %v480_v28, -inf  ;;  %v505_v36 = vsel %vm483_vm5, %v482_v32, -inf }
 0x23f   :  { %497 = vmax.xlane.f32.xlu0 %v496_v33  ;;  %500 = vmax.xlane.f32.xlu1 %v499_v34 }
 0x243   :  { %503 = vmax.xlane.f32.xlu0 %v502_v35  ;;  %506 = vmax.xlane.f32.xlu1 %v505_v36 }
 0x2c2   :  { %v486_v37 = vpop.xlane.xlu1 %485 }
 0x2c3   :  { %v508_v38 = vsub.f32 %v475_v62, %v486_v37 }
 0x2c4   :  { %v489_v39 = vpop.xlane.xlu0 %488 }
 0x2c5   :  { %v516_v40 = vmul.f32 1.442695, %v508_v38  ;;  %v509_v41 = vsub.f32 %v476_v9, %v489_v39 }
 0x2c6   :  { %v495_v42 = vpop.xlane.xlu1 %494 }
 0x2c7   :  { %4615 = vpow2.f32 %v516_v40  ;;  %v518_v43 = vmul.f32 1.442695, %v509_v41  ;;  %v511_v44 = vsub.f32 %v478_v11, %v495_v42 }
 0x2c8   :  { %v492_v46 = vpop.xlane.xlu0 %491 }
 0x2c9   :  { %4617 = vpow2.f32 %v518_v43  ;;  %v522_v47 = vmul.f32 1.442695, %v511_v44  ;;  %v510_v48 = vsub.f32 %v477_v16, %v492_v46 }
 0x2cb   :  { %4619 = vpow2.f32 %v522_v47  ;;  %v520_v49 = vmul.f32 1.442695, %v510_v48 }
 0x2cc   :  { %v498_v50 = vpop.xlane.xlu0 %497  ;;  %v501_v19 = vpop.xlane.xlu1 %500 }
 0x2cd   :  { %4621 = vpow2.f32 %v520_v49  ;;  %v512_v51 = vsub.f32 %v479_v22, %v498_v50  ;;  %v513_v20 = vsub.f32 %v480_v28, %v501_v19 }
 0x2cf   :  { %v524_v52 = vmul.f32 1.442695, %v512_v51  ;;  %v526_v22 = vmul.f32 1.442695, %v513_v20  ;;  %v4579_v20 = vld [vmem:[%s5857_s8 + $0x10] sm:$0xff]  }
 0x2d0   :  { %v504_v54 = vpop.xlane.xlu0 %503  ;;  %v507_v21 = vpop.xlane.xlu1 %506 }
 0x2d1   :  { %v4616_v60 = vpop.eup %4615  ;;  %4623 = vpow2.f32 %v524_v52  ;;  %v514_v61 = vsub.f32 %v481_v31, %v504_v54  ;;  %v515_v23 = vsub.f32 %v482_v32, %v507_v21  ;;  %v4580_v21 = vld [vmem:[%s5857_s8 + $0x18] sm:$0xff]  }
 0x2d2   :  { %v532_v62 = vsel %vm483_vm5, %v4616_v60, 0.0 }
 0x2d3   :  { %v4618_v63 = vpop.eup %4617  ;;  %v528_v0 = vmul.f32 1.442695, %v514_v61  ;;  %533 = vadd.xlane.f32.xlu0 %v532_v62  ;;  %v530_v24 = vmul.f32 1.442695, %v515_v23 }
 0x2d4   :  { %v535_v1 = vsel %vm483_vm5, %v4618_v63, 0.0 }
 0x2d5   :  { %v4620_v3 = vpop.eup %4619  ;;  %4625 = vpow2.f32 %v528_v0  ;;  %536 = vadd.xlane.f32.xlu1 %v535_v1 }
 0x2d6   :  { %v541_v13 = vsel %vm483_vm5, %v4620_v3, 0.0  ;;  %4627 = vpow2.f32 %v526_v22 }
 0x2d7   :  { %v4622_v9 = vpop.eup %4621  ;;  %4629 = vpow2.f32 %v530_v24 }
 0x2d8   :  { %v538_v11 = vsel %vm483_vm5, %v4622_v9, 0.0 }
 0x2d9   :  { %539 = vadd.xlane.f32.xlu0 %v538_v11  ;;  %542 = vadd.xlane.f32.xlu1 %v541_v13 }
 0x2db   :  { %v5035_v14 = vpop.eup %4623 }
 0x2dc   :  { %v544_v15 = vsel %vm483_vm5, %v5035_v14, 0.0 }
 0x2dd   :  { %545 = vadd.xlane.f32.xlu0 %v544_v15 }
 0x2df   :  { %v5039_v16 = vpop.eup %4625 }
 0x2e0   :  { %v550_v17 = vsel %vm483_vm5, %v5039_v16, 0.0  ;;  %v4628_v25 = vpop.eup %4627 }
 0x2e1   :  { %551 = vadd.xlane.f32.xlu0 %v550_v17  ;;  %v547_v26 = vsel %vm483_vm5, %v4628_v25, 0.0  ;;  %v4630_v27 = vpop.eup %4629 }
 0x2e2   :  { %v553_v29 = vsel %vm483_vm5, %v4630_v27, 0.0 }
 0x2ea   :  { %668 = vrot.lane.b32.xlu1 %v4996_v53, %s4808_s14 }
 0x2f7   :  { %621 = vrot.lane.b32.xlu0 %v4996_v53, %s4805_s29 }
 0x30e   :  { %548 = vadd.xlane.f32.xlu1 %v547_v26 }
 0x312   :  { %554 = vadd.xlane.f32.xlu1 %v553_v29 }
 0x323   :  { %715 = vrot.lane.b32.xlu1 %v4996_v53, %s4809_s17 }
 0x360   :  { %v534_v30 = vpop.xlane.xlu0 %533 }
 0x361   :  { %4631 = vrcp.f32 %v534_v30 }
 0x362   :  { %v537_v28 = vpop.xlane.xlu1 %536 }
 0x363   :  { %4633 = vrcp.f32 %v537_v28 }
 0x366   :  { %v540_v31 = vpop.xlane.xlu0 %539  ;;  %v543_v32 = vpop.xlane.xlu1 %542 }
 0x367   :  { %4635 = vrcp.f32 %v540_v31 }
 0x368   :  { %4637 = vrcp.f32 %v543_v32 }
 0x36a   :  { %v546_v33 = vpop.xlane.xlu0 %545  ;;  %v669_v43 = vpop.permute.xlu1 %668 }
 0x36b   :  { %v4632_v34 = vpop.eup %4631  ;;  %4639 = vrcp.f32 %v546_v33 }
 0x36c   :  { %v564_v36 = vmul.f32 %v4632_v34, %v4616_v60 }
 0x36d   :  { %v4634_v35 = vpop.eup %4633 }
 0x36e   :  { %v565_v37 = vmul.f32 %v4634_v35, %v4618_v63  ;;  %v552_v38 = vpop.xlane.xlu0 %551 }
 0x370   :  { %v572_v39 = vpack.c.bf16 %v565_v37, %v564_v36 }
 0x371   :  { %v4636_v40 = vpop.eup %4635 }
 0x372   :  { %v4638_v41 = vpop.eup %4637  ;;  %v566_v42 = vmul.f32 %v4636_v40, %v4622_v9  ;;  %v622_v53 = vpop.permute.xlu0 %621  ;;  %4163 = vmatmul.mubr.msk.bf16.vlgmr.msra.gmra.mrb[8].mxu0 %vm483_vm5, %v572_v39 }
 0x373   :  { %v567_v44 = vmul.f32 %v4638_v41, %v4620_v3  ;;  %4173 = vmatpush3.bf16.msra.mxu0 %v669_v43  ;;  %4167 = vmatpush3.bf16.msra.mxu1 %v622_v53 }
 0x374   :  { %4178 = vmatprep.subr.bf16.mxu1 %v4799_v2  ;;  %4174 = vmatprep.mubr.msk.bf16.mxu0 %vm4800_vm0, %v4799_v2 }
 0x375   :  { %v573_v46 = vpack.c.bf16 %v567_v44, %v566_v42  ;;  %4184 = vmatprep.subr.bf16.mxu0 %v4799_v2  ;;  %v4640_v50 = vpop.eup %4639 }
 0x376   :  { %v568_v52 = vmul.f32 %v4640_v50, %v5035_v14 }
 0x377   :  { %4169 = vmatmul.mubr.msk.bf16.vlgmr.msra.gmra.mrb[16].mxu1 %vm483_vm5, %v573_v46 }
 0x378   :  { %4180 = vmatprep.mubr.msk.bf16.mxu1 %vm4800_vm0, %v4799_v2 }
 0x39b   :  { %v549_v47 = vpop.xlane.xlu1 %548 }
 0x39c   :  { %4641 = vrcp.f32 %v549_v47 }
 0x39d   :  { %4643 = vrcp.f32 %v552_v38 }
 0x39f   :  { %v555_v48 = vpop.xlane.xlu1 %554 }
 0x3a0   :  { %4645 = vrcp.f32 %v555_v48  ;;  %v5086_v48 = vsub.s32 3, %v4911_v7 }
 0x3a3   :  { %v716_v49 = vpop.permute.xlu1 %715 }
 0x3a4   :  { %4179 = vmatpush3.bf16.msra.mxu1 %v716_v49  ;;  %v797_v49 = vrot.slane %v4924_v10, %v5086_v48 }
 0x3a5   :  { %4192 = vmatprep.subr.bf16.mxu1 %v4799_v2 }
 0x3a6   :  { %v4642_v51 = vpop.eup %4641 }
 0x3a7   :  { %v569_v54 = vmul.f32 %v4642_v51, %v4628_v25  ;;  %v4644_v60 = vpop.eup %4643 }
 0x3a8   :  { %v570_v63 = vmul.f32 %v4644_v60, %v5039_v16 }
 0x3a9   :  { %v574_v61 = vpack.c.bf16 %v569_v54, %v568_v52 }
 0x3aa   :  { %v4646_v62 = vpop.eup %4645 }
 0x3ab   :  { %v571_v0 = vmul.f32 %v4646_v62, %v4630_v27  ;;  %4175 = vmatmul.mubr.msk.bf16.vlgmr.msra.gmra.mrb[12].mxu0 %vm483_vm5, %v574_v61 }
 0x3ac   :  { %4188 = vmatprep.mubr.msk.bf16.mxu0 %vm4800_vm0, %v4799_v2  ;;  %4185 = vmatpush3.bf16.msra.mxu0 %v4579_v20  ;;  %v57_v20 = vld [vmem:[%s5852_s3 + $0x18] sm:$0xff] }
 0x3ad   :  { %v575_v1 = vpack.c.bf16 %v571_v0, %v570_v63  ;;  %4186 = vmatprep.subr.bf16.mxu0 %v4799_v2 }
 0x3af   :  { %4181 = vmatmul.mubr.msk.bf16.vlgmr.msra.gmra.mrb[20].mxu1 %vm483_vm5, %v575_v1 }
 0x3b0   :  { %4196 = vmatprep.mubr.msk.bf16.mxu1 %vm4800_vm0, %v4799_v2  ;;  %4187 = vmatpush3.bf16.msra.mxu0 %v4580_v21 }
 0x445   :  { %v613_v3 = vpop.f32.mrb[8].mxu0 }
 0x446   :  { %v4164_v9 = vpop.f32.mrb[9].mxu0 }
 0x447   :  { %v616_v11 = vpop.f32.mrb[10].mxu0  ;;  %v4582_v9 = vld [vmem:[%s5857_s8 + $0x38] sm:$0xff]  }
 0x448   :  { %v4165_v13 = vpop.f32.mrb[11].mxu0 }
 0x449   :  { %v55_v13 = vld [vmem:[%s5852_s3 + $0x8] sm:$0xff] }
 0x44a   :  { %v661_v14 = vpop.f32.mrb[16].mxu1 }
 0x44b   :  { %v4170_v15 = vpop.f32.mrb[17].mxu1 }
 0x44c   :  { %v664_v17 = vpop.f32.mrb[18].mxu1 }
 0x44d   :  { %v4515_v16 = vpack.i.bf16 %v664_v17, %v661_v14  ;;  %v4171_v19 = vpop.f32.mrb[19].mxu1  ;;  %v5121_v17 = vld [vmem:[%s5850_s1 + $0x10] sm:$0xff] }
 0x44e   :  { %v56_v19 = vld [vmem:[%s5852_s3 + $0x10] sm:$0xff] }
 0x44f   :  { %4516 = vrot.lane.b32.xlu0 %v4515_v16, %s4811_s5  ;;  %v5126_v16 = vld [vmem:[%s5850_s1 + $0x18] sm:$0xff]  ;;  %v60_v21 = vadd.f32 %v56_v19, %v5121_v17 }
 0x47e   :  { %v708_v22 = vpop.f32.mrb[12].mxu0 }
 0x47f   :  { %v4176_v23 = vpop.f32.mrb[13].mxu0 }
 0x480   :  { %v711_v24 = vpop.f32.mrb[14].mxu0  ;;  %v61_v23 = vadd.f32 %v57_v20, %v5126_v16 }
 0x481   :  { %v4520_v25 = vpack.i.bf16 %v711_v24, %v708_v22  ;;  %v4177_v26 = vpop.f32.mrb[15].mxu0 }
 0x482   :  { %v755_v27 = vpop.f32.mrb[20].mxu1  ;;  %v5140_v24 = vpack.c.bf16 %v61_v23, %v60_v21 }
 0x483   :  { %4521 = vrot.lane.b32.xlu1 %v4520_v25, %s4812_s25  ;;  %v4182_v29 = vpop.f32.mrb[21].mxu1 }
 0x484   :  { %v758_v30 = vpop.f32.mrb[22].mxu1 }
 0x485   :  { %v4525_v28 = vpack.i.bf16 %v758_v30, %v755_v27  ;;  %v4183_v31 = vpop.f32.mrb[23].mxu1 }
 0x487   :  { %4526 = vrot.lane.b32.xlu0 %v4525_v28, %s4813_s15 }
 0x4c1   :  { %v4517_v32 = vpop.permute.xlu0 %4516 }
 0x4c2   :  { %v4519_v34 = vunpack.i.h.bf16 %v4517_v32  ;;  %v4518_v35 = vunpack.i.l.bf16 %v4517_v32 }
 0x4c4   :  { %v787_v39 = vsel %vm273_vm2, %v616_v11, %v4519_v34  ;;  %v786_v40 = vsel %vm273_vm2, %v613_v3, %v4518_v35  ;;  %v4581_v3 = vld [vmem:[%s5857_s8 + $0x30] sm:$0xff]   ;;  %v54_v11 = vld [vmem:[%s5852_s3] sm:$0xff] }
 0x4c5   :  { %4200 = vmatprep.subr.bf16.mxu0 %v4581_v3  ;;  %v4583_v35 = vld [vmem:[%s5857_s8 + $0x20] sm:$0xff]  }
 0x4c6   :  { %4193 = vmatpush3.bf16.msra.mxu1 %v4583_v35 }
 0x4c7   :  { %4194 = vmatprep.subr.bf16.mxu1 %v4799_v2 }
 0x4f5   :  { %v4522_v33 = vpop.permute.xlu1 %4521 }
 0x4f6   :  { %v4524_v36 = vunpack.i.h.bf16 %v4522_v33  ;;  %v4523_v37 = vunpack.i.l.bf16 %v4522_v33 }
 0x4f8   :  { %v788_v43 = vsel %vm483_vm5, %v786_v40, %v4523_v37  ;;  %v789_v53 = vsel %vm483_vm5, %v787_v39, %v4524_v36  ;;  %v4584_v36 = vld [vmem:[%s5857_s8 + $0x28] sm:$0xff]   ;;  %v5157_v37 = vsub.s32 5, %v4911_v7 }
 0x4f9   :  { %v4527_v38 = vpop.permute.xlu0 %4526  ;;  %4195 = vmatpush3.bf16.msra.mxu1 %v4584_v36 }
 0x4fa   :  { %v4529_v41 = vunpack.i.h.bf16 %v4527_v38  ;;  %v4528_v42 = vunpack.i.l.bf16 %v4527_v38  ;;  %v961_v38 = vrot.slane %v4924_v10, %v5157_v37 }
 0x4fc   :  { %v792_v44 = vsel %vm790_vm6, %v789_v53, %v4529_v41  ;;  %v791_v46 = vsel %vm790_vm6, %v788_v43, %v4528_v42 }
 0x4fd   :  { %v793_v47 = vpack.c.bf16 %v792_v44, %v791_v46 }
 0x4ff   :  { %4189 = vmatmul.mubr.msk.bf16.vlgmr.msra.gmra.mrb[16].mxu0 %vm145_vm1, %v793_v47 }
 0x500   :  { %4201 = vmatpush3.bf16.msra.mxu0 %v4581_v3 }
 0x501   :  { %4202 = vmatprep.subr.bf16.mxu0 %v4582_v9 }
 0x504   :  { %4203 = vmatpush3.bf16.msra.mxu0 %v4582_v9 }
 0x505   :  { %4216 = vmatprep.subr.bf16.mxu0 %v4799_v2 }
 0x5d2   :  { %v847_v50 = vpop.f32.mrb[16].mxu0 }
 0x5d3   :  { %v848_v51 = vadd.f32 %v847_v50, %v797_v49  ;;  %v4190_v52 = vpop.f32.mrb[17].mxu0 }
 0x5d4   :  { %v850_v54 = vpop.f32.mrb[18].mxu0 }
 0x5d5   :  { %v851_v60 = vadd.f32 %v850_v54, %v797_v49  ;;  %v4191_v61 = vpop.f32.mrb[19].mxu0  ;;  %v854_v62 = vadd.f32 %v848_v51, %v4899_v4  ;;  %v5103_v4 = vld [vmem:[%s5850_s1] sm:$0xff] }
 0x5d6   :  { %v58_v14 = vadd.f32 %v54_v11, %v5103_v4 }
 0x5d7   :  { %v856_v63 = vsel %vm145_vm1, %v854_v62, 0.0  ;;  %v855_v0 = vadd.f32 %v851_v60, %v4904_v5  ;;  %v5108_v5 = vld [vmem:[%s5850_s1 + $0x8] sm:$0xff]  ;;  %s4814_s1 = smov [#allocation2]  }
 0x5d8   :  { %857 = vadd.xlane.f32.xlu1 %v856_v63  ;;  %v59_v15 = vadd.f32 %v55_v13, %v5108_v5  ;;  %s3824_s3 = sshll.u32 %s4814_s1, 4  ;;  %s3825_s3 = int_to_ptr.vmem [resolvable:$true] %s3824_s3 }
 0x5d9   :  { %v859_v1 = vsel %vm145_vm1, %v855_v0, 0.0  ;;  %p4780_p1 = scmp.lt.s32.totalorder %s3825_s3, %s3825_s3 }
 0x5da   :  { %860 = vadd.xlane.f32.xlu0 %v859_v1  ;;  %v5135_v22 = vpack.c.bf16 %v59_v15, %v58_v14 }
 0x5dc   :  { %4204 = vmatprep.mubr.msk.bf16.mxu0 %vm145_vm1, %v5135_v22 }
 0x5dd   :  { %4205 = vmatmul.mubr.msk.bf16.vlgmr.msra.gmra.mrb[20].mxu0 %vm145_vm1, %v5140_v24 }
 0x5de   :  { %4220 = vmatprep.mubr.msk.bf16.mxu0 %vm4800_vm0, %v4799_v2 }
 0x665   :  { %v858_v25 = vpop.xlane.xlu1 %857 }
 0x666   :  { %v863_v26 = vmul.f32 0.03125, %v858_v25 }
 0x667   :  { %v861_v27 = vpop.xlane.xlu0 %860 }
 0x668   :  { %v865_v29 = vsub.f32 %v854_v62, %v863_v26  ;;  %v864_v30 = vmul.f32 0.03125, %v861_v27  ;;  %v4585_v27 = vld [vmem:[%s5857_s8 + $0x40] sm:$0xff]  }
 0x669   :  { %4208 = vmatprep.subr.bf16.mxu1 %v4585_v27 }
 0x66a   :  { %v866_v28 = vsub.f32 %v855_v0, %v864_v30  ;;  %v867_v31 = vmul.f32 %v865_v29, %v865_v29  ;;  %v5178_v0 = vld [vmem:[%s5861_s12 + $0x8] sm:$0xff]  ;;  %v5201_v30 = vpack.c.bf16 %v5108_v5, %v5103_v4 }
 0x66b   :  { %v886_v1 = vrot.slane %v5178_v0, %v4931_v12  ;;  %v892_v11 = vrot.slane %v5178_v0, %v4992_v45 }
 0x66c   :  { %v869_v32 = vsel %vm145_vm1, %v867_v31, 0.0  ;;  %v868_v33 = vmul.f32 %v866_v28, %v866_v28 }
 0x66d   :  { %870 = vadd.xlane.f32.xlu0 %v869_v32 }
 0x66e   :  { %v872_v34 = vsel %vm145_vm1, %v868_v33, 0.0 }
 0x66f   :  { %873 = vadd.xlane.f32.xlu1 %v872_v34 }
 0x6b0   :  { %v4206_v39 = vpop.f32.mrb[20].mxu0 }
 0x6b1   :  { %v1023_v40 = vadd.f32 %v4206_v39, %v961_v38  ;;  %v1014_v41 = vpop.f32.mrb[21].mxu0 }
 0x6b2   :  { %v1015_v42 = vadd.f32 %v1014_v41, %v961_v38  ;;  %v4207_v43 = vpop.f32.mrb[22].mxu0 }
 0x6b3   :  { %v1026_v53 = vadd.f32 %v4207_v43, %v961_v38  ;;  %v1017_v44 = vpop.f32.mrb[23].mxu0  ;;  %v5236_v43 = vsub.s32 6, %v4911_v7 }
 0x6b4   :  { %v1018_v46 = vadd.f32 %v1017_v44, %v961_v38 }
 0x6b5   :  { %v5161_v47 = vpack.c.bf16 %v1026_v53, %v1023_v40  ;;  %v5241_v53 = vld [vmem:[%s5861_s12] sm:$0xff] }
 0x6b6   :  { %v1101_v49 = vpack.c.bf16 %v1018_v46, %v1015_v42  ;;  %v1032_v44 = vrot.slane %v5241_v53, %v5236_v43 }
 0x6b7   :  { %1162 = vrot.lane.b32.xlu1 %v5161_v47, %s4805_s29  ;;  %v1112_v51 = vsel %vm273_vm2, %v5161_v47, 0 }
 0x6b8   :  { %1160 = vrot.lane.b32.xlu0 %v1101_v49, %s4805_s29  ;;  %v1109_v50 = vsel %vm273_vm2, %v1101_v49, 0 }
 0x6b9   :  { %4217 = vmatpush3.bf16.xpose.msra.mxu0 %v1109_v50 }
 0x6ba   :  { %4218 = vmatprep.subr.bf16.mxu0 %v4799_v2 }
 0x6bb   :  { %1216 = vrot.lane.b32.xlu1 %v1101_v49, %s4808_s14 }
 0x6bc   :  { %1272 = vrot.lane.b32.xlu0 %v1101_v49, %s4809_s17 }
 0x6c0   :  { %1218 = vrot.lane.b32.xlu0 %v5161_v47, %s4808_s14 }
 0x6c1   :  { %4219 = vmatpush3.bf16.xpose.msra.mxu0 %v1112_v51 }
 0x6c2   :  { %4232 = vmatprep.subr.bf16.mxu0 %v4799_v2 }
 0x6fa   :  { %v871_v52 = vpop.xlane.xlu0 %870 }
 0x6fb   :  { %v875_v54 = vmul.f32 0.03125, %v871_v52 }
 0x6fc   :  { %v874_v60 = vpop.xlane.xlu1 %873 }
 0x6fd   :  { %v877_v61 = vadd.f32 1e-05, %v875_v54  ;;  %v876_v62 = vmul.f32 0.03125, %v874_v60 }
 0x6ff   :  { %4647 = vrsqrt.f32 %v877_v61  ;;  %v878_v63 = vadd.f32 1e-05, %v876_v62 }
 0x701   :  { %4649 = vrsqrt.f32 %v878_v63 }
 0x709   :  { %v4648_v3 = vpop.eup %4647 }
 0x70a   :  { %v881_v9 = vmul.f32 %v4648_v3, %v865_v29  ;;  %v4586_v29 = vld [vmem:[%s5857_s8 + $0x48] sm:$0xff]  }
 0x70b   :  { %v4650_v13 = vpop.eup %4649 }
 0x70c   :  { %v887_v14 = vmul.f32 %v886_v1, %v881_v9  ;;  %v882_v15 = vmul.f32 %v4650_v13, %v866_v28 }
 0x70e   :  { %v888_v19 = vmul.f32 %v886_v1, %v882_v15  ;;  %v5184_v20 = vadd.f32 %v892_v11, %v887_v14  ;;  %v3836_v14 = vld [vmem:[%s5855_s6] ss:$0 sm:$0xff]  ;;  %s4775_s6 = scalar_lea.vmem %s3825_s3, 256 }
 0x70f   :  { %vm92_vm7 = vcmp.eq.f32.partialorder %v5003_v55, %v3836_v14  ;;  %vm93_vm8 = vcmp.eq.f32.partialorder %v5005_v56, %v3836_v14  ;;  %p4776_p0 = scmp.ne.s32.totalorder %s3825_s3, %s4775_s6  ;;  %p4781_p2 = scmp.lt.s32.totalorder %s4775_s6, %s4775_s6 }
 0x710   :  { %v5186_v21 = vadd.f32 %v892_v11, %v888_v19  ;;  %v895_v23 = vadd.f32 %v5184_v20, %v4909_v6  ;;  %v5207_v6 = vpack.c.bf16 %v5126_v16, %v5121_v17  ;;  %v5219_v17 = vsub.s32 4, %v4911_v7 }
 0x711   :  { %v5272_v15 = vsel %vm92_vm7, 0.0, %v4810_v57  ;;  %p4782_p3 = por %p4781_p2, %p4780_p1 }
 0x712   :  { %v896_v25 = vadd.f32 %v5186_v21, %v4917_v8  ;;  %v901_v16 = vrot.slane %v4924_v10, %v5219_v17 }
 0x713   :  { %p4783_p4 = pnand %p4782_p3, %p4776_p0 }
 0x714   :  { %v897_v26 = vpack.c.bf16 %v896_v25, %v895_v23 }
 0x716   :  { %4197 = vmatmul.mubr.msk.bf16.vlgmr.msra.gmra.mrb[24].mxu1 %vm145_vm1, %v897_v26  ;;  %v5276_v26 = vsel %vm93_vm8, 0.0, %v4810_v57 }
 0x717   :  { %4212 = vmatprep.mubr.msk.bf16.mxu1 %vm145_vm1, %v5201_v30  ;;  %4209 = vmatpush3.bf16.msra.mxu1 %v4585_v27 }
 0x718   :  { %4210 = vmatprep.subr.bf16.mxu1 %v4586_v29 }
 0x71b   :  { %4211 = vmatpush3.bf16.msra.mxu1 %v4586_v29 }
 0x71c   :  { %4224 = vmatprep.subr.bf16.mxu1 %v4799_v2 }
 0x71e   :  { %4213 = vmatmul.mubr.msk.bf16.vlgmr.msra.gmra.mrb[28].mxu1 %vm145_vm1, %v5207_v6 }
 0x71f   :  { %4228 = vmatprep.mubr.msk.bf16.mxu1 %vm4800_vm0, %v4799_v2 }
 0x729   :  { %v1163_v5 = vpop.permute.xlu1 %1162 }
 0x72a   :  { %v1161_v8 = vpop.permute.xlu0 %1160  ;;  %v1171_v28 = vsel %vm273_vm2, %v1163_v5, 0 }
 0x72b   :  { %v1168_v4 = vsel %vm273_vm2, %v1161_v8, 0 }
 0x72c   :  { %4225 = vmatpush3.bf16.xpose.msra.mxu1 %v1168_v4 }
 0x72d   :  { %4226 = vmatprep.subr.bf16.mxu1 %v4799_v2  ;;  %v1217_v38 = vpop.permute.xlu1 %1216 }
 0x72e   :  { %v1273_v40 = vpop.permute.xlu0 %1272  ;;  %v1224_v41 = vsel %vm273_vm2, %v1217_v38, 0 }
 0x72f   :  { %v1280_v3 = vsel %vm273_vm2, %v1273_v40, 0 }
 0x732   :  { %v1219_v10 = vpop.permute.xlu0 %1218 }
 0x733   :  { %v1227_v42 = vsel %vm273_vm2, %v1219_v10, 0 }
 0x734   :  { %4227 = vmatpush3.bf16.xpose.msra.mxu1 %v1171_v28 }
 0x735   :  { %4240 = vmatprep.subr.bf16.mxu1 %v4799_v2 }
 0x7e9   :  { %v951_v31 = vpop.f32.mrb[24].mxu1 }
 0x7ea   :  { %v4198_v32 = vpop.f32.mrb[25].mxu1  ;;  %v952_v34 = vadd.f32 %v951_v31, %v901_v16 }
 0x7eb   :  { %v954_v33 = vpop.f32.mrb[26].mxu1 }
 0x7ec   :  { %v955_v35 = vadd.f32 %v954_v33, %v901_v16  ;;  %v4199_v36 = vpop.f32.mrb[27].mxu1 }
 0x7ee   :  { %v1100_v39 = vpack.c.bf16 %v955_v35, %v952_v34 }
 0x7f0   :  { %1214 = vrot.lane.b32.xlu0 %v1100_v39, %s4808_s14  ;;  %1156 = vrot.lane.b32.xlu1 %v1100_v39, %s4805_s29 }
 0x7f1   :  { %4221 = vmatmul.mubr.msk.bf16.vlgmr.msra.gmra.mrb[24].mxu0 %vm273_vm2, %v1100_v39  ;;  %v4214_v46 = vpop.f32.mrb[28].mxu1 }
 0x7f2   :  { %4233 = vmatpush3.bf16.xpose.msra.mxu0 %v1224_v41  ;;  %4236 = vmatprep.mubr.msk.bf16.mxu0 %vm4800_vm0, %v4799_v2  ;;  %v1085_v49 = vpop.f32.mrb[29].mxu1 }
 0x7f3   :  { %4234 = vmatprep.subr.bf16.mxu0 %v4799_v2  ;;  %v1086_v50 = vadd.f32 %v1085_v49, %v1032_v44  ;;  %v4215_v51 = vpop.f32.mrb[30].mxu1 }
 0x7f4   :  { %1274 = vrot.lane.b32.xlu1 %v5161_v47, %s4809_s17  ;;  %v1094_v47 = vadd.f32 %v4214_v46, %v1032_v44  ;;  %v1097_v52 = vadd.f32 %v4215_v51, %v1032_v44  ;;  %v1088_v54 = vpop.f32.mrb[31].mxu1 }
 0x7f5   :  { %v1089_v60 = vadd.f32 %v1088_v54, %v1032_v44 }
 0x7f6   :  { %v5245_v61 = vpack.c.bf16 %v1097_v52, %v1094_v47 }
 0x7f7   :  { %v5247_v62 = vpack.c.bf16 %v1089_v60, %v1086_v50 }
 0x7f8   :  { %1270 = vrot.lane.b32.xlu1 %v1100_v39, %s4809_s17 }
 0x7fa   :  { %4235 = vmatpush3.bf16.xpose.msra.mxu0 %v1227_v42 }
 0x7fb   :  { %4248 = vmatprep.subr.bf16.mxu0 %v4799_v2 }
 0x862   :  { %v1215_v63 = vpop.permute.xlu0 %1214  ;;  %v1157_v1 = vpop.permute.xlu1 %1156 }
 0x863   :  { %4229 = vmatmul.mubr.msk.bf16.vlgmr.msra.gmra.mrb[32].mxu1 %vm273_vm2, %v1157_v1  ;;  %4237 = vmatmul.mubr.msk.bf16.vlgmr.msra.gmra.mrb[28].mxu0 %vm273_vm2, %v1215_v63 }
 0x864   :  { %4241 = vmatpush3.bf16.xpose.msra.mxu1 %v1280_v3  ;;  %4244 = vmatprep.mubr.msk.bf16.mxu1 %vm4800_vm0, %v4799_v2 }
 0x865   :  { %4242 = vmatprep.subr.bf16.mxu1 %v4799_v2  ;;  %4249 = vmatpush3.bf16.msra.mxu0 %v5247_v62 }
 0x866   :  { %4250 = vmatprep.subr.bf16.mxu0 %v4799_v2  ;;  %4252 = vmatprep.mubr.msk.bf16.mxu0 %vm4800_vm0, %v4799_v2  ;;  %v1275_v9 = vpop.permute.xlu1 %1274 }
 0x867   :  { %v1283_v11 = vsel %vm273_vm2, %v1275_v9, 0 }
 0x869   :  { %4251 = vmatpush3.bf16.msra.mxu0 %v5245_v61 }
 0x86a   :  { %4264 = vmatprep.subr.bf16.mxu0 %v4799_v2  ;;  %v1271_v13 = vpop.permute.xlu1 %1270 }
 0x86c   :  { %4243 = vmatpush3.bf16.xpose.msra.mxu1 %v1283_v11 }
 0x86d   :  { %4256 = vmatprep.subr.bf16.mxu1 %v4799_v2 }
 0x873   :  { %4245 = vmatmul.mubr.msk.bf16.vlgmr.msra.gmra.mrb[36].mxu1 %vm273_vm2, %v1271_v13 }
 0x874   :  { %4260 = vmatprep.mubr.msk.bf16.mxu1 %vm4800_vm0, %v4799_v2 }
 0x8c4   :  { %v1148_v19 = vpop.f32.mrb[24].mxu0 }
 0x8c5   :  { %v1326_v23 = vadd.f32 %v1148_v19, %v5272_v15  ;;  %v4222_v25 = vpop.f32.mrb[25].mxu0 }
 0x8c6   :  { %v1151_v27 = vpop.f32.mrb[26].mxu0 }
 0x8c7   :  { %v1327_v29 = vadd.f32 %v1151_v27, %v5276_v26  ;;  %v4223_v8 = vpop.f32.mrb[27].mxu0  ;;  %v1334_v4 = vsel %vm145_vm1, %v1326_v23, -inf }
 0x8c8   :  { %1335 = vmax.xlane.f32.xlu0 %v1334_v4 }
 0x8c9   :  { %v1337_v55 = vsel %vm145_vm1, %v1327_v29, -inf }
 0x8ca   :  { %1338 = vmax.xlane.f32.xlu1 %v1337_v55 }
 0x936   :  { %v1207_v56 = vpop.f32.mrb[32].mxu1  ;;  %v1263_v5 = vpop.f32.mrb[28].mxu0 }
 0x937   :  { %v1328_v28 = vadd.f32 %v1207_v56, %v5272_v15  ;;  %v1330_v16 = vadd.f32 %v1263_v5, %v5272_v15  ;;  %v4230_v31 = vpop.f32.mrb[33].mxu1  ;;  %v4238_v32 = vpop.f32.mrb[29].mxu0 }
 0x938   :  { %v1210_v57 = vpop.f32.mrb[34].mxu1  ;;  %v1266_v33 = vpop.f32.mrb[30].mxu0 }
 0x939   :  { %v1329_v34 = vadd.f32 %v1210_v57, %v5276_v26  ;;  %v4231_v35 = vpop.f32.mrb[35].mxu1  ;;  %v4239_v36 = vpop.f32.mrb[31].mxu0  ;;  %v1346_v38 = vsel %vm145_vm1, %v1330_v16, -inf  ;;  %v1340_v39 = vsel %vm145_vm1, %v1328_v28, -inf  ;;  %v1331_v40 = vadd.f32 %v1266_v33, %v5276_v26 }
 0x93a   :  { %1347 = vmax.xlane.f32.xlu1 %v1346_v38  ;;  %1341 = vmax.xlane.f32.xlu0 %v1340_v39 }
 0x93b   :  { %v1343_v41 = vsel %vm145_vm1, %v1329_v34, -inf  ;;  %v1349_v10 = vsel %vm145_vm1, %v1331_v40, -inf }
 0x93e   :  { %1344 = vmax.xlane.f32.xlu0 %v1343_v41 }
 0x942   :  { %1350 = vmax.xlane.f32.xlu0 %v1349_v10 }
 0x946   :  { %v1319_v42 = vpop.f32.mrb[36].mxu1 }
 0x947   :  { %v1332_v44 = vadd.f32 %v1319_v42, %v5272_v15  ;;  %v4246_v46 = vpop.f32.mrb[37].mxu1 }
 0x948   :  { %v1322_v47 = vpop.f32.mrb[38].mxu1 }
 0x949   :  { %v1333_v49 = vadd.f32 %v1322_v47, %v5276_v26  ;;  %v4247_v50 = vpop.f32.mrb[39].mxu1  ;;  %v1352_v51 = vsel %vm145_vm1, %v1332_v44, -inf }
 0x94a   :  { %1353 = vmax.xlane.f32.xlu1 %v1352_v51 }
 0x94b   :  { %v1355_v52 = vsel %vm145_vm1, %v1333_v49, -inf }
 0x94c   :  { %1356 = vmax.xlane.f32.xlu0 %v1355_v52 }
 0x955   :  { %v1336_v63 = vpop.xlane.xlu0 %1335 }
 0x956   :  { %v1358_v3 = vsub.f32 %v1326_v23, %v1336_v63 }
 0x957   :  { %v1339_v54 = vpop.xlane.xlu1 %1338 }
 0x958   :  { %v1359_v60 = vsub.f32 %v1327_v29, %v1339_v54  ;;  %v1366_v9 = vmul.f32 1.442695, %v1358_v3 }
 0x95a   :  { %v1368_v1 = vmul.f32 1.442695, %v1359_v60 }
 0x95b   :  { %1472 = vrot.lane.b32.xlu1 %v5247_v62, %s4805_s29 }
 0x95c   :  { %4651 = vpow2.f32 %v1368_v1 }
 0x95d   :  { %4653 = vpow2.f32 %v1366_v9 }
 0x95f   :  { %1522 = vrot.lane.b32.xlu1 %v5247_v62, %s4808_s14 }
 0x962   :  { %1474 = vrot.lane.b32.xlu0 %v5245_v61, %s4805_s29 }
 0x963   :  { %1572 = vrot.lane.b32.xlu1 %v5247_v62, %s4809_s17 }
 0x966   :  { %v5301_v11 = vpop.eup %4651 }
 0x967   :  { %v1385_v13 = vsel %vm145_vm1, %v5301_v11, 0.0  ;;  %v4654_v14 = vpop.eup %4653 }
 0x968   :  { %v1382_v19 = vsel %vm145_vm1, %v4654_v14, 0.0 }
 0x981   :  { %1386 = vadd.xlane.f32.xlu0 %v1385_v13 }
 0x987   :  { %1383 = vadd.xlane.f32.xlu1 %v1382_v19 }
 0x9c7   :  { %v1348_v25 = vpop.xlane.xlu1 %1347  ;;  %v1342_v62 = vpop.xlane.xlu0 %1341 }
 0x9c8   :  { %v1362_v27 = vsub.f32 %v1330_v16, %v1348_v25  ;;  %v1360_v29 = vsub.f32 %v1328_v28, %v1342_v62 }
 0x9ca   :  { %v1370_v8 = vmul.f32 1.442695, %v1360_v29  ;;  %v1374_v4 = vmul.f32 1.442695, %v1362_v27 }
 0x9cb   :  { %v1345_v23 = vpop.xlane.xlu0 %1344 }
 0x9cc   :  { %v1361_v55 = vsub.f32 %v1329_v34, %v1345_v23  ;;  %4655 = vpow2.f32 %v1370_v8 }
 0x9cd   :  { %4657 = vpow2.f32 %v1374_v4 }
 0x9ce   :  { %v1372_v56 = vmul.f32 1.442695, %v1361_v55 }
 0x9cf   :  { %v1351_v5 = vpop.xlane.xlu0 %1350 }
 0x9d0   :  { %4659 = vpow2.f32 %v1372_v56  ;;  %v1363_v31 = vsub.f32 %v1331_v40, %v1351_v5 }
 0x9d2   :  { %v1376_v32 = vmul.f32 1.442695, %v1363_v31 }
 0x9d4   :  { %4661 = vpow2.f32 %v1376_v32 }
 0x9d6   :  { %v4656_v57 = vpop.eup %4655 }
 0x9d7   :  { %v1354_v33 = vpop.xlane.xlu1 %1353  ;;  %v1388_v36 = vsel %vm145_vm1, %v4656_v57, 0.0  ;;  %v5307_v38 = vpop.eup %4657 }
 0x9d8   :  { %v1364_v35 = vsub.f32 %v1332_v44, %v1354_v33  ;;  %1389 = vadd.xlane.f32.xlu1 %v1388_v36  ;;  %v1394_v40 = vsel %vm145_vm1, %v5307_v38, 0.0 }
 0x9d9   :  { %v1357_v28 = vpop.xlane.xlu0 %1356 }
 0x9da   :  { %v4660_v16 = vpop.eup %4659  ;;  %v1378_v39 = vmul.f32 1.442695, %v1364_v35  ;;  %v1365_v34 = vsub.f32 %v1333_v49, %v1357_v28 }
 0x9db   :  { %v1473_v41 = vpop.permute.xlu1 %1472  ;;  %v1391_v10 = vsel %vm145_vm1, %v4660_v16, 0.0 }
 0x9dc   :  { %4663 = vpow2.f32 %v1378_v39  ;;  %v1380_v42 = vmul.f32 1.442695, %v1365_v34  ;;  %4257 = vmatpush3.bf16.msra.mxu1 %v1473_v41  ;;  %1392 = vadd.xlane.f32.xlu0 %v1391_v10 }
 0x9dd   :  { %1395 = vadd.xlane.f32.xlu1 %v1394_v40  ;;  %4258 = vmatprep.subr.bf16.mxu1 %v4799_v2  ;;  %v1475_v46 = vpop.permute.xlu0 %1474 }
 0x9de   :  { %v4662_v44 = vpop.eup %4661  ;;  %4665 = vpow2.f32 %v1380_v42 }
 0x9df   :  { %v1397_v47 = vsel %vm145_vm1, %v4662_v44, 0.0  ;;  %v1523_v54 = vpop.permute.xlu1 %1522 }
 0x9e0   :  { %4259 = vmatpush3.bf16.msra.mxu1 %v1475_v46  ;;  %1398 = vadd.xlane.f32.xlu0 %v1397_v47  ;;  %v4587_v46 = vld [vmem:[%s5857_s8 + $0x50] sm:$0xff]  }
 0x9e1   :  { %4272 = vmatprep.subr.bf16.mxu1 %v4799_v2 }
 0x9e3   :  { %v1573_v60 = vpop.permute.xlu1 %1572 }
 0x9e6   :  { %v4664_v49 = vpop.eup %4663 }
 0x9e7   :  { %v1400_v50 = vsel %vm145_vm1, %v4664_v49, 0.0 }
 0x9e8   :  { %v4666_v51 = vpop.eup %4665  ;;  %1401 = vadd.xlane.f32.xlu1 %v1400_v50 }
 0x9e9   :  { %v1403_v52 = vsel %vm145_vm1, %v4666_v51, 0.0 }
 0x9ea   :  { %1404 = vadd.xlane.f32.xlu0 %v1403_v52 }
 0x9f9   :  { %1574 = vrot.lane.b32.xlu1 %v5245_v61, %s4809_s17 }
 0xa00   :  { %1524 = vrot.lane.b32.xlu0 %v5245_v61, %s4808_s14 }
 0xa0e   :  { %v1387_v63 = vpop.xlane.xlu0 %1386 }
 0xa0f   :  { %4667 = vrcp.f32 %v1387_v63 }
 0xa14   :  { %v1384_v1 = vpop.xlane.xlu1 %1383 }
 0xa15   :  { %4669 = vrcp.f32 %v1384_v1 }
 0xa19   :  { %v4668_v3 = vpop.eup %4667 }
 0xa1a   :  { %v1415_v13 = vmul.f32 %v4668_v3, %v5301_v11 }
 0xa1f   :  { %v4670_v9 = vpop.eup %4669 }
 0xa20   :  { %v1414_v19 = vmul.f32 %v4670_v9, %v4654_v14 }
 0xa22   :  { %v1422_v25 = vpack.c.bf16 %v1415_v13, %v1414_v19 }
 0xa24   :  { %4253 = vmatmul.mubr.msk.bf16.vlgmr.msra.gmra.mrb[32].mxu0 %vm145_vm1, %v1422_v25 }
 0xa25   :  { %4265 = vmatpush3.bf16.msra.mxu0 %v1523_v54  ;;  %4268 = vmatprep.mubr.msk.bf16.mxu0 %vm4800_vm0, %v4799_v2 }
 0xa26   :  { %4266 = vmatprep.subr.bf16.mxu0 %v4799_v2 }
 0xa65   :  { %v1390_v61 = vpop.xlane.xlu1 %1389 }
 0xa66   :  { %4671 = vrcp.f32 %v1390_v61 }
 0xa69   :  { %v1393_v62 = vpop.xlane.xlu0 %1392 }
 0xa6a   :  { %4673 = vrcp.f32 %v1393_v62  ;;  %v1396_v27 = vpop.xlane.xlu1 %1395 }
 0xa6b   :  { %4675 = vrcp.f32 %v1396_v27 }
 0xa6d   :  { %v1399_v29 = vpop.xlane.xlu0 %1398 }
 0xa6e   :  { %4677 = vrcp.f32 %v1399_v29 }
 0xa70   :  { %v4672_v8 = vpop.eup %4671 }
 0xa71   :  { %v1416_v14 = vmul.f32 %v4672_v8, %v4656_v57 }
 0xa74   :  { %v4674_v11 = vpop.eup %4673 }
 0xa75   :  { %v1417_v4 = vmul.f32 %v4674_v11, %v4660_v16  ;;  %v1402_v23 = vpop.xlane.xlu1 %1401  ;;  %v4676_v55 = vpop.eup %4675 }
 0xa76   :  { %4679 = vrcp.f32 %v1402_v23  ;;  %v1418_v32 = vmul.f32 %v4676_v55, %v5307_v38 }
 0xa77   :  { %v1405_v56 = vpop.xlane.xlu0 %1404  ;;  %v1423_v5 = vpack.c.bf16 %v1417_v4, %v1416_v14 }
 0xa78   :  { %v4678_v31 = vpop.eup %4677  ;;  %4681 = vrcp.f32 %v1405_v56 }
 0xa79   :  { %v1419_v33 = vmul.f32 %v4678_v31, %v4662_v44  ;;  %4261 = vmatmul.mubr.msk.bf16.vlgmr.msra.gmra.mrb[40].mxu1 %vm145_vm1, %v1423_v5  ;;  %v1575_v36 = vpop.permute.xlu1 %1574 }
 0xa7a   :  { %4273 = vmatpush3.bf16.msra.mxu1 %v1573_v60  ;;  %4276 = vmatprep.mubr.msk.bf16.mxu1 %vm4800_vm0, %v4799_v2  ;;  %v4588_v60 = vld [vmem:[%s5857_s8 + $0x58] sm:$0xff]  }
 0xa7b   :  { %v1525_v35 = vpop.permute.xlu0 %1524  ;;  %4274 = vmatprep.subr.bf16.mxu1 %v4799_v2  ;;  %v1424_v57 = vpack.c.bf16 %v1419_v33, %v1418_v32 }
 0xa7c   :  { %4267 = vmatpush3.bf16.msra.mxu0 %v1525_v35 }
 0xa7d   :  { %4280 = vmatprep.subr.bf16.mxu0 %v4799_v2 }
 0xa7e   :  { %4275 = vmatpush3.bf16.msra.mxu1 %v1575_v36  ;;  %v5360_v36 = vsub.s32 7, %v4911_v7 }
 0xa7f   :  { %4269 = vmatmul.mubr.msk.bf16.vlgmr.msra.gmra.mrb[36].mxu0 %vm145_vm1, %v1424_v57  ;;  %4288 = vmatprep.subr.bf16.mxu1 %v4799_v2 }
 0xa80   :  { %v4680_v38 = vpop.eup %4679  ;;  %4284 = vmatprep.mubr.msk.bf16.mxu0 %vm4800_vm0, %v4799_v2  ;;  %4281 = vmatpush3.bf16.msra.mxu0 %v4587_v46 }
 0xa81   :  { %v1420_v16 = vmul.f32 %v4680_v38, %v4664_v49  ;;  %4282 = vmatprep.subr.bf16.mxu0 %v4799_v2  ;;  %v1656_v38 = vrot.slane %v5241_v53, %v5360_v36 }
 0xa82   :  { %v4682_v28 = vpop.eup %4681 }
 0xa83   :  { %v1421_v39 = vmul.f32 %v4682_v28, %v4666_v51 }
 0xa84   :  { %4283 = vmatpush3.bf16.msra.mxu0 %v4588_v60 }
 0xa85   :  { %v1425_v34 = vpack.c.bf16 %v1421_v39, %v1420_v16  ;;  %4296 = vmatprep.subr.bf16.mxu0 %v4799_v2 }
 0xa87   :  { %4277 = vmatmul.mubr.msk.bf16.vlgmr.msra.gmra.mrb[44].mxu1 %vm145_vm1, %v1425_v34 }
 0xa88   :  { %4292 = vmatprep.mubr.msk.bf16.mxu1 %vm4800_vm0, %v4799_v2 }
 0xaf7   :  { %v1463_v41 = vpop.f32.mrb[32].mxu0 }
 0xaf8   :  { %v4254_v10 = vpop.f32.mrb[33].mxu0 }
 0xaf9   :  { %v1466_v42 = vpop.f32.mrb[34].mxu0 }
 0xafa   :  { %v4255_v40 = vpop.f32.mrb[35].mxu0 }
 0xb4c   :  { %v1515_v44 = vpop.f32.mrb[40].mxu1 }
 0xb4d   :  { %v4262_v47 = vpop.f32.mrb[41].mxu1 }
 0xb4e   :  { %v1518_v50 = vpop.f32.mrb[42].mxu1 }
 0xb4f   :  { %v4530_v49 = vpack.i.bf16 %v1518_v50, %v1515_v44  ;;  %v4263_v51 = vpop.f32.mrb[43].mxu1 }
 0xb51   :  { %4531 = vrot.lane.b32.xlu0 %v4530_v49, %s4811_s5 }
 0xb52   :  { %v1565_v52 = vpop.f32.mrb[36].mxu0 }
 0xb53   :  { %v4270_v54 = vpop.f32.mrb[37].mxu0 }
 0xb54   :  { %v1568_v63 = vpop.f32.mrb[38].mxu0 }
 0xb55   :  { %v4535_v1 = vpack.i.bf16 %v1568_v63, %v1565_v52  ;;  %v4271_v3 = vpop.f32.mrb[39].mxu0  ;;  %v4590_v63 = vld [vmem:[%s5858_s9 + $0x8] sm:$0xff]  }
 0xb56   :  { %v4592_v3 = vld [vmem:[%s5859_s10 + $0x8] sm:$0xff]  }
 0xb57   :  { %4536 = vrot.lane.b32.xlu1 %v4535_v1, %s4812_s25  ;;  %v4591_v1 = vld [vmem:[%s5859_s10] sm:$0xff]  }
 0xb5a   :  { %v1615_v9 = vpop.f32.mrb[44].mxu1 }
 0xb5b   :  { %v4278_v13 = vpop.f32.mrb[45].mxu1 }
 0xb5c   :  { %v1618_v19 = vpop.f32.mrb[46].mxu1 }
 0xb5d   :  { %v4540_v25 = vpack.i.bf16 %v1618_v19, %v1615_v9  ;;  %v4279_v61 = vpop.f32.mrb[47].mxu1 }
 0xb5f   :  { %4541 = vrot.lane.b32.xlu0 %v4540_v25, %s4813_s15 }
 0xbc3   :  { %v4532_v62 = vpop.permute.xlu0 %4531 }
 0xbc4   :  { %v4534_v29 = vunpack.i.h.bf16 %v4532_v62  ;;  %v4533_v8 = vunpack.i.l.bf16 %v4532_v62 }
 0xbc6   :  { %v1646_v23 = vsel %vm273_vm2, %v1463_v41, %v4533_v8  ;;  %v1647_v55 = vsel %vm273_vm2, %v1466_v42, %v4534_v29 }
 0xbc9   :  { %v4537_v27 = vpop.permute.xlu1 %4536 }
 0xbca   :  { %v4539_v11 = vunpack.i.h.bf16 %v4537_v27  ;;  %v4538_v14 = vunpack.i.l.bf16 %v4537_v27  ;;  %v1744_v27 = vrot.slane %v5178_v0, %v5086_v48 }
 0xbcc   :  { %v1649_v31 = vsel %vm483_vm5, %v1647_v55, %v4539_v11  ;;  %v1648_v32 = vsel %vm483_vm5, %v1646_v23, %v4538_v14  ;;  %v1750_v23 = vrot.slane %v5178_v0, %v5219_v17 }
 0xbd1   :  { %v4542_v4 = vpop.permute.xlu0 %4541 }
 0xbd2   :  { %v4544_v56 = vunpack.i.h.bf16 %v4542_v4  ;;  %v4543_v5 = vunpack.i.l.bf16 %v4542_v4 }
 0xbd4   :  { %v1650_v33 = vsel %vm790_vm6, %v1648_v32, %v4543_v5  ;;  %v1651_v35 = vsel %vm790_vm6, %v1649_v31, %v4544_v56  ;;  %v4593_v32 = vld [vmem:[%s5859_s10 + $0x10] sm:$0xff]  }
 0xbd5   :  { %v1652_v57 = vpack.c.bf16 %v1651_v35, %v1650_v33  ;;  %v4594_v33 = vld [vmem:[%s5859_s10 + $0x18] sm:$0xff]   ;;  %v3876_v35 = vld [vmem:[%s5860_s11] ss:$0 sm:$0xff] }
 0xbd7   :  { %4285 = vmatmul.mubr.msk.bf16.vlgmr.msra.gmra.mrb[40].mxu0 %vm145_vm1, %v1652_v57 }
 0xbd8   :  { %4304 = vmatprep.mubr.msk.bf16.mxu0 %vm4800_vm0, %v4799_v2  ;;  %4297 = vmatpush3.bf16.msra.mxu0 %v4591_v1 }
 0xbd9   :  { %4298 = vmatprep.subr.bf16.mxu0 %v4799_v2 }
 0xbdc   :  { %4299 = vmatpush3.bf16.msra.mxu0 %v4592_v3 }
 0xbdd   :  { %4300 = vmatprep.subr.bf16.mxu0 %v4799_v2 }
 0xbe0   :  { %4301 = vmatpush3.bf16.msra.mxu0 %v4593_v32 }
 0xbe1   :  { %4302 = vmatprep.subr.bf16.mxu0 %v4799_v2 }
 0xbe4   :  { %4303 = vmatpush3.bf16.msra.mxu0 %v4594_v33 }
 0xbe5   :  { %4324 = vmatprep.subr.bf16.mxu0 %v4799_v2 }
 0xcaa   :  { %v1706_v28 = vpop.f32.mrb[40].mxu0 }
 0xcab   :  { %v1707_v16 = vadd.f32 %v1706_v28, %v1656_v38  ;;  %v4286_v39 = vpop.f32.mrb[41].mxu0 }
 0xcac   :  { %v1709_v34 = vpop.f32.mrb[42].mxu0 }
 0xcad   :  { %v1710_v41 = vadd.f32 %v1709_v34, %v1656_v38  ;;  %v4287_v10 = vpop.f32.mrb[43].mxu0  ;;  %v1713_v42 = vadd.f32 %v1707_v16, %v5184_v20 }
 0xcaf   :  { %v1715_v40 = vsel %vm145_vm1, %v1713_v42, 0.0  ;;  %v1714_v44 = vadd.f32 %v1710_v41, %v5186_v21  ;;  %v4589_v21 = vld [vmem:[%s5858_s9] sm:$0xff]  }
 0xcb0   :  { %1716 = vadd.xlane.f32.xlu1 %v1715_v40  ;;  %4289 = vmatpush3.bf16.msra.mxu1 %v4589_v21  ;;  %v1835_v40 = vrot.slane %v5178_v0, %v4952_v18 }
 0xcb1   :  { %v1718_v46 = vsel %vm145_vm1, %v1714_v44, 0.0  ;;  %4290 = vmatprep.subr.bf16.mxu1 %v4799_v2 }
 0xcb2   :  { %1719 = vadd.xlane.f32.xlu0 %v1718_v46 }
 0xcb4   :  { %4291 = vmatpush3.bf16.msra.mxu1 %v4590_v63 }
 0xcb5   :  { %4308 = vmatprep.subr.bf16.mxu1 %v4799_v2 }
 0xd3d   :  { %v1717_v7 = vpop.xlane.xlu1 %1716 }
 0xd3e   :  { %v1721_v47 = vmul.f32 0.03125, %v1717_v7 }
 0xd3f   :  { %v1720_v50 = vpop.xlane.xlu0 %1719 }
 0xd40   :  { %v1723_v53 = vsub.f32 %v1713_v42, %v1721_v47  ;;  %v1722_v49 = vmul.f32 0.03125, %v1720_v50 }
 0xd42   :  { %v1724_v51 = vsub.f32 %v1714_v44, %v1722_v49  ;;  %v1725_v52 = vmul.f32 %v1723_v53, %v1723_v53 }
 0xd44   :  { %v1727_v54 = vsel %vm145_vm1, %v1725_v52, 0.0  ;;  %v1726_v60 = vmul.f32 %v1724_v51, %v1724_v51 }
 0xd45   :  { %1728 = vadd.xlane.f32.xlu0 %v1727_v54 }
 0xd46   :  { %v1730_v20 = vsel %vm145_vm1, %v1726_v60, 0.0 }
 0xd47   :  { %1731 = vadd.xlane.f32.xlu1 %v1730_v20 }
 0xdd2   :  { %v1729_v9 = vpop.xlane.xlu0 %1728 }
 0xdd3   :  { %v1733_v13 = vmul.f32 0.03125, %v1729_v9 }
 0xdd4   :  { %v1732_v19 = vpop.xlane.xlu1 %1731 }
 0xdd5   :  { %v1735_v25 = vadd.f32 1e-05, %v1733_v13  ;;  %v1734_v61 = vmul.f32 0.03125, %v1732_v19 }
 0xdd7   :  { %4683 = vrsqrt.f32 %v1735_v25  ;;  %v1736_v62 = vadd.f32 1e-05, %v1734_v61  ;;  %v4595_v61 = vld [vmem:[%s5856_s7 + $0x10] sm:$0xff]  }
 0xdd9   :  { %4685 = vrsqrt.f32 %v1736_v62  ;;  %v4596_v62 = vld [vmem:[%s5856_s7 + $0x18] sm:$0xff]  }
 0xde1   :  { %v4684_v29 = vpop.eup %4683 }
 0xde2   :  { %v1739_v8 = vmul.f32 %v4684_v29, %v1723_v53 }
 0xde3   :  { %v4686_v11 = vpop.eup %4685 }
 0xde4   :  { %v1745_v14 = vmul.f32 %v1744_v27, %v1739_v8  ;;  %v1740_v4 = vmul.f32 %v4686_v11, %v1724_v51 }
 0xde6   :  { %v1746_v55 = vmul.f32 %v1744_v27, %v1740_v4  ;;  %v1751_v56 = vadd.f32 %v1750_v23, %v1745_v14  ;;  %v5424_v27 = vld [vmem:[%s5861_s12 + $0x18] sm:$0xff] }
 0xde7   :  { %v2047_v29 = vrot.slane %v5424_v27, %v4931_v12 }
 0xde8   :  { %v1752_v5 = vadd.f32 %v1750_v23, %v1746_v55 }
 0xdea   :  { %v1753_v31 = vpack.c.bf16 %v1752_v5, %v1751_v56 }
 0xdec   :  { %4293 = vmatmul.mubr.msk.bf16.vlgmr.msra.gmra.mrb[48].mxu1 %vm145_vm1, %v1753_v31  ;;  %v1942_v31 = vrot.slane %v5178_v0, %v5236_v43 }
 0xded   :  { %4312 = vmatprep.mubr.msk.bf16.mxu1 %vm4800_vm0, %v4799_v2  ;;  %4309 = vmatpush3.bf16.msra.mxu1 %v4595_v61 }
 0xdee   :  { %4310 = vmatprep.subr.bf16.mxu1 %v4799_v2 }
 0xdf1   :  { %4311 = vmatpush3.bf16.msra.mxu1 %v4596_v62 }
 0xdf2   :  { %4316 = vmatprep.subr.bf16.mxu1 %v4799_v2 }
 0xebf   :  { %v1814_v57 = vpop.f32.mrb[48].mxu1 }
 0xec0   :  { %v1815_v38 = vadd.f32 %v3876_v35, %v1814_v57  ;;  %v4294_v28 = vpop.f32.mrb[49].mxu1 }
 0xec1   :  { %v1817_v16 = vpop.f32.mrb[50].mxu1 }
 0xec2   :  { %v1818_v39 = vadd.f32 %v3876_v35, %v1817_v16  ;;  %v4295_v34 = vpop.f32.mrb[51].mxu1  ;;  %v1821_v41 = vmax.f32 %v1815_v38, 0.0 }
 0xec4   :  { %v1822_v10 = vmax.f32 %v1818_v39, 0.0  ;;  %v5440_v39 = vld [vmem:[%s5851_s2] sm:$0xff] }
 0xec6   :  { %v1823_v42 = vpack.c.bf16 %v1822_v10, %v1821_v41  ;;  %v4597_v10 = vld [vmem:[%s5857_s8 + $0x60] sm:$0xff]  }
 0xec8   :  { %4305 = vmatmul.mubr.msk.bf16.vlgmr.msra.gmra.mrb[44].mxu0 %vm1860_vm9, %v1823_v42 }
 0xec9   :  { %4326 = vmatprep.mubr.msk.bf16.mxu0 %vm4800_vm0, %v4799_v2 }
 0xf9b   :  { %v1898_v44 = vpop.f32.mrb[44].mxu0 }
 0xf9c   :  { %v1899_v46 = vadd.f32 %v1898_v44, %v1835_v40  ;;  %v4306_v7 = vpop.f32.mrb[45].mxu0 }
 0xf9d   :  { %v1901_v47 = vpop.f32.mrb[46].mxu0 }
 0xf9e   :  { %v1902_v50 = vadd.f32 %v1901_v47, %v1835_v40  ;;  %v4307_v53 = vpop.f32.mrb[47].mxu0  ;;  %v1905_v49 = vadd.f32 %v1899_v46, %v1751_v56  ;;  %v1936_v56 = vrot.slane %v5178_v0, %v5157_v37  ;;  %v5447_v0 = vld [vmem:[%s5851_s2 + $0x8] sm:$0xff]  ;;  %v2041_v46 = vrot.slane %v5424_v27, %v4952_v18  ;;  %s5864_s2 = smov 88  }
 0xf9f   :  { %v4598_v40 = vld [vmem:[%s5857_s8 + $0x68] sm:$0xff]  }
 0xfa0   :  { %v1907_v51 = vsel %vm145_vm1, %v1905_v49, 0.0  ;;  %v1906_v52 = vadd.f32 %v1902_v50, %v1752_v5 }
 0xfa1   :  { %1908 = vadd.xlane.f32.xlu0 %v1907_v51 }
 0xfa2   :  { %v1910_v54 = vsel %vm145_vm1, %v1906_v52, 0.0 }
 0xfa3   :  { %1911 = vadd.xlane.f32.xlu1 %v1910_v54 }
0x102e   :  { %v1909_v60 = vpop.xlane.xlu0 %1908 }
0x102f   :  { %v1913_v20 = vmul.f32 0.03125, %v1909_v60 }
0x1030   :  { %v1912_v21 = vpop.xlane.xlu1 %1911 }
0x1031   :  { %v1915_v63 = vsub.f32 %v1905_v49, %v1913_v20  ;;  %v1914_v1 = vmul.f32 0.03125, %v1912_v21 }
0x1033   :  { %v1916_v3 = vsub.f32 %v1906_v52, %v1914_v1  ;;  %v1917_v9 = vmul.f32 %v1915_v63, %v1915_v63 }
0x1035   :  { %v1919_v13 = vsel %vm145_vm1, %v1917_v9, 0.0  ;;  %v1918_v19 = vmul.f32 %v1916_v3, %v1916_v3 }
0x1036   :  { %1920 = vadd.xlane.f32.xlu0 %v1919_v13 }
0x1037   :  { %v1922_v25 = vsel %vm145_vm1, %v1918_v19, 0.0 }
0x1038   :  { %1923 = vadd.xlane.f32.xlu1 %v1922_v25 }
0x104c   :  { %2049 = vrot.lane.b32.xlu0 %v2047_v29, %s4801_s21 }
0x10c3   :  { %v1921_v8 = vpop.xlane.xlu0 %1920 }
0x10c4   :  { %v1925_v11 = vmul.f32 0.03125, %v1921_v8 }
0x10c5   :  { %v1924_v14 = vpop.xlane.xlu1 %1923 }
0x10c6   :  { %v1927_v4 = vadd.f32 1e-05, %v1925_v11  ;;  %v1926_v23 = vmul.f32 0.03125, %v1924_v14 }
0x10c7   :  { %v2050_v7 = vpop.permute.xlu0 %2049 }
0x10c8   :  { %4687 = vrsqrt.f32 %v1927_v4  ;;  %v1928_v55 = vadd.f32 1e-05, %v1926_v23 }
0x10ca   :  { %4689 = vrsqrt.f32 %v1928_v55 }
0x10d2   :  { %v4688_v5 = vpop.eup %4687 }
0x10d3   :  { %v1931_v32 = vmul.f32 %v4688_v5, %v1915_v63  ;;  %v2058_v63 = vrot.slane %v5424_v27, %v4992_v45 }
0x10d4   :  { %v4690_v33 = vpop.eup %4689 }
0x10d5   :  { %v1937_v35 = vmul.f32 %v1936_v56, %v1931_v32  ;;  %v1932_v57 = vmul.f32 %v4690_v33, %v1916_v3 }
0x10d7   :  { %v5433_v38 = vadd.f32 %v1942_v31, %v1937_v35  ;;  %v1938_v28 = vmul.f32 %v1936_v56, %v1932_v57 }
0x10d9   :  { %v5435_v16 = vadd.f32 %v1942_v31, %v1938_v28  ;;  %v1979_v34 = vadd.f32 %v5440_v39, %v5433_v38 }
0x10db   :  { %v1980_v41 = vadd.f32 %v5447_v0, %v5435_v16  ;;  %v2054_v44 = vpack.c.bf16 %v5435_v16, %v5433_v38 }
0x10dd   :  { %v1981_v42 = vpack.c.bf16 %v1980_v41, %v1979_v34 }
0x10df   :  { %4313 = vmatmul.mubr.msk.bf16.vlgmr.msra.gmra.mrb[52].mxu1 %vm145_vm1, %v1981_v42 }
0x10e0   :  { %4317 = vmatpush3.bf16.msra.mxu1 %v4597_v10  ;;  %4320 = vmatprep.mubr.msk.bf16.mxu1 %vm4800_vm0, %v4799_v2 }
0x10e1   :  { %4318 = vmatprep.subr.bf16.mxu1 %v4799_v2 }
0x10e4   :  { %4319 = vmatpush3.bf16.msra.mxu1 %v4598_v40 }
0x10e5   :  { %4330 = vmatprep.subr.bf16.mxu1 %v4799_v2 }
0x10e7   :  { %4321 = vmatmul.mubr.msk.bf16.vlgmr.msra.gmra.mrb[56].mxu1 %vm145_vm1, %v2054_v44 }
0x10e8   :  { %4332 = vmatprep.mubr.msk.bf16.mxu1 %vm4800_vm0, %v4799_v2 }
0x11b2   :  { %v2031_v47 = vpop.f32.mrb[52].mxu1 }
0x11b3   :  { %v4314_v50 = vpop.f32.mrb[53].mxu1  ;;  %v2042_v49 = vadd.f32 %v2041_v46, %v2031_v47  ;;  %v2052_v51 = vadd.f32 %v2050_v7, %v2031_v47 }
0x11b4   :  { %v2034_v53 = vpop.f32.mrb[54].mxu1 }
0x11b5   :  { %v2043_v52 = vadd.f32 %v2041_v46, %v2034_v53  ;;  %v2053_v54 = vadd.f32 %v2050_v7, %v2034_v53  ;;  %v4315_v60 = vpop.f32.mrb[55].mxu1 }
0x11b7   :  { %v2115_v20 = vpack.c.bf16 %v2043_v52, %v2042_v49  ;;  %v2116_v21 = vpack.c.bf16 %v2053_v54, %v2052_v51 }
0x11b9   :  { %2222 = vrot.lane.b32.xlu0 %v2116_v21, %s4804_s28  ;;  %2119 = vrot.lane.b32.xlu1 %v2116_v21, %s4803_s27 }
0x11ba   :  { %v2108_v1 = vpop.f32.mrb[56].mxu1 }
0x11bb   :  { %v4322_v3 = vpop.f32.mrb[57].mxu1  ;;  %v2109_v13 = vadd.f32 %v2108_v1, %v2058_v63 }
0x11bc   :  { %v2111_v9 = vpop.f32.mrb[58].mxu1 }
0x11bd   :  { %v2112_v19 = vadd.f32 %v2111_v9, %v2058_v63  ;;  %2273 = vrot.lane.b32.xlu0 %v2116_v21, %s4807_s30  ;;  %2171 = vrot.lane.b32.xlu1 %v2116_v21, %s5864_s2  ;;  %v4323_v25 = vpop.f32.mrb[59].mxu1 }
0x11bf   :  { %v5475_v61 = vpack.c.bf16 %v2112_v19, %v2109_v13 }
0x11c1   :  { %2271 = vrot.lane.b32.xlu0 %v2115_v20, %s4809_s17  ;;  %2169 = vrot.lane.b32.xlu1 %v2115_v20, %s4805_s29 }
0x11c5   :  { %2220 = vrot.lane.b32.xlu1 %v2115_v20, %s4808_s14 }
0x122b   :  { %v2120_v62 = vpop.permute.xlu1 %2119  ;;  %v2223_v8 = vpop.permute.xlu0 %2222 }
0x122c   :  { %v2125_v29 = vsel %vm273_vm2, %v2120_v62, 0  ;;  %v2228_v4 = vsel %vm273_vm2, %v2223_v8, 0 }
0x122d   :  { %4325 = vmatpush3.bf16.xpose.msra.mxu0 %v2125_v29 }
0x122e   :  { %4336 = vmatprep.subr.bf16.mxu0 %v4799_v2 }
0x122f   :  { %v2172_v11 = vpop.permute.xlu1 %2171  ;;  %v2274_v23 = vpop.permute.xlu0 %2273 }
0x1230   :  { %v2177_v14 = vsel %vm273_vm2, %v2172_v11, 0  ;;  %v2279_v56 = vsel %vm273_vm2, %v2274_v23, 0 }
0x1231   :  { %4331 = vmatpush3.bf16.xpose.msra.mxu1 %v2177_v14 }
0x1232   :  { %4342 = vmatprep.subr.bf16.mxu1 %v4799_v2 }
0x1233   :  { %v2170_v55 = vpop.permute.xlu1 %2169  ;;  %v2272_v31 = vpop.permute.xlu0 %2271 }
0x1234   :  { %4327 = vmatmul.mubr.msk.bf16.vlgmr.msra.gmra.mrb[48].mxu0 %vm273_vm2, %v2115_v20 }
0x1235   :  { %4337 = vmatpush3.bf16.xpose.msra.mxu0 %v2228_v4  ;;  %4338 = vmatprep.mubr.msk.bf16.mxu0 %vm4800_vm0, %v4799_v2 }
0x1236   :  { %4348 = vmatprep.subr.bf16.mxu0 %v4799_v2 }
0x1237   :  { %v2221_v5 = vpop.permute.xlu1 %2220 }
0x1238   :  { %4333 = vmatmul.mubr.msk.bf16.vlgmr.msra.gmra.mrb[60].mxu1 %vm273_vm2, %v2170_v55 }
0x1239   :  { %4343 = vmatpush3.bf16.xpose.msra.mxu1 %v2279_v56  ;;  %4344 = vmatprep.mubr.msk.bf16.mxu1 %vm4800_vm0, %v4799_v2 }
0x123a   :  { %4354 = vmatprep.subr.bf16.mxu1 %v4799_v2 }
0x123c   :  { %4339 = vmatmul.mubr.msk.bf16.vlgmr.msra.gmra.mrb[52].mxu0 %vm273_vm2, %v2221_v5 }
0x123d   :  { %4349 = vmatpush3.bf16.msra.mxu0 %v5475_v61  ;;  %4350 = vmatprep.mubr.msk.bf16.mxu0 %vm4800_vm0, %v4799_v2 }
0x123e   :  { %4360 = vmatprep.subr.bf16.mxu0 %v4799_v2 }
0x1240   :  { %4345 = vmatmul.mubr.msk.bf16.vlgmr.msra.gmra.mrb[64].mxu1 %vm273_vm2, %v2272_v31 }
0x1241   :  { %4356 = vmatprep.mubr.msk.bf16.mxu1 %vm4800_vm0, %v4799_v2 }
0x1307   :  { %v2161_v32 = vpop.f32.mrb[48].mxu0 }
0x1308   :  { %v2322_v33 = vadd.f32 %v2161_v32, %v5010_v58  ;;  %v4328_v35 = vpop.f32.mrb[49].mxu0 }
0x1309   :  { %v2164_v57 = vpop.f32.mrb[50].mxu0 }
0x130a   :  { %v2323_v28 = vadd.f32 %v2164_v57, %v5013_v59  ;;  %v4329_v34 = vpop.f32.mrb[51].mxu0  ;;  %v2330_v41 = vsel %vm483_vm5, %v2322_v33, -inf }
0x130b   :  { %v2213_v10 = vpop.f32.mrb[60].mxu1  ;;  %2331 = vmax.xlane.f32.xlu1 %v2330_v41 }
0x130c   :  { %v2324_v42 = vadd.f32 %v2213_v10, %v5010_v58  ;;  %v4334_v40 = vpop.f32.mrb[61].mxu1  ;;  %v2333_v44 = vsel %vm483_vm5, %v2323_v28, -inf }
0x130d   :  { %v2216_v46 = vpop.f32.mrb[62].mxu1  ;;  %2334 = vmax.xlane.f32.xlu0 %v2333_v44 }
0x130e   :  { %v2325_v7 = vadd.f32 %v2216_v46, %v5013_v59  ;;  %v4335_v47 = vpop.f32.mrb[63].mxu1  ;;  %v2336_v52 = vsel %vm483_vm5, %v2324_v42, -inf }
0x130f   :  { %v2264_v50 = vpop.f32.mrb[52].mxu0 }
0x1310   :  { %v2326_v53 = vadd.f32 %v2264_v50, %v5010_v58  ;;  %v4340_v49 = vpop.f32.mrb[53].mxu0  ;;  %v2339_v51 = vsel %vm483_vm5, %v2325_v7, -inf }
0x1311   :  { %2340 = vmax.xlane.f32.xlu1 %v2339_v51  ;;  %2337 = vmax.xlane.f32.xlu0 %v2336_v52  ;;  %v2267_v54 = vpop.f32.mrb[54].mxu0 }
0x1312   :  { %v5512_v60 = vadd.f32 %v2267_v54, %v5013_v59  ;;  %v4341_v20 = vpop.f32.mrb[55].mxu0  ;;  %v2342_v3 = vsel %vm483_vm5, %v2326_v53, -inf }
0x1313   :  { %v2315_v21 = vpop.f32.mrb[64].mxu1 }
0x1314   :  { %v2328_v63 = vadd.f32 %v2315_v21, %v5010_v58  ;;  %v4346_v1 = vpop.f32.mrb[65].mxu1  ;;  %v2345_v9 = vsel %vm483_vm5, %v5512_v60, -inf }
0x1315   :  { %v2318_v13 = vpop.f32.mrb[66].mxu1  ;;  %2343 = vmax.xlane.f32.xlu0 %v2342_v3  ;;  %2346 = vmax.xlane.f32.xlu1 %v2345_v9 }
0x1316   :  { %v2329_v19 = vadd.f32 %v2318_v13, %v5013_v59  ;;  %v4347_v25 = vpop.f32.mrb[67].mxu1  ;;  %v2348_v62 = vsel %vm483_vm5, %v2328_v63, -inf }
0x1318   :  { %v2351_v29 = vsel %vm483_vm5, %v2329_v19, -inf }
0x1319   :  { %2349 = vmax.xlane.f32.xlu0 %v2348_v62  ;;  %2352 = vmax.xlane.f32.xlu1 %v2351_v29 }
0x1398   :  { %v2332_v8 = vpop.xlane.xlu1 %2331 }
0x1399   :  { %v2354_v58 = vsub.f32 %v2322_v33, %v2332_v8 }
0x139a   :  { %v2335_v11 = vpop.xlane.xlu0 %2334 }
0x139b   :  { %v2362_v14 = vmul.f32 1.442695, %v2354_v58  ;;  %v2355_v4 = vsub.f32 %v2323_v28, %v2335_v11 }
0x139d   :  { %4691 = vpow2.f32 %v2362_v14  ;;  %v2364_v23 = vmul.f32 1.442695, %v2355_v4 }
0x139e   :  { %v2341_v55 = vpop.xlane.xlu1 %2340  ;;  %v2338_v56 = vpop.xlane.xlu0 %2337 }
0x139f   :  { %4693 = vpow2.f32 %v2364_v23  ;;  %v2357_v5 = vsub.f32 %v2325_v7, %v2341_v55  ;;  %v2356_v31 = vsub.f32 %v2324_v42, %v2338_v56 }
0x13a1   :  { %v2368_v59 = vmul.f32 1.442695, %v2357_v5  ;;  %v2366_v32 = vmul.f32 1.442695, %v2356_v31 }
0x13a2   :  { %v2344_v35 = vpop.xlane.xlu0 %2343  ;;  %v2347_v54 = vpop.xlane.xlu1 %2346 }
0x13a3   :  { %4695 = vpow2.f32 %v2368_v59  ;;  %v2358_v57 = vsub.f32 %v2326_v53, %v2344_v35  ;;  %v2359_v20 = vsub.f32 %v5512_v60, %v2347_v54 }
0x13a4   :  { %4697 = vpow2.f32 %v2366_v32 }
0x13a5   :  { %v2370_v34 = vmul.f32 1.442695, %v2358_v57 }
0x13a6   :  { %v2350_v41 = vpop.xlane.xlu0 %2349  ;;  %v2353_v21 = vpop.xlane.xlu1 %2352 }
0x13a7   :  { %v4692_v10 = vpop.eup %4691  ;;  %4699 = vpow2.f32 %v2370_v34  ;;  %v2360_v33 = vsub.f32 %v2328_v63, %v2350_v41  ;;  %v2372_v63 = vmul.f32 1.442695, %v2359_v20  ;;  %v2361_v1 = vsub.f32 %v2329_v19, %v2353_v21 }
0x13a8   :  { %v2378_v28 = vsel %vm483_vm5, %v4692_v10, 0.0 }
0x13a9   :  { %v4694_v40 = vpop.eup %4693  ;;  %v2374_v44 = vmul.f32 1.442695, %v2360_v33  ;;  %2379 = vadd.xlane.f32.xlu0 %v2378_v28  ;;  %v2376_v3 = vmul.f32 1.442695, %v2361_v1 }
0x13aa   :  { %v2381_v46 = vsel %vm483_vm5, %v4694_v40, 0.0 }
0x13ab   :  { %4701 = vpow2.f32 %v2374_v44  ;;  %2382 = vadd.xlane.f32.xlu1 %v2381_v46 }
0x13ac   :  { %4703 = vpow2.f32 %v2372_v63 }
0x13ad   :  { %v4696_v42 = vpop.eup %4695  ;;  %4705 = vpow2.f32 %v2376_v3 }
0x13ae   :  { %v4698_v7 = vpop.eup %4697  ;;  %v2387_v47 = vsel %vm483_vm5, %v4696_v42, 0.0 }
0x13af   :  { %v2384_v50 = vsel %vm483_vm5, %v4698_v7, 0.0  ;;  %2388 = vadd.xlane.f32.xlu1 %v2387_v47 }
0x13b0   :  { %2385 = vadd.xlane.f32.xlu0 %v2384_v50 }
0x13b1   :  { %v5525_v53 = vpop.eup %4699 }
0x13b2   :  { %v2390_v49 = vsel %vm483_vm5, %v5525_v53, 0.0 }
0x13b4   :  { %2391 = vadd.xlane.f32.xlu0 %v2390_v49 }
0x13b5   :  { %v5529_v51 = vpop.eup %4701 }
0x13b6   :  { %v2396_v52 = vsel %vm483_vm5, %v5529_v51, 0.0  ;;  %v4704_v9 = vpop.eup %4703 }
0x13b7   :  { %v2393_v13 = vsel %vm483_vm5, %v4704_v9, 0.0  ;;  %v4706_v25 = vpop.eup %4705 }
0x13b8   :  { %2397 = vadd.xlane.f32.xlu0 %v2396_v52  ;;  %v2399_v62 = vsel %vm483_vm5, %v4706_v25, 0.0 }
0x13c0   :  { %2514 = vrot.lane.b32.xlu1 %v5475_v61, %s4808_s14 }
0x13ce   :  { %2467 = vrot.lane.b32.xlu0 %v5475_v61, %s4805_s29 }
0x13e4   :  { %2394 = vadd.xlane.f32.xlu1 %v2393_v13  ;;  %v4600_v13 = vld [vmem:[%s5857_s8 + $0x78] sm:$0xff]  }
0x13e8   :  { %2400 = vadd.xlane.f32.xlu1 %v2399_v62 }
0x13f9   :  { %2561 = vrot.lane.b32.xlu1 %v5475_v61, %s4809_s17 }
0x1436   :  { %v2380_v60 = vpop.xlane.xlu0 %2379 }
0x1437   :  { %4707 = vrcp.f32 %v2380_v60 }
0x1438   :  { %v2383_v29 = vpop.xlane.xlu1 %2382 }
0x1439   :  { %4709 = vrcp.f32 %v2383_v29 }
0x143c   :  { %v2389_v8 = vpop.xlane.xlu1 %2388 }
0x143d   :  { %v2386_v19 = vpop.xlane.xlu0 %2385  ;;  %4711 = vrcp.f32 %v2389_v8 }
0x143e   :  { %4713 = vrcp.f32 %v2386_v19 }
0x1440   :  { %v2515_v32 = vpop.permute.xlu1 %2514 }
0x1441   :  { %v4708_v58 = vpop.eup %4707  ;;  %v2392_v11 = vpop.xlane.xlu0 %2391 }
0x1442   :  { %v2410_v4 = vmul.f32 %v4708_v58, %v4692_v10  ;;  %4715 = vrcp.f32 %v2392_v11 }
0x1443   :  { %v4710_v14 = vpop.eup %4709 }
0x1444   :  { %v2411_v23 = vmul.f32 %v4710_v14, %v4694_v40 }
0x1445   :  { %v2398_v55 = vpop.xlane.xlu0 %2397 }
0x1446   :  { %v2418_v56 = vpack.c.bf16 %v2411_v23, %v2410_v4 }
0x1447   :  { %v4712_v5 = vpop.eup %4711 }
0x1448   :  { %v4714_v31 = vpop.eup %4713  ;;  %v2413_v59 = vmul.f32 %v4712_v5, %v4696_v42  ;;  %4351 = vmatmul.mubr.msk.bf16.vlgmr.msra.gmra.mrb[56].mxu0 %vm483_vm5, %v2418_v56 }
0x1449   :  { %v2412_v61 = vmul.f32 %v4714_v31, %v4698_v7  ;;  %v2468_v35 = vpop.permute.xlu0 %2467  ;;  %4361 = vmatpush3.bf16.msra.mxu0 %v2515_v32  ;;  %4362 = vmatprep.mubr.msk.bf16.mxu0 %vm4800_vm0, %v4799_v2 }
0x144a   :  { %4355 = vmatpush3.bf16.msra.mxu1 %v2468_v35  ;;  %4372 = vmatprep.subr.bf16.mxu0 %v4799_v2 }
0x144b   :  { %v2419_v57 = vpack.c.bf16 %v2413_v59, %v2412_v61  ;;  %4366 = vmatprep.subr.bf16.mxu1 %v4799_v2 }
0x144c   :  { %v4716_v33 = vpop.eup %4715 }
0x144d   :  { %4357 = vmatmul.mubr.msk.bf16.vlgmr.msra.gmra.mrb[68].mxu1 %vm483_vm5, %v2419_v57  ;;  %v2414_v40 = vmul.f32 %v4716_v33, %v5525_v53 }
0x144e   :  { %4368 = vmatprep.mubr.msk.bf16.mxu1 %vm4800_vm0, %v4799_v2 }
0x1471   :  { %v2395_v34 = vpop.xlane.xlu1 %2394 }
0x1472   :  { %4717 = vrcp.f32 %v2395_v34 }
0x1473   :  { %4719 = vrcp.f32 %v2398_v55 }
0x1475   :  { %v2401_v41 = vpop.xlane.xlu1 %2400 }
0x1476   :  { %4721 = vrcp.f32 %v2401_v41 }
0x1479   :  { %v2562_v10 = vpop.permute.xlu1 %2561 }
0x147a   :  { %4367 = vmatpush3.bf16.msra.mxu1 %v2562_v10 }
0x147b   :  { %4380 = vmatprep.subr.bf16.mxu1 %v4799_v2 }
0x147c   :  { %v4718_v28 = vpop.eup %4717 }
0x147d   :  { %v2415_v44 = vmul.f32 %v4718_v28, %v4704_v9  ;;  %v4720_v46 = vpop.eup %4719  ;;  %v4599_v9 = vld [vmem:[%s5857_s8 + $0x70] sm:$0xff]  }
0x147e   :  { %v2416_v47 = vmul.f32 %v4720_v46, %v5529_v51 }
0x147f   :  { %v2420_v42 = vpack.c.bf16 %v2415_v44, %v2414_v40  ;;  %v2642_v44 = vrot.slane %v5424_v27, %v5086_v48 }
0x1480   :  { %v4722_v7 = vpop.eup %4721 }
0x1481   :  { %v2417_v50 = vmul.f32 %v4722_v7, %v4706_v25  ;;  %4363 = vmatmul.mubr.msk.bf16.vlgmr.msra.gmra.mrb[60].mxu0 %vm483_vm5, %v2420_v42 }
0x1482   :  { %4376 = vmatprep.mubr.msk.bf16.mxu0 %vm4800_vm0, %v4799_v2  ;;  %4373 = vmatpush3.bf16.msra.mxu0 %v4599_v9 }
0x1483   :  { %v2421_v49 = vpack.c.bf16 %v2417_v50, %v2416_v47  ;;  %4374 = vmatprep.subr.bf16.mxu0 %v4799_v2 }
0x1485   :  { %4369 = vmatmul.mubr.msk.bf16.vlgmr.msra.gmra.mrb[72].mxu1 %vm483_vm5, %v2421_v49 }
0x1486   :  { %4384 = vmatprep.mubr.msk.bf16.mxu1 %vm4800_vm0, %v4799_v2  ;;  %4375 = vmatpush3.bf16.msra.mxu0 %v4600_v13 }
0x151b   :  { %v2459_v52 = vpop.f32.mrb[56].mxu0 }
0x151c   :  { %v4352_v53 = vpop.f32.mrb[57].mxu0 }
0x151d   :  { %v2462_v54 = vpop.f32.mrb[58].mxu0 }
0x151e   :  { %v4353_v20 = vpop.f32.mrb[59].mxu0 }
0x1520   :  { %v2507_v21 = vpop.f32.mrb[68].mxu1 }
0x1521   :  { %v4358_v63 = vpop.f32.mrb[69].mxu1 }
0x1522   :  { %v2510_v1 = vpop.f32.mrb[70].mxu1 }
0x1523   :  { %v4545_v51 = vpack.i.bf16 %v2510_v1, %v2507_v21  ;;  %v4359_v3 = vpop.f32.mrb[71].mxu1  ;;  %v4602_v21 = vld [vmem:[%s5857_s8 + $0x98] sm:$0xff]  }
0x1525   :  { %4546 = vrot.lane.b32.xlu0 %v4545_v51, %s4811_s5 }
0x1554   :  { %v2554_v25 = vpop.f32.mrb[60].mxu0 }
0x1555   :  { %v4364_v62 = vpop.f32.mrb[61].mxu0 }
0x1556   :  { %v2557_v60 = vpop.f32.mrb[62].mxu0 }
0x1557   :  { %v4550_v29 = vpack.i.bf16 %v2557_v60, %v2554_v25  ;;  %v4365_v8 = vpop.f32.mrb[63].mxu0  ;;  %v4604_v60 = vld [vmem:[%s5857_s8 + $0x88] sm:$0xff]  }
0x1558   :  { %v2601_v19 = vpop.f32.mrb[72].mxu1 }
0x1559   :  { %v4370_v58 = vpop.f32.mrb[73].mxu1  ;;  %4551 = vrot.lane.b32.xlu1 %v4550_v29, %s4812_s25  ;;  %v2805_v29 = vrot.slane %v5424_v27, %v5157_v37 }
0x155a   :  { %v2604_v11 = vpop.f32.mrb[74].mxu1 }
0x155b   :  { %v4555_v14 = vpack.i.bf16 %v2604_v11, %v2601_v19  ;;  %v4371_v4 = vpop.f32.mrb[75].mxu1 }
0x155d   :  { %4556 = vrot.lane.b32.xlu0 %v4555_v14, %s4813_s15 }
0x1597   :  { %v4547_v23 = vpop.permute.xlu0 %4546 }
0x1598   :  { %v4549_v56 = vunpack.i.h.bf16 %v4547_v23  ;;  %v4548_v5 = vunpack.i.l.bf16 %v4547_v23 }
0x159a   :  { %v2632_v61 = vsel %vm273_vm2, %v2459_v52, %v4548_v5  ;;  %v2633_v35 = vsel %vm273_vm2, %v2462_v54, %v4549_v56 }
0x15cb   :  { %v4552_v55 = vpop.permute.xlu1 %4551 }
0x15cc   :  { %v4554_v31 = vunpack.i.h.bf16 %v4552_v55  ;;  %v4553_v59 = vunpack.i.l.bf16 %v4552_v55 }
0x15ce   :  { %v2635_v41 = vsel %vm483_vm5, %v2633_v35, %v4554_v31  ;;  %v2634_v10 = vsel %vm483_vm5, %v2632_v61, %v4553_v59 }
0x15cf   :  { %v4557_v32 = vpop.permute.xlu0 %4556 }
0x15d0   :  { %v4559_v57 = vunpack.i.h.bf16 %v4557_v32  ;;  %v4558_v34 = vunpack.i.l.bf16 %v4557_v32 }
0x15d2   :  { %v2636_v33 = vsel %vm790_vm6, %v2634_v10, %v4558_v34  ;;  %v2637_v28 = vsel %vm790_vm6, %v2635_v41, %v4559_v57  ;;  %v5623_v10 = vld [vmem:[%s5861_s12 + $0x20] sm:$0xff] }
0x15d3   :  { %v2638_v40 = vpack.c.bf16 %v2637_v28, %v2636_v33  ;;  %v2730_v33 = vrot.slane %v5623_v10, %v4931_v12 }
0x15d5   :  { %4377 = vmatmul.mubr.msk.bf16.vlgmr.msra.gmra.mrb[64].mxu0 %vm145_vm1, %v2638_v40 }
0x15d6   :  { %4392 = vmatprep.mubr.msk.bf16.mxu0 %vm145_vm1, %v5135_v22  ;;  %v4601_v22 = vld [vmem:[%s5857_s8 + $0x90] sm:$0xff]  }
0x15d7   :  { %4388 = vmatprep.subr.bf16.mxu0 %v4601_v22 }
0x15d8   :  { %4389 = vmatpush3.bf16.msra.mxu0 %v4601_v22  ;;  %v2745_v22 = vrot.slane %v5424_v27, %v5219_v17 }
0x15d9   :  { %4390 = vmatprep.subr.bf16.mxu0 %v4602_v21 }
0x15dc   :  { %4391 = vmatpush3.bf16.msra.mxu0 %v4602_v21 }
0x15dd   :  { %4404 = vmatprep.subr.bf16.mxu0 %v4799_v2 }
0x15df   :  { %4393 = vmatmul.mubr.msk.bf16.vlgmr.msra.gmra.mrb[68].mxu0 %vm145_vm1, %v5140_v24  ;;  %v4603_v24 = vld [vmem:[%s5857_s8 + $0x80] sm:$0xff]  }
0x15e0   :  { %4408 = vmatprep.mubr.msk.bf16.mxu0 %vm4800_vm0, %v4799_v2  ;;  %4381 = vmatpush3.bf16.msra.mxu1 %v4603_v24  ;;  %v2870_v24 = vrot.slane %v5424_v27, %v5236_v43 }
0x15e1   :  { %4382 = vmatprep.subr.bf16.mxu1 %v4799_v2 }
0x15e4   :  { %4383 = vmatpush3.bf16.msra.mxu1 %v4604_v60 }
0x16a8   :  { %v2692_v46 = vpop.f32.mrb[64].mxu0 }
0x16a9   :  { %v2693_v42 = vadd.f32 %v2692_v46, %v2642_v44  ;;  %v4378_v7 = vpop.f32.mrb[65].mxu0 }
0x16aa   :  { %v2695_v47 = vpop.f32.mrb[66].mxu0 }
0x16ab   :  { %v2699_v50 = vadd.f32 %v2693_v42, %v5433_v38  ;;  %v2696_v49 = vadd.f32 %v2695_v47, %v2642_v44  ;;  %v4379_v52 = vpop.f32.mrb[67].mxu0  ;;  %v2736_v44 = vrot.slane %v5623_v10, %v4992_v45  ;;  %v4605_v45 = vld [vmem:[%s5857_s8 + $0xa0] sm:$0xff]  }
0x16ac   :  { %4396 = vmatprep.subr.bf16.mxu1 %v4605_v45 }
0x16ad   :  { %v2700_v53 = vadd.f32 %v2696_v49, %v5435_v16  ;;  %v2701_v54 = vsel %vm145_vm1, %v2699_v50, 0.0 }
0x16ae   :  { %2702 = vadd.xlane.f32.xlu1 %v2701_v54  ;;  %v4606_v54 = vld [vmem:[%s5857_s8 + $0xa8] sm:$0xff]  }
0x16af   :  { %v2704_v20 = vsel %vm145_vm1, %v2700_v53, 0.0 }
0x16b0   :  { %2705 = vadd.xlane.f32.xlu0 %v2704_v20 }
0x16b2   :  { %v4394_v8 = vpop.f32.mrb[68].mxu0 }
0x16b3   :  { %v2861_v19 = vadd.f32 %v4394_v8, %v2805_v29  ;;  %v2852_v58 = vpop.f32.mrb[69].mxu0 }
0x16b4   :  { %v2853_v11 = vadd.f32 %v2852_v58, %v2805_v29  ;;  %v4395_v14 = vpop.f32.mrb[70].mxu0 }
0x16b5   :  { %v2864_v4 = vadd.f32 %v4395_v14, %v2805_v29  ;;  %v2855_v23 = vpop.f32.mrb[71].mxu0 }
0x16b6   :  { %v2856_v55 = vadd.f32 %v2855_v23, %v2805_v29 }
0x16b7   :  { %v5606_v56 = vpack.c.bf16 %v2864_v4, %v2861_v19 }
0x16b8   :  { %v2933_v5 = vpack.c.bf16 %v2856_v55, %v2853_v11 }
0x16b9   :  { %v2944_v59 = vsel %vm273_vm2, %v5606_v56, 0 }
0x16ba   :  { %v2941_v31 = vsel %vm273_vm2, %v2933_v5, 0 }
0x16bb   :  { %4405 = vmatpush3.bf16.xpose.msra.mxu0 %v2941_v31 }
0x16bc   :  { %4406 = vmatprep.subr.bf16.mxu0 %v4799_v2 }
0x16c3   :  { %4407 = vmatpush3.bf16.xpose.msra.mxu0 %v2944_v59 }
0x16c4   :  { %4420 = vmatprep.subr.bf16.mxu0 %v4799_v2 }
0x173b   :  { %v2703_v38 = vpop.xlane.xlu1 %2702 }
0x173c   :  { %v2707_v16 = vmul.f32 0.03125, %v2703_v38 }
0x173d   :  { %v2706_v63 = vpop.xlane.xlu0 %2705 }
0x173e   :  { %v2709_v1 = vsub.f32 %v2699_v50, %v2707_v16  ;;  %v2708_v51 = vmul.f32 0.03125, %v2706_v63 }
0x1740   :  { %v2710_v3 = vsub.f32 %v2700_v53, %v2708_v51  ;;  %v2711_v9 = vmul.f32 %v2709_v1, %v2709_v1 }
0x1742   :  { %v2713_v13 = vsel %vm145_vm1, %v2711_v9, 0.0  ;;  %v2712_v25 = vmul.f32 %v2710_v3, %v2710_v3 }
0x1743   :  { %2714 = vadd.xlane.f32.xlu0 %v2713_v13 }
0x1744   :  { %v2716_v62 = vsel %vm145_vm1, %v2712_v25, 0.0 }
0x1745   :  { %2717 = vadd.xlane.f32.xlu1 %v2716_v62 }
0x1756   :  { %2994 = vrot.lane.b32.xlu1 %v5606_v56, %s4805_s29 }
0x1759   :  { %2992 = vrot.lane.b32.xlu0 %v2933_v5, %s4805_s29 }
0x175a   :  { %3048 = vrot.lane.b32.xlu1 %v2933_v5, %s4808_s14 }
0x175d   :  { %3104 = vrot.lane.b32.xlu0 %v2933_v5, %s4809_s17 }
0x1761   :  { %3050 = vrot.lane.b32.xlu0 %v5606_v56, %s4808_s14 }
0x17d0   :  { %v2715_v32 = vpop.xlane.xlu0 %2714 }
0x17d1   :  { %v2719_v61 = vmul.f32 0.03125, %v2715_v32 }
0x17d2   :  { %v2718_v35 = vpop.xlane.xlu1 %2717 }
0x17d3   :  { %v2721_v57 = vadd.f32 1e-05, %v2719_v61  ;;  %v2720_v34 = vmul.f32 0.03125, %v2718_v35 }
0x17d5   :  { %4723 = vrsqrt.f32 %v2721_v57  ;;  %v2722_v41 = vadd.f32 1e-05, %v2720_v34 }
0x17d7   :  { %4725 = vrsqrt.f32 %v2722_v41 }
0x17df   :  { %v4724_v28 = vpop.eup %4723 }
0x17e0   :  { %v2725_v40 = vmul.f32 %v4724_v28, %v2709_v1 }
0x17e1   :  { %v4726_v46 = vpop.eup %4725 }
0x17e2   :  { %v2731_v42 = vmul.f32 %v2730_v33, %v2725_v40  ;;  %v2726_v7 = vmul.f32 %v4726_v46, %v2710_v3 }
0x17e4   :  { %v2732_v47 = vmul.f32 %v2730_v33, %v2726_v7  ;;  %v5629_v50 = vadd.f32 %v2736_v44, %v2731_v42 }
0x17e6   :  { %v5631_v49 = vadd.f32 %v2736_v44, %v2732_v47  ;;  %v2739_v52 = vadd.f32 %v5440_v39, %v5629_v50  ;;  %v2993_v39 = vpop.permute.xlu0 %2992 }
0x17e8   :  { %v2740_v53 = vadd.f32 %v5447_v0, %v5631_v49  ;;  %v2995_v0 = vpop.permute.xlu1 %2994 }
0x17e9   :  { %v3003_v20 = vsel %vm273_vm2, %v2995_v0, 0 }
0x17ea   :  { %v2741_v12 = vpack.c.bf16 %v2740_v53, %v2739_v52  ;;  %v3105_v9 = vpop.permute.xlu0 %3104 }
0x17eb   :  { %v3112_v31 = vsel %vm273_vm2, %v3105_v9, 0 }
0x17ec   :  { %4385 = vmatmul.mubr.msk.bf16.vlgmr.msra.gmra.mrb[76].mxu1 %vm145_vm1, %v2741_v12  ;;  %v3049_v51 = vpop.permute.xlu1 %3048 }
0x17ed   :  { %4400 = vmatprep.mubr.msk.bf16.mxu1 %vm145_vm1, %v5201_v30  ;;  %4397 = vmatpush3.bf16.msra.mxu1 %v4605_v45  ;;  %v3000_v30 = vsel %vm273_vm2, %v2993_v39, 0  ;;  %v3056_v13 = vsel %vm273_vm2, %v3049_v51, 0 }
0x17ee   :  { %4398 = vmatprep.subr.bf16.mxu1 %v4606_v54  ;;  %v3051_v25 = vpop.permute.xlu0 %3050 }
0x17ef   :  { %v3059_v62 = vsel %vm273_vm2, %v3051_v25, 0 }
0x17f1   :  { %4399 = vmatpush3.bf16.msra.mxu1 %v4606_v54 }
0x17f2   :  { %4412 = vmatprep.subr.bf16.mxu1 %v4799_v2 }
0x17f4   :  { %4401 = vmatmul.mubr.msk.bf16.vlgmr.msra.gmra.mrb[80].mxu1 %vm145_vm1, %v5207_v6 }
0x17f5   :  { %4416 = vmatprep.mubr.msk.bf16.mxu1 %vm4800_vm0, %v4799_v2 }
0x17fa   :  { %4413 = vmatpush3.bf16.xpose.msra.mxu1 %v3000_v30 }
0x17fb   :  { %4414 = vmatprep.subr.bf16.mxu1 %v4799_v2 }
0x1802   :  { %4415 = vmatpush3.bf16.xpose.msra.mxu1 %v3003_v20 }
0x1803   :  { %4428 = vmatprep.subr.bf16.mxu1 %v4799_v2 }
0x18bf   :  { %v2795_v21 = vpop.f32.mrb[76].mxu1 }
0x18c0   :  { %v4386_v38 = vpop.f32.mrb[77].mxu1  ;;  %v2796_v16 = vadd.f32 %v2795_v21, %v2745_v22 }
0x18c1   :  { %v2798_v6 = vpop.f32.mrb[78].mxu1 }
0x18c2   :  { %v2799_v63 = vadd.f32 %v2798_v6, %v2745_v22  ;;  %v4387_v1 = vpop.f32.mrb[79].mxu1 }
0x18c4   :  { %v2932_v3 = vpack.c.bf16 %v2799_v63, %v2796_v16 }
0x18c6   :  { %2988 = vrot.lane.b32.xlu1 %v2932_v3, %s4805_s29  ;;  %3046 = vrot.lane.b32.xlu0 %v2932_v3, %s4808_s14 }
0x18c7   :  { %4409 = vmatmul.mubr.msk.bf16.vlgmr.msra.gmra.mrb[72].mxu0 %vm273_vm2, %v2932_v3  ;;  %v4402_v60 = vpop.f32.mrb[80].mxu1 }
0x18c8   :  { %4421 = vmatpush3.bf16.xpose.msra.mxu0 %v3056_v13  ;;  %4424 = vmatprep.mubr.msk.bf16.mxu0 %vm4800_vm0, %v4799_v2  ;;  %v2926_v29 = vadd.f32 %v4402_v60, %v2870_v24  ;;  %v2917_v8 = vpop.f32.mrb[81].mxu1 }
0x18c9   :  { %4422 = vmatprep.subr.bf16.mxu0 %v4799_v2  ;;  %v2918_v19 = vadd.f32 %v2917_v8, %v2870_v24  ;;  %v4403_v58 = vpop.f32.mrb[82].mxu1 }
0x18ca   :  { %3106 = vrot.lane.b32.xlu1 %v5606_v56, %s4809_s17  ;;  %v2929_v11 = vadd.f32 %v4403_v58, %v2870_v24  ;;  %v2920_v14 = vpop.f32.mrb[83].mxu1 }
0x18cb   :  { %v2921_v4 = vadd.f32 %v2920_v14, %v2870_v24 }
0x18cc   :  { %v5671_v23 = vpack.c.bf16 %v2929_v11, %v2926_v29 }
0x18cd   :  { %v5673_v55 = vpack.c.bf16 %v2921_v4, %v2918_v19 }
0x18ce   :  { %3102 = vrot.lane.b32.xlu1 %v2932_v3, %s4809_s17 }
0x18d0   :  { %4423 = vmatpush3.bf16.xpose.msra.mxu0 %v3059_v62 }
0x18d1   :  { %4436 = vmatprep.subr.bf16.mxu0 %v4799_v2 }
0x1938   :  { %v2989_v56 = vpop.permute.xlu1 %2988  ;;  %v3047_v5 = vpop.permute.xlu0 %3046 }
0x1939   :  { %4417 = vmatmul.mubr.msk.bf16.vlgmr.msra.gmra.mrb[84].mxu1 %vm273_vm2, %v2989_v56  ;;  %4425 = vmatmul.mubr.msk.bf16.vlgmr.msra.gmra.mrb[76].mxu0 %vm273_vm2, %v3047_v5 }
0x193a   :  { %4429 = vmatpush3.bf16.xpose.msra.mxu1 %v3112_v31  ;;  %4432 = vmatprep.mubr.msk.bf16.mxu1 %vm4800_vm0, %v4799_v2 }
0x193b   :  { %4430 = vmatprep.subr.bf16.mxu1 %v4799_v2  ;;  %4437 = vmatpush3.bf16.msra.mxu0 %v5673_v55 }
0x193c   :  { %4438 = vmatprep.subr.bf16.mxu0 %v4799_v2  ;;  %4440 = vmatprep.mubr.msk.bf16.mxu0 %vm4800_vm0, %v4799_v2  ;;  %v3107_v27 = vpop.permute.xlu1 %3106 }
0x193d   :  { %v3115_v59 = vsel %vm273_vm2, %v3107_v27, 0 }
0x193f   :  { %4439 = vmatpush3.bf16.msra.mxu0 %v5671_v23 }
0x1940   :  { %4452 = vmatprep.subr.bf16.mxu0 %v4799_v2  ;;  %v3103_v32 = vpop.permute.xlu1 %3102 }
0x1942   :  { %4431 = vmatpush3.bf16.xpose.msra.mxu1 %v3115_v59 }
0x1943   :  { %4444 = vmatprep.subr.bf16.mxu1 %v4799_v2 }
0x1949   :  { %4433 = vmatmul.mubr.msk.bf16.vlgmr.msra.gmra.mrb[88].mxu1 %vm273_vm2, %v3103_v32 }
0x194a   :  { %4448 = vmatprep.mubr.msk.bf16.mxu1 %vm4800_vm0, %v4799_v2 }
0x199a   :  { %v2980_v61 = vpop.f32.mrb[72].mxu0 }
0x199b   :  { %v3158_v35 = vadd.f32 %v2980_v61, %v5272_v15  ;;  %v4410_v57 = vpop.f32.mrb[73].mxu0 }
0x199c   :  { %v2983_v34 = vpop.f32.mrb[74].mxu0 }
0x199d   :  { %v3159_v41 = vadd.f32 %v2983_v34, %v5276_v26  ;;  %v4411_v33 = vpop.f32.mrb[75].mxu0  ;;  %v3166_v28 = vsel %vm145_vm1, %v3158_v35, -inf }
0x199e   :  { %3167 = vmax.xlane.f32.xlu0 %v3166_v28 }
0x199f   :  { %v3169_v40 = vsel %vm145_vm1, %v3159_v41, -inf }
0x19a0   :  { %3170 = vmax.xlane.f32.xlu1 %v3169_v40 }
0x1a0c   :  { %v3039_v44 = vpop.f32.mrb[84].mxu1  ;;  %v3095_v46 = vpop.f32.mrb[76].mxu0 }
0x1a0d   :  { %v3160_v42 = vadd.f32 %v3039_v44, %v5272_v15  ;;  %v3162_v7 = vadd.f32 %v3095_v46, %v5272_v15  ;;  %v4418_v47 = vpop.f32.mrb[85].mxu1  ;;  %v4426_v52 = vpop.f32.mrb[77].mxu0 }
0x1a0e   :  { %v3042_v53 = vpop.f32.mrb[86].mxu1  ;;  %v3098_v12 = vpop.f32.mrb[78].mxu0 }
0x1a0f   :  { %v3161_v45 = vadd.f32 %v3042_v53, %v5276_v26  ;;  %v4419_v54 = vpop.f32.mrb[87].mxu1  ;;  %v4427_v39 = vpop.f32.mrb[79].mxu0  ;;  %v3172_v30 = vsel %vm145_vm1, %v3160_v42, -inf  ;;  %v3178_v0 = vsel %vm145_vm1, %v3162_v7, -inf  ;;  %v3163_v20 = vadd.f32 %v3098_v12, %v5276_v26 }
0x1a10   :  { %3173 = vmax.xlane.f32.xlu0 %v3172_v30  ;;  %3179 = vmax.xlane.f32.xlu1 %v3178_v0 }
0x1a11   :  { %v3175_v22 = vsel %vm145_vm1, %v3161_v45, -inf  ;;  %v3181_v21 = vsel %vm145_vm1, %v3163_v20, -inf }
0x1a14   :  { %3176 = vmax.xlane.f32.xlu0 %v3175_v22 }
0x1a18   :  { %3182 = vmax.xlane.f32.xlu0 %v3181_v21 }
0x1a1c   :  { %v3151_v38 = vpop.f32.mrb[88].mxu1 }
0x1a1d   :  { %v3164_v6 = vadd.f32 %v3151_v38, %v5272_v15  ;;  %v4434_v16 = vpop.f32.mrb[89].mxu1 }
0x1a1e   :  { %v3154_v63 = vpop.f32.mrb[90].mxu1 }
0x1a1f   :  { %v3165_v1 = vadd.f32 %v3154_v63, %v5276_v26  ;;  %v4435_v51 = vpop.f32.mrb[91].mxu1  ;;  %v3184_v3 = vsel %vm145_vm1, %v3164_v6, -inf }
0x1a20   :  { %3185 = vmax.xlane.f32.xlu1 %v3184_v3 }
0x1a21   :  { %v3187_v9 = vsel %vm145_vm1, %v3165_v1, -inf }
0x1a22   :  { %3188 = vmax.xlane.f32.xlu0 %v3187_v9 }
0x1a2b   :  { %v3168_v13 = vpop.xlane.xlu0 %3167 }
0x1a2c   :  { %v3190_v62 = vsub.f32 %v3158_v35, %v3168_v13 }
0x1a2d   :  { %v3171_v15 = vpop.xlane.xlu1 %3170 }
0x1a2e   :  { %v3191_v26 = vsub.f32 %v3159_v41, %v3171_v15  ;;  %v3198_v24 = vmul.f32 1.442695, %v3190_v62 }
0x1a30   :  { %v3200_v25 = vmul.f32 1.442695, %v3191_v26 }
0x1a31   :  { %3304 = vrot.lane.b32.xlu1 %v5673_v55, %s4805_s29 }
0x1a32   :  { %4727 = vpow2.f32 %v3200_v25 }
0x1a33   :  { %4729 = vpow2.f32 %v3198_v24 }
0x1a35   :  { %3354 = vrot.lane.b32.xlu1 %v5673_v55, %s4808_s14 }
0x1a38   :  { %3306 = vrot.lane.b32.xlu0 %v5671_v23, %s4805_s29 }
0x1a39   :  { %3404 = vrot.lane.b32.xlu1 %v5673_v55, %s4809_s17 }
0x1a3c   :  { %v5716_v60 = vpop.eup %4727 }
0x1a3d   :  { %v3217_v29 = vsel %vm145_vm1, %v5716_v60, 0.0  ;;  %v4730_v8 = vpop.eup %4729 }
0x1a3e   :  { %v3214_v19 = vsel %vm145_vm1, %v4730_v8, 0.0 }
0x1a57   :  { %3218 = vadd.xlane.f32.xlu0 %v3217_v29 }
0x1a5d   :  { %3215 = vadd.xlane.f32.xlu1 %v3214_v19 }
0x1a9d   :  { %v3174_v58 = vpop.xlane.xlu0 %3173  ;;  %v3180_v11 = vpop.xlane.xlu1 %3179 }
0x1a9e   :  { %v3192_v14 = vsub.f32 %v3160_v42, %v3174_v58  ;;  %v3194_v4 = vsub.f32 %v3162_v7, %v3180_v11 }
0x1aa0   :  { %v3202_v55 = vmul.f32 1.442695, %v3192_v14  ;;  %v3206_v56 = vmul.f32 1.442695, %v3194_v4 }
0x1aa1   :  { %v3177_v5 = vpop.xlane.xlu0 %3176 }
0x1aa2   :  { %4731 = vpow2.f32 %v3202_v55  ;;  %v3193_v31 = vsub.f32 %v3161_v45, %v3177_v5 }
0x1aa3   :  { %4733 = vpow2.f32 %v3206_v56 }
0x1aa4   :  { %v3204_v27 = vmul.f32 1.442695, %v3193_v31 }
0x1aa5   :  { %v3183_v59 = vpop.xlane.xlu0 %3182 }
0x1aa6   :  { %4735 = vpow2.f32 %v3204_v27  ;;  %v3195_v32 = vsub.f32 %v3163_v20, %v3183_v59 }
0x1aa8   :  { %v3208_v61 = vmul.f32 1.442695, %v3195_v32 }
0x1aaa   :  { %4737 = vpow2.f32 %v3208_v61 }
0x1aac   :  { %v4732_v35 = vpop.eup %4731 }
0x1aad   :  { %v3186_v57 = vpop.xlane.xlu1 %3185  ;;  %v3220_v34 = vsel %vm145_vm1, %v4732_v35, 0.0  ;;  %v5722_v41 = vpop.eup %4733 }
0x1aae   :  { %v3196_v33 = vsub.f32 %v3164_v6, %v3186_v57  ;;  %3221 = vadd.xlane.f32.xlu1 %v3220_v34  ;;  %v3226_v7 = vsel %vm145_vm1, %v5722_v41, 0.0  ;;  %v4607_v34 = vld [vmem:[%s5857_s8 + $0xb0] sm:$0xff]  }
0x1aaf   :  { %v3189_v28 = vpop.xlane.xlu0 %3188 }
0x1ab0   :  { %v4736_v40 = vpop.eup %4735  ;;  %v3210_v44 = vmul.f32 1.442695, %v3196_v33  ;;  %v3197_v46 = vsub.f32 %v3165_v1, %v3189_v28 }
0x1ab1   :  { %v3305_v42 = vpop.permute.xlu1 %3304  ;;  %v3223_v47 = vsel %vm145_vm1, %v4736_v40, 0.0 }
0x1ab2   :  { %4739 = vpow2.f32 %v3210_v44  ;;  %v3212_v52 = vmul.f32 1.442695, %v3197_v46  ;;  %4445 = vmatpush3.bf16.msra.mxu1 %v3305_v42  ;;  %3227 = vadd.xlane.f32.xlu1 %v3226_v7  ;;  %v4608_v7 = vld [vmem:[%s5857_s8 + $0xb8] sm:$0xff]  }
0x1ab3   :  { %3224 = vadd.xlane.f32.xlu0 %v3223_v47  ;;  %4446 = vmatprep.subr.bf16.mxu1 %v4799_v2  ;;  %v3307_v12 = vpop.permute.xlu0 %3306 }
0x1ab4   :  { %v4738_v53 = vpop.eup %4737  ;;  %4741 = vpow2.f32 %v3212_v52 }
0x1ab5   :  { %v3229_v45 = vsel %vm145_vm1, %v4738_v53, 0.0  ;;  %v3355_v20 = vpop.permute.xlu1 %3354 }
0x1ab6   :  { %4447 = vmatpush3.bf16.msra.mxu1 %v3307_v12 }
0x1ab7   :  { %3230 = vadd.xlane.f32.xlu0 %v3229_v45  ;;  %4460 = vmatprep.subr.bf16.mxu1 %v4799_v2 }
0x1ab9   :  { %v3405_v22 = vpop.permute.xlu1 %3404 }
0x1abc   :  { %v4740_v54 = vpop.eup %4739 }
0x1abd   :  { %v3232_v39 = vsel %vm145_vm1, %v4740_v54, 0.0 }
0x1abe   :  { %v4742_v30 = vpop.eup %4741  ;;  %3233 = vadd.xlane.f32.xlu1 %v3232_v39 }
0x1abf   :  { %v3235_v0 = vsel %vm145_vm1, %v4742_v30, 0.0 }
0x1ac0   :  { %3236 = vadd.xlane.f32.xlu0 %v3235_v0 }
0x1acf   :  { %3406 = vrot.lane.b32.xlu1 %v5671_v23, %s4809_s17 }
0x1ad6   :  { %3356 = vrot.lane.b32.xlu0 %v5671_v23, %s4808_s14 }
0x1ae4   :  { %v3219_v21 = vpop.xlane.xlu0 %3218 }
0x1ae5   :  { %4743 = vrcp.f32 %v3219_v21 }
0x1aea   :  { %v3216_v38 = vpop.xlane.xlu1 %3215 }
0x1aeb   :  { %4745 = vrcp.f32 %v3216_v38 }
0x1aef   :  { %v4744_v6 = vpop.eup %4743 }
0x1af0   :  { %v3247_v63 = vmul.f32 %v4744_v6, %v5716_v60 }
0x1af5   :  { %v4746_v16 = vpop.eup %4745 }
0x1af6   :  { %v3246_v1 = vmul.f32 %v4746_v16, %v4730_v8 }
0x1af8   :  { %v3254_v51 = vpack.c.bf16 %v3247_v63, %v3246_v1 }
0x1afa   :  { %4441 = vmatmul.mubr.msk.bf16.vlgmr.msra.gmra.mrb[80].mxu0 %vm145_vm1, %v3254_v51 }
0x1afb   :  { %4453 = vmatpush3.bf16.msra.mxu0 %v3355_v20  ;;  %4456 = vmatprep.mubr.msk.bf16.mxu0 %vm4800_vm0, %v4799_v2 }
0x1afc   :  { %4454 = vmatprep.subr.bf16.mxu0 %v4799_v2 }
0x1b3b   :  { %v3222_v23 = vpop.xlane.xlu1 %3221 }
0x1b3c   :  { %4747 = vrcp.f32 %v3222_v23 }
0x1b3f   :  { %v3228_v3 = vpop.xlane.xlu1 %3227 }
0x1b40   :  { %v3225_v9 = vpop.xlane.xlu0 %3224 }
0x1b41   :  { %4749 = vrcp.f32 %v3225_v9 }
0x1b42   :  { %4751 = vrcp.f32 %v3228_v3 }
0x1b44   :  { %v3231_v15 = vpop.xlane.xlu0 %3230 }
0x1b45   :  { %4753 = vrcp.f32 %v3231_v15 }
0x1b46   :  { %v4748_v26 = vpop.eup %4747 }
0x1b47   :  { %v3248_v62 = vmul.f32 %v4748_v26, %v4732_v35 }
0x1b4b   :  { %v4750_v13 = vpop.eup %4749  ;;  %v3234_v25 = vpop.xlane.xlu1 %3233 }
0x1b4c   :  { %v3249_v24 = vmul.f32 %v4750_v13, %v4736_v40  ;;  %4755 = vrcp.f32 %v3234_v25  ;;  %v4752_v60 = vpop.eup %4751  ;;  %v4774_v25 = vld [vmem:[%s5861_s12 + $0x18] sm:$0xff] }
0x1b4d   :  { %v3237_v29 = vpop.xlane.xlu0 %3236  ;;  %v3250_v58 = vmul.f32 %v4752_v60, %v5722_v41 }
0x1b4e   :  { %4757 = vrcp.f32 %v3237_v29  ;;  %v3255_v8 = vpack.c.bf16 %v3249_v24, %v3248_v62  ;;  %v3488_v62 = vrot.slane %v4774_v25, %v5360_v36 }
0x1b4f   :  { %v4754_v19 = vpop.eup %4753  ;;  %v3407_v55 = vpop.permute.xlu1 %3406 }
0x1b50   :  { %v3251_v11 = vmul.f32 %v4754_v19, %v4738_v53  ;;  %4449 = vmatmul.mubr.msk.bf16.vlgmr.msra.gmra.mrb[92].mxu1 %vm145_vm1, %v3255_v8 }
0x1b51   :  { %4461 = vmatpush3.bf16.msra.mxu1 %v3405_v22  ;;  %v3357_v14 = vpop.permute.xlu0 %3356  ;;  %4464 = vmatprep.mubr.msk.bf16.mxu1 %vm4800_vm0, %v4799_v2 }
0x1b52   :  { %4455 = vmatpush3.bf16.msra.mxu0 %v3357_v14  ;;  %4462 = vmatprep.subr.bf16.mxu1 %v4799_v2  ;;  %v3256_v4 = vpack.c.bf16 %v3251_v11, %v3250_v58 }
0x1b53   :  { %4468 = vmatprep.subr.bf16.mxu0 %v4799_v2 }
0x1b55   :  { %4463 = vmatpush3.bf16.msra.mxu1 %v3407_v55  ;;  %4457 = vmatmul.mubr.msk.bf16.vlgmr.msra.gmra.mrb[84].mxu0 %vm145_vm1, %v3256_v4 }
0x1b56   :  { %v4756_v56 = vpop.eup %4755  ;;  %4472 = vmatprep.mubr.msk.bf16.mxu0 %vm4800_vm0, %v4799_v2  ;;  %4476 = vmatprep.subr.bf16.mxu1 %v4799_v2 }
0x1b57   :  { %v3252_v31 = vmul.f32 %v4756_v56, %v4740_v54  ;;  %4469 = vmatpush3.bf16.msra.mxu0 %v4607_v34  ;;  %v4610_v34 = vld [vmem:[%s5858_s9 + $0x18] sm:$0xff]  }
0x1b58   :  { %v4758_v5 = vpop.eup %4757  ;;  %4470 = vmatprep.subr.bf16.mxu0 %v4799_v2 }
0x1b59   :  { %v3253_v27 = vmul.f32 %v4758_v5, %v4742_v30 }
0x1b5b   :  { %v3257_v59 = vpack.c.bf16 %v3253_v27, %v3252_v31  ;;  %4471 = vmatpush3.bf16.msra.mxu0 %v4608_v7 }
0x1b5c   :  { %4484 = vmatprep.subr.bf16.mxu0 %v4799_v2 }
0x1b5d   :  { %4465 = vmatmul.mubr.msk.bf16.vlgmr.msra.gmra.mrb[96].mxu1 %vm145_vm1, %v3257_v59 }
0x1b5e   :  { %4480 = vmatprep.mubr.msk.bf16.mxu1 %vm4800_vm0, %v4799_v2 }
0x1bcd   :  { %v3295_v32 = vpop.f32.mrb[80].mxu0 }
0x1bce   :  { %v4442_v61 = vpop.f32.mrb[81].mxu0 }
0x1bcf   :  { %v3298_v35 = vpop.f32.mrb[82].mxu0 }
0x1bd0   :  { %v4443_v57 = vpop.f32.mrb[83].mxu0 }
0x1c23   :  { %v3347_v41 = vpop.f32.mrb[92].mxu1 }
0x1c24   :  { %v4450_v33 = vpop.f32.mrb[93].mxu1 }
0x1c25   :  { %v3350_v28 = vpop.f32.mrb[94].mxu1  ;;  %v4612_v33 = vld [vmem:[%s5859_s10 + $0x28] sm:$0xff]  }
0x1c26   :  { %v4560_v40 = vpack.i.bf16 %v3350_v28, %v3347_v41  ;;  %v4451_v44 = vpop.f32.mrb[95].mxu1  ;;  %v4611_v41 = vld [vmem:[%s5859_s10 + $0x20] sm:$0xff]  }
0x1c28   :  { %4561 = vrot.lane.b32.xlu0 %v4560_v40, %s4811_s5  ;;  %v3397_v46 = vpop.f32.mrb[84].mxu0 }
0x1c29   :  { %v4458_v42 = vpop.f32.mrb[85].mxu0 }
0x1c2a   :  { %v3400_v47 = vpop.f32.mrb[86].mxu0 }
0x1c2b   :  { %v4565_v52 = vpack.i.bf16 %v3400_v47, %v3397_v46  ;;  %v4459_v53 = vpop.f32.mrb[87].mxu0  ;;  %v3576_v47 = vrot.slane %v5623_v10, %v5086_v48  ;;  %v4614_v48 = vld [vmem:[%s5859_s10 + $0x38] sm:$0xff]  }
0x1c2d   :  { %4566 = vrot.lane.b32.xlu1 %v4565_v52, %s4812_s25 }
0x1c30   :  { %v3447_v12 = vpop.f32.mrb[96].mxu1 }
0x1c31   :  { %v4466_v45 = vpop.f32.mrb[97].mxu1 }
0x1c32   :  { %v3450_v54 = vpop.f32.mrb[98].mxu1 }
0x1c33   :  { %v4570_v39 = vpack.i.bf16 %v3450_v54, %v3447_v12  ;;  %v4467_v30 = vpop.f32.mrb[99].mxu1 }
0x1c35   :  { %4571 = vrot.lane.b32.xlu0 %v4570_v39, %s4813_s15  ;;  %v3582_v39 = vrot.slane %v5623_v10, %v5219_v17  ;;  %v3960_v17 = vld [vmem:[%s5860_s11 + $0x1] ss:$0 sm:$0xff] }
0x1c9a   :  { %v4562_v0 = vpop.permute.xlu0 %4561 }
0x1c9b   :  { %v4564_v22 = vunpack.i.h.bf16 %v4562_v0  ;;  %v4563_v21 = vunpack.i.l.bf16 %v4562_v0 }
0x1c9d   :  { %v3478_v63 = vsel %vm273_vm2, %v3295_v32, %v4563_v21  ;;  %v3479_v1 = vsel %vm273_vm2, %v3298_v35, %v4564_v22  ;;  %v4613_v21 = vld [vmem:[%s5859_s10 + $0x30] sm:$0xff]  }
0x1c9f   :  { %v4567_v20 = vpop.permute.xlu1 %4566 }
0x1ca0   :  { %v4569_v38 = vunpack.i.h.bf16 %v4567_v20  ;;  %v4568_v6 = vunpack.i.l.bf16 %v4567_v20 }
0x1ca2   :  { %v3481_v3 = vsel %vm483_vm5, %v3479_v1, %v4569_v38  ;;  %v3480_v9 = vsel %vm483_vm5, %v3478_v63, %v4568_v6 }
0x1ca7   :  { %v4572_v16 = vpop.permute.xlu0 %4571 }
0x1ca8   :  { %v4574_v51 = vunpack.i.h.bf16 %v4572_v16  ;;  %v4573_v23 = vunpack.i.l.bf16 %v4572_v16 }
0x1caa   :  { %v3482_v15 = vsel %vm790_vm6, %v3480_v9, %v4573_v23  ;;  %v3483_v26 = vsel %vm790_vm6, %v3481_v3, %v4574_v51 }
0x1cab   :  { %v3484_v13 = vpack.c.bf16 %v3483_v26, %v3482_v15 }
0x1cad   :  { %4473 = vmatmul.mubr.msk.bf16.vlgmr.msra.gmra.mrb[88].mxu0 %vm145_vm1, %v3484_v13 }
0x1cae   :  { %4492 = vmatprep.mubr.msk.bf16.mxu0 %vm4800_vm0, %v4799_v2  ;;  %4485 = vmatpush3.bf16.msra.mxu0 %v4611_v41 }
0x1caf   :  { %4486 = vmatprep.subr.bf16.mxu0 %v4799_v2 }
0x1cb2   :  { %4487 = vmatpush3.bf16.msra.mxu0 %v4612_v33  ;;  %v3776_v33 = vrot.slane %v5623_v10, %v5236_v43 }
0x1cb3   :  { %4488 = vmatprep.subr.bf16.mxu0 %v4799_v2 }
0x1cb6   :  { %4489 = vmatpush3.bf16.msra.mxu0 %v4613_v21 }
0x1cb7   :  { %4490 = vmatprep.subr.bf16.mxu0 %v4799_v2 }
0x1cba   :  { %4491 = vmatpush3.bf16.msra.mxu0 %v4614_v48 }
0x1d80   :  { %v3538_v24 = vpop.f32.mrb[88].mxu0 }
0x1d81   :  { %v3539_v60 = vadd.f32 %v3538_v24, %v3488_v62  ;;  %v4474_v29 = vpop.f32.mrb[89].mxu0 }
0x1d82   :  { %v3541_v8 = vpop.f32.mrb[90].mxu0 }
0x1d83   :  { %v3545_v19 = vadd.f32 %v3539_v60, %v5629_v50  ;;  %v3542_v58 = vadd.f32 %v3541_v8, %v3488_v62  ;;  %v4475_v11 = vpop.f32.mrb[91].mxu0 }
0x1d85   :  { %v3546_v14 = vadd.f32 %v3542_v58, %v5631_v49  ;;  %v3547_v4 = vsel %vm145_vm1, %v3545_v19, 0.0  ;;  %v4609_v49 = vld [vmem:[%s5858_s9 + $0x10] sm:$0xff]  }
0x1d86   :  { %3548 = vadd.xlane.f32.xlu1 %v3547_v4  ;;  %4477 = vmatpush3.bf16.msra.mxu1 %v4609_v49  ;;  %v3770_v49 = vrot.slane %v5623_v10, %v5157_v37 }
0x1d87   :  { %v3550_v55 = vsel %vm145_vm1, %v3546_v14, 0.0  ;;  %4478 = vmatprep.subr.bf16.mxu1 %v4799_v2  ;;  %v3670_v2 = vrot.slane %v5623_v10, %v4952_v18 }
0x1d88   :  { %3551 = vadd.xlane.f32.xlu0 %v3550_v55 }
0x1d8a   :  { %4479 = vmatpush3.bf16.msra.mxu1 %v4610_v34 }
0x1e13   :  { %v3549_v56 = vpop.xlane.xlu1 %3548 }
0x1e14   :  { %v3553_v5 = vmul.f32 0.03125, %v3549_v56 }
0x1e15   :  { %v3552_v31 = vpop.xlane.xlu0 %3551 }
0x1e16   :  { %v3555_v27 = vsub.f32 %v3545_v19, %v3553_v5  ;;  %v3554_v59 = vmul.f32 0.03125, %v3552_v31 }
0x1e18   :  { %v3556_v32 = vsub.f32 %v3546_v14, %v3554_v59  ;;  %v3557_v61 = vmul.f32 %v3555_v27, %v3555_v27 }
0x1e1a   :  { %v3559_v35 = vsel %vm145_vm1, %v3557_v61, 0.0  ;;  %v3558_v50 = vmul.f32 %v3556_v32, %v3556_v32 }
0x1e1b   :  { %3560 = vadd.xlane.f32.xlu0 %v3559_v35 }
0x1e1c   :  { %v3562_v57 = vsel %vm145_vm1, %v3558_v50, 0.0 }
0x1e1d   :  { %3563 = vadd.xlane.f32.xlu1 %v3562_v57 }
0x1ea8   :  { %v3561_v28 = vpop.xlane.xlu0 %3560 }
0x1ea9   :  { %v3565_v40 = vmul.f32 0.03125, %v3561_v28 }
0x1eaa   :  { %v3564_v44 = vpop.xlane.xlu1 %3563 }
0x1eab   :  { %v3567_v46 = vadd.f32 1e-05, %v3565_v40  ;;  %v3566_v42 = vmul.f32 0.03125, %v3564_v44 }
0x1ead   :  { %4759 = vrsqrt.f32 %v3567_v46  ;;  %v3568_v7 = vadd.f32 1e-05, %v3566_v42 }
0x1eaf   :  { %4761 = vrsqrt.f32 %v3568_v7 }
0x1eb7   :  { %v4760_v52 = vpop.eup %4759 }
0x1eb8   :  { %v3571_v53 = vmul.f32 %v4760_v52, %v3555_v27 }
0x1eb9   :  { %v4762_v12 = vpop.eup %4761 }
0x1eba   :  { %v3577_v45 = vmul.f32 %v3576_v47, %v3571_v53  ;;  %v3572_v54 = vmul.f32 %v4762_v12, %v3556_v32 }
0x1ebc   :  { %v3578_v30 = vmul.f32 %v3576_v47, %v3572_v54  ;;  %v3583_v0 = vadd.f32 %v3582_v39, %v3577_v45 }
0x1ebe   :  { %v3584_v20 = vadd.f32 %v3582_v39, %v3578_v30 }
0x1ec0   :  { %v3585_v22 = vpack.c.bf16 %v3584_v20, %v3583_v0 }
0x1ec2   :  { %4481 = vmatmul.mubr.msk.bf16.vlgmr.msra.gmra.mrb[100].mxu1 %vm145_vm1, %v3585_v22 }
0x1f95   :  { %v3648_v38 = vpop.f32.mrb[100].mxu1 }
0x1f96   :  { %v3649_v6 = vadd.f32 %v3960_v17, %v3648_v38  ;;  %v4482_v16 = vpop.f32.mrb[101].mxu1 }
0x1f97   :  { %v3651_v63 = vpop.f32.mrb[102].mxu1  ;;  %v3808_v16 = vrot.slane %v5623_v10, %v5360_v36 }
0x1f98   :  { %v3652_v1 = vadd.f32 %v3960_v17, %v3651_v63  ;;  %v4483_v51 = vpop.f32.mrb[103].mxu1  ;;  %v3655_v23 = vmax.f32 %v3649_v6, 0.0 }
0x1f9a   :  { %v3656_v3 = vmax.f32 %v3652_v1, 0.0 }
0x1f9c   :  { %v3657_v9 = vpack.c.bf16 %v3656_v3, %v3655_v23  ;;  %v3977_v23 = vld [vmem:[%s5861_s12 + $0x28] ss:$0 sm:$0xff] }
0x1f9e   :  { %4493 = vmatmul.mubr.msk.bf16.vlgmr.msra.gmra.mrb[92].mxu0 %vm1860_vm9, %v3657_v9 }
0x2071   :  { %v3732_v15 = vpop.f32.mrb[92].mxu0 }
0x2072   :  { %v3733_v26 = vadd.f32 %v3732_v15, %v3670_v2  ;;  %v4494_v13 = vpop.f32.mrb[93].mxu0 }
0x2073   :  { %v3735_v25 = vpop.f32.mrb[94].mxu0 }
0x2074   :  { %v3739_v62 = vadd.f32 %v3733_v26, %v3583_v0  ;;  %v3736_v24 = vadd.f32 %v3735_v25, %v3670_v2  ;;  %v4495_v60 = vpop.f32.mrb[95].mxu0 }
0x2076   :  { %v3740_v29 = vadd.f32 %v3736_v24, %v3584_v20  ;;  %v3741_v8 = vsel %vm145_vm1, %v3739_v62, 0.0 }
0x2077   :  { %3742 = vadd.xlane.f32.xlu0 %v3741_v8 }
0x2078   :  { %v3744_v19 = vsel %vm145_vm1, %v3740_v29, 0.0 }
0x2079   :  { %3745 = vadd.xlane.f32.xlu1 %v3744_v19 }
0x2104   :  { %v3743_v58 = vpop.xlane.xlu0 %3742 }
0x2105   :  { %v3747_v11 = vmul.f32 0.03125, %v3743_v58 }
0x2106   :  { %v3746_v14 = vpop.xlane.xlu1 %3745 }
0x2107   :  { %v3749_v4 = vsub.f32 %v3739_v62, %v3747_v11  ;;  %v3748_v55 = vmul.f32 0.03125, %v3746_v14 }
0x2109   :  { %v3750_v18 = vsub.f32 %v3740_v29, %v3748_v55  ;;  %v3751_v56 = vmul.f32 %v3749_v4, %v3749_v4 }
0x210b   :  { %v3753_v5 = vsel %vm145_vm1, %v3751_v56, 0.0  ;;  %v3752_v31 = vmul.f32 %v3750_v18, %v3750_v18 }
0x210c   :  { %3754 = vadd.xlane.f32.xlu0 %v3753_v5 }
0x210d   :  { %v3756_v27 = vsel %vm145_vm1, %v3752_v31, 0.0 }
0x210e   :  { %3757 = vadd.xlane.f32.xlu1 %v3756_v27 }
0x2199   :  { %v3755_v59 = vpop.xlane.xlu0 %3754 }
0x219a   :  { %v3759_v32 = vmul.f32 0.03125, %v3755_v59 }
0x219b   :  { %v3758_v61 = vpop.xlane.xlu1 %3757 }
0x219c   :  { %v3761_v35 = vadd.f32 1e-05, %v3759_v32  ;;  %v3760_v50 = vmul.f32 0.03125, %v3758_v61 }
0x219e   :  { %4763 = vrsqrt.f32 %v3761_v35  ;;  %v3762_v57 = vadd.f32 1e-05, %v3760_v50 }
0x21a0   :  { %4765 = vrsqrt.f32 %v3762_v57 }
0x21a8   :  { %v4764_v34 = vpop.eup %4763 }
0x21a9   :  { %v3765_v41 = vmul.f32 %v4764_v34, %v3749_v4 }
0x21aa   :  { %v4766_v28 = vpop.eup %4765 }
0x21ab   :  { %v3771_v40 = vmul.f32 %v3770_v49, %v3765_v41  ;;  %v3766_v44 = vmul.f32 %v4766_v28, %v3750_v18 }
0x21ad   :  { %v3777_v46 = vadd.f32 %v3776_v33, %v3771_v40  ;;  %v3772_v42 = vmul.f32 %v3770_v49, %v3766_v44 }
0x21af   :  { %v3779_v7 = vsel %vm145_vm1, %v3777_v46, 0.0  ;;  %v3778_v47 = vadd.f32 %v3776_v33, %v3772_v42 }
0x21b0   :  { %3780 = vadd.xlane.f32.xlu0 %v3779_v7 }
0x21b1   :  { %v3782_v52 = vsel %vm145_vm1, %v3778_v47, 0.0 }
0x21b2   :  { %3783 = vadd.xlane.f32.xlu1 %v3782_v52 }
0x223d   :  { %v3781_v53 = vpop.xlane.xlu0 %3780 }
0x223e   :  { %v3785_v12 = vmul.f32 0.03125, %v3781_v53 }
0x223f   :  { %v3784_v37 = vpop.xlane.xlu1 %3783 }
0x2240   :  { %v3787_v45 = vsub.f32 %v3777_v46, %v3785_v12  ;;  %v3786_v54 = vmul.f32 0.03125, %v3784_v37 }
0x2242   :  { %v3788_v39 = vsub.f32 %v3778_v47, %v3786_v54  ;;  %v3789_v30 = vmul.f32 %v3787_v45, %v3787_v45 }
0x2244   :  { %v3791_v43 = vsel %vm145_vm1, %v3789_v30, 0.0  ;;  %v3790_v0 = vmul.f32 %v3788_v39, %v3788_v39 }
0x2245   :  { %3792 = vadd.xlane.f32.xlu0 %v3791_v43 }
0x2246   :  { %v3794_v20 = vsel %vm145_vm1, %v3790_v0, 0.0 }
0x2247   :  { %3795 = vadd.xlane.f32.xlu1 %v3794_v20 }
0x22d2   :  { %v3793_v22 = vpop.xlane.xlu0 %3792 }
0x22d3   :  { %v3797_v21 = vmul.f32 0.03125, %v3793_v22 }
0x22d4   :  { %v3796_v48 = vpop.xlane.xlu1 %3795 }
0x22d5   :  { %v3799_v17 = vadd.f32 1e-05, %v3797_v21  ;;  %v3798_v38 = vmul.f32 0.03125, %v3796_v48 }
0x22d7   :  { %4767 = vrsqrt.f32 %v3799_v17  ;;  %v3800_v6 = vadd.f32 1e-05, %v3798_v38 }
0x22d9   :  { %4769 = vrsqrt.f32 %v3800_v6 }
0x22e1   :  { %v4768_v63 = vpop.eup %4767 }
0x22e2   :  { %v3803_v1 = vmul.f32 %v4768_v63, %v3787_v45 }
0x22e3   :  { %v4770_v51 = vpop.eup %4769 }
0x22e4   :  { %v3804_v3 = vmul.f32 %v4770_v51, %v3788_v39  ;;  %v3809_v9 = vmul.f32 %v3808_v16, %v3803_v1 }
0x22e6   :  { %v3810_v2 = vmul.f32 %v3808_v16, %v3804_v3  ;;  %v3815_v15 = vadd.f32 %v3977_v23, %v3809_v9 }
0x22e8   :  { %v3816_v26 = vadd.f32 %v3977_v23, %v3810_v2  ;;  %3817 = vst.msk [vmem:[#allocation2] sm:$0xff] %vm145_vm1, %v3815_v15 }
0x22ea   :  { %3818 = vst.msk [vmem:[#allocation2 + $0x8] sm:$0xff] %vm145_vm1, %v3816_v26 }
0x22eb   :  { %4786 = shalt.err (!%p4783_p4)
}
0x22ec   :  { %s4787_s18 = scalar_lea.hbm %s5862_s13, 256 }
0x22ed   :  { %p4788_p5 = scmp.ne.s32.totalorder %s5862_s13, %s4787_s18  ;;  %p4791_p6 = scmp.lt.u32.totalorder %s4787_s18, %s5862_s13 }
0x22ef   :  { %p4793_p7 = pnand %p4791_p6, %p4788_p5 }
0x22f1   :  { %4796 = shalt.err (!%p4793_p7)
}
0x22f2   :  { %s4815_s2 = smov 128  }
0x22f3   :  { %3830 = dma.vmem_to_hbm [thread:$0]  %s3825_s3, 256, %s5862_s13, [#allocation3], %s4815_s2, %s4815_s2, %s4811_s5  }
0x22f4   :  { %4797 = dma.done.wait [#allocation3], 256  }
0x22f5   :  { %4798 = vsyncadd [#allocation3], 4294967040 }
0x22f6   :  { %3834 = vsyncpa [#allocation3], 1 }

</bundles_post_ra>
